<compile_context>
chip_gen: v7x
topology: tpu7x:2x2x1
jax: 0.10.0
libtpu: 0.0.40
codegen_flags: <defaults>
</compile_context>

<pallas_src>
import numpy as np
import jax
import jax.numpy as jnp
from jax.experimental import pallas as pl
from jax.experimental.pallas import tpu as pltpu

COUT = 64          # every layer outputs 64 channels
CIN_PAD = 8        # layer-1 input channels padded 3 -> 8
EPS = 1e-5
H_IN = 16          # spatial size of the test input (square)

# (conv padding, followed-by-maxpool?) for layer1..layer4
LAYER_SPECS = ((0, True), (0, True), (1, False), (1, False))


# ------------------------- static geometry / selection matrices ------------------------ #
def _build_geometry(h_in):
    """Flat-layout geometry per layer + 0/1 selection matrices (numpy, constants).

    Activations inside the kernel live as (rows, C) with flat row index r = i*Wp + j.
    For a 3x3 conv, out[r] = sum_t Z[r + off_t, t*C:(t+1)*C] with Z = X @ W_all and
    off_t = di*Wp + dj.  Pool = max of 4 row shifts; re-packing to the next layer's
    (zero-padded) flat layout is a constant selection matrix P (rows_next, rows_src).
    """
    geoms, sels = [], []
    h = h_in
    for li, (pad, pool) in enumerate(LAYER_SPECS):
        hp = h + 2 * pad                       # padded spatial size fed to this conv
        ho = hp - 2                            # conv output spatial size
        nrows = (ho - 1) * hp + ho             # activation rows needed in flat layout
        offs = tuple(di * hp + dj for di in range(3) for dj in range(3))
        if pool:
            hq = ho // 2                       # pooled spatial size (floor mode)
            nsrc = 2 * (hq - 1) * hp + 2 * (hq - 1) + 1   # rows of max4 output needed
            src_index = lambda i, j, hp=hp: 2 * i * hp + 2 * j
        else:
            hq = ho
            nsrc = nrows
            src_index = lambda i, j, hp=hp: i * hp + j
        geoms.append(dict(hp=hp, nrows=nrows, offs=offs, pool=pool, nsrc=nsrc))

        pad_n = LAYER_SPECS[li + 1][0] if li + 1 < len(LAYER_SPECS) else 0
        hn = hq + 2 * pad_n                    # next stage's flat spatial size
        p_sel = np.zeros((hn * hn, nsrc), np.float32)
        for i in range(hn):
            for j in range(hn):
                si, sj = i - pad_n, j - pad_n
                if 0 <= si < hq and 0 <= sj < hq:
                    p_sel[i * hn + j, src_index(si, sj)] = 1.0
        sels.append(p_sel)
        h = hq
    return geoms, sels, h


_GEOMS, _SELS, _H_OUT = _build_geometry(H_IN)


# ------------------------------------ Pallas kernel ------------------------------------ #
def _make_kernel(geoms, cout):
    def kernel(x_ref, w1_ref, w2_ref, w3_ref, w4_ref, b_ref,
               p1_ref, p2_ref, p3_ref, p4_ref, o_ref):
        w_refs = (w1_ref, w2_ref, w3_ref, w4_ref)
        p_refs = (p1_ref, p2_ref, p3_ref, p4_ref)

        x = x_ref[0]                                            # (Hp0^2, CIN_PAD) bf16
        for li, g in enumerate(geoms):
            nrows, offs = g["nrows"], g["offs"]
            # conv as ONE bf16 matmul against the 9-tap weight slab, f32 accumulate
            z = jnp.dot(x, w_refs[li][...], preferred_element_type=jnp.float32)
            acc = z[offs[0]:offs[0] + nrows, 0:cout]
            for t in range(1, 9):
                acc = acc + z[offs[t]:offs[t] + nrows, t * cout:(t + 1) * cout]
            # folded-BN bias + ReLU epilogue in f32
            act = jnp.maximum(acc + b_ref[li:li + 1, :], 0.0)   # (nrows, cout) f32
            if g["pool"]:
                hp, nsrc = g["hp"], g["nsrc"]
                act = jnp.maximum(
                    jnp.maximum(act[0:nsrc], act[1:nsrc + 1]),
                    jnp.maximum(act[hp:hp + nsrc], act[hp + 1:hp + 1 + nsrc]))
            # re-pack (crop valid / pool anchors / zero-pad border) via selection matmul
            nxt = jnp.dot(p_refs[li][...], act, preferred_element_type=jnp.float32)
            if li + 1 < len(geoms):
                x = nxt.astype(jnp.bfloat16)                    # next layer's flat input
            else:
                o_ref[0] = nxt                                  # (H_out^2, cout) f32
    return kernel


# ------------------------------- parameter preparation --------------------------------- #
def make_layer_params(key, c_in, c_out):
    k = jax.random.split(key, 6)
    return dict(
        w=jax.random.normal(k[0], (c_out, c_in, 3, 3), jnp.float32) * 0.05,
        b=jax.random.normal(k[1], (c_out,), jnp.float32) * 0.05,
        gamma=1.0 + 0.1 * jax.random.normal(k[2], (c_out,), jnp.float32),
        beta=0.1 * jax.random.normal(k[3], (c_out,), jnp.float32),
        mean=0.05 * jax.random.normal(k[4], (c_out,), jnp.float32),
        var=jnp.abs(jax.random.normal(k[5], (c_out,), jnp.float32)) * 0.5 + 0.5,
    )


def _fold_params(params):
    """Fold conv bias + eval-mode BN into (Cin, 9*Cout) bf16 weight slabs + f32 biases."""
    w_mats, biases = [], []
    for li, p in enumerate(params):
        scale = p["gamma"] / jnp.sqrt(p["var"] + EPS)                 # (Cout,)
        bias = p["beta"] + (p["b"] - p["mean"]) * scale               # (Cout,)
        w = p["w"].astype(jnp.float32) * scale[:, None, None, None]   # OIHW, scale folded
        cin = w.shape[1]
        # OIHW -> (Cin, kh, kw, Cout) -> (Cin, 9*Cout); column block t = di*3+dj
        w_cat = jnp.transpose(w, (1, 2, 3, 0)).reshape(cin, 9 * COUT)
        if li == 0:
            w_cat = jnp.pad(w_cat, ((0, CIN_PAD - cin), (0, 0)))
        w_mats.append(w_cat.astype(jnp.bfloat16))
        biases.append(bias)
    b_all = jnp.stack(biases, axis=0).astype(jnp.float32)             # (4, Cout)
    return w_mats, b_all


# ------------------------------------- forward ------------------------------------------ #
def cnn_encoder_forward(x_nchw, params):
    n = x_nchw.shape[0]
    w_mats, b_all = _fold_params(params)

    # NCHW -> NHWC, pad channels 3->8, flatten spatial, cast to bf16 for the MXU.
    x = jnp.transpose(x_nchw, (0, 2, 3, 1)).astype(jnp.float32)
    x = jnp.pad(x, ((0, 0), (0, 0), (0, 0), (0, CIN_PAD - x.shape[-1])))
    x_flat = x.reshape(n, H_IN * H_IN, CIN_PAD).astype(jnp.bfloat16)

    sels = [jnp.asarray(p) for p in _SELS]
    n_out_rows = _H_OUT * _H_OUT

    # advisory cost estimate
    flops = 0
    rows = H_IN * H_IN
    for li, p in enumerate(_SELS):
        k = CIN_PAD if li == 0 else COUT
        flops += 2 * rows * k * 9 * COUT                 # conv matmul
        flops += 2 * p.shape[0] * p.shape[1] * COUT      # pool / re-pack selection matmul
        rows = p.shape[0]
    flops = int(flops) * n
    bytes_accessed = int(2 * x_flat.size + sum(2 * w.size for w in w_mats)
                         + 4 * b_all.size + sum(4 * int(p.size) for p in _SELS)
                         + 4 * n * n_out_rows * COUT)

    in_specs = [pl.BlockSpec((1, H_IN * H_IN, CIN_PAD), lambda b: (b, 0, 0))]
    for w in w_mats:
        in_specs.append(pl.BlockSpec(w.shape, lambda b: (0, 0)))
    in_specs.append(pl.BlockSpec(b_all.shape, lambda b: (0, 0)))
    for p in sels:
        in_specs.append(pl.BlockSpec(p.shape, lambda b: (0, 0)))

    out = pl.pallas_call(
        _make_kernel(_GEOMS, COUT),
        out_shape=jax.ShapeDtypeStruct((n, n_out_rows, COUT), jnp.float32),
        grid=(n,),
        in_specs=in_specs,
        out_specs=pl.BlockSpec((1, n_out_rows, COUT), lambda b: (b, 0, 0)),
        compiler_params=pltpu.CompilerParams(
            dimension_semantics=("parallel",),
            vmem_limit_bytes=32 * 1024 * 1024),
        cost_estimate=pl.CostEstimate(flops=flops, transcendentals=0,
                                      bytes_accessed=bytes_accessed),
    )(x_flat, *w_mats, b_all, *sels)

    out = out.reshape(n, _H_OUT, _H_OUT, COUT)
    return jnp.transpose(out, (0, 3, 1, 2))               # NHWC -> NCHW


# ---------------------------------- pure-JAX reference ---------------------------------- #
def maxpool2(x_nhwc):
    n, h, w, c = x_nhwc.shape
    h2, w2 = h // 2, w // 2
    x = x_nhwc[:, :h2 * 2, :w2 * 2, :].reshape(n, h2, 2, w2, 2, c)
    return x.max(axis=(2, 4))


def reference_forward(x_nchw, params):
    x = jnp.transpose(x_nchw, (0, 2, 3, 1))

    def conv_bn_relu_ref(x, p, padding, eps=EPS):
        w_hwio = jnp.transpose(p["w"], (2, 3, 1, 0))
        y = jax.lax.conv_general_dilated(
            x, w_hwio, window_strides=(1, 1),
            padding=[(padding, padding), (padding, padding)],
            dimension_numbers=("NHWC", "HWIO", "NHWC"),
            precision=jax.lax.Precision.HIGHEST)
        y = y + p["b"]
        y = (y - p["mean"]) / jnp.sqrt(p["var"] + eps) * p["gamma"] + p["beta"]
        return jnp.maximum(y, 0.0)

    out = maxpool2(conv_bn_relu_ref(x, params[0], 0))
    out = maxpool2(conv_bn_relu_ref(out, params[1], 0))
    out = conv_bn_relu_ref(out, params[2], 1)
    out = conv_bn_relu_ref(out, params[3], 1)
    return jnp.transpose(out, (0, 3, 1, 2))


# ------------------------------------------ main ---------------------------------------- #
if __name__ == "__main__":
    key = jax.random.PRNGKey(0)
    kx, k1, k2, k3, k4 = jax.random.split(key, 5)

    # NCHW input (PyTorch convention): batch=2, channels=3, spatial=16
    x = jax.random.normal(kx, (2, 3, H_IN, H_IN), jnp.float32)
    params = [
        make_layer_params(k1, 3, 64),
        make_layer_params(k2, 64, 64),
        make_layer_params(k3, 64, 64),
        make_layer_params(k4, 64, 64),
    ]

    fwd = jax.jit(cnn_encoder_forward)
    out = jax.block_until_ready(fwd(x, params))
    ref = jax.block_until_ready(reference_forward(x, params))

    assert out.shape == (2, 64, _H_OUT, _H_OUT), out.shape
    # bf16 MXU inputs (f32 accumulation) vs a Precision.HIGHEST f32 reference:
    # tolerance loosened accordingly (accumulation error stays small).
    if not np.allclose(np.asarray(out), np.asarray(ref), atol=5e-2, rtol=5e-2):
        err = float(np.max(np.abs(np.asarray(out) - np.asarray(ref))))
        raise RuntimeError(f"Pallas output mismatch vs reference (max abs err={err})")

    print("KERNEL_OK")
</pallas_src>

<mosaic_0001>
module attributes {stable_mosaic.version = 11 : i64} {
  func.func @kernel(%arg0: i32, %arg1: memref<1x256x8xbf16, #tpu.memory_space<vmem>>, %arg2: memref<8x576xbf16, #tpu.memory_space<vmem>>, %arg3: memref<64x576xbf16, #tpu.memory_space<vmem>>, %arg4: memref<64x576xbf16, #tpu.memory_space<vmem>>, %arg5: memref<64x576xbf16, #tpu.memory_space<vmem>>, %arg6: memref<4x64xf32, #tpu.memory_space<vmem>>, %arg7: memref<49x205xf32, #tpu.memory_space<vmem>>, %arg8: memref<16x17xf32, #tpu.memory_space<vmem>>, %arg9: memref<16x6xf32, #tpu.memory_space<vmem>>, %arg10: memref<4x6xf32, #tpu.memory_space<vmem>>, %arg11: memref<1x4x64xf32, #tpu.memory_space<vmem>>) attributes {dimension_semantics = [#tpu.dimension_semantics<parallel>], iteration_bounds = array<i64: 2>, scalar_prefetch = 0 : i64, scratch_operands = 0 : i64, tpu.core_type = #tpu.core_type<tc>, window_params = [{transform_indices = @transform_0, window_bounds = array<i64: 1, 256, 8>}, {pipeline_mode = #tpu.pipeline_mode<synchronous>, transform_indices = @transform_1, window_bounds = array<i64: 8, 576>}, {pipeline_mode = #tpu.pipeline_mode<synchronous>, transform_indices = @transform_2, window_bounds = array<i64: 64, 576>}, {pipeline_mode = #tpu.pipeline_mode<synchronous>, transform_indices = @transform_3, window_bounds = array<i64: 64, 576>}, {pipeline_mode = #tpu.pipeline_mode<synchronous>, transform_indices = @transform_4, window_bounds = array<i64: 64, 576>}, {pipeline_mode = #tpu.pipeline_mode<synchronous>, transform_indices = @transform_5, window_bounds = array<i64: 4, 64>}, {pipeline_mode = #tpu.pipeline_mode<synchronous>, transform_indices = @transform_6, window_bounds = array<i64: 49, 205>}, {pipeline_mode = #tpu.pipeline_mode<synchronous>, transform_indices = @transform_7, window_bounds = array<i64: 16, 17>}, {pipeline_mode = #tpu.pipeline_mode<synchronous>, transform_indices = @transform_8, window_bounds = array<i64: 16, 6>}, {pipeline_mode = #tpu.pipeline_mode<synchronous>, transform_indices = @transform_9, window_bounds = array<i64: 4, 6>}, {transform_indices = @transform_10, window_bounds = array<i64: 1, 4, 64>}]} {
    %c0 = arith.constant 0 : index
    %c0_0 = arith.constant 0 : index
    %c0_1 = arith.constant 0 : index
    %0 = vector.load %arg1[%c0, %c0_0, %c0_1] : memref<1x256x8xbf16, #tpu.memory_space<vmem>>, vector<1x256x8xbf16>
    %1 = vector.shape_cast %0 : vector<1x256x8xbf16> to vector<256x8xbf16>
    %c0_2 = arith.constant 0 : index
    %c0_3 = arith.constant 0 : index
    %2 = vector.load %arg2[%c0_2, %c0_3] : memref<8x576xbf16, #tpu.memory_space<vmem>>, vector<8x576xbf16>
    %cst = arith.constant dense<0.000000e+00> : vector<256x576xf32>
    %3 = tpu.matmul %1, %2, %cst {dimension_numbers = #tpu.dot_dimension_numbers<[1], [0], [0], [1], [0, 0, 1, 1], [], []>} : vector<256x8xbf16>, vector<8x576xbf16>, vector<256x576xf32> -> vector<256x576xf32>
    %4 = vector.extract_strided_slice %3 {offsets = [0, 0], sizes = [222, 64], strides = [1, 1]} : vector<256x576xf32> to vector<222x64xf32>
    %5 = vector.extract_strided_slice %3 {offsets = [1, 64], sizes = [222, 64], strides = [1, 1]} : vector<256x576xf32> to vector<222x64xf32>
    %6 = arith.addf %4, %5 : vector<222x64xf32>
    %7 = vector.extract_strided_slice %3 {offsets = [2, 128], sizes = [222, 64], strides = [1, 1]} : vector<256x576xf32> to vector<222x64xf32>
    %8 = arith.addf %6, %7 : vector<222x64xf32>
    %9 = vector.extract_strided_slice %3 {offsets = [16, 192], sizes = [222, 64], strides = [1, 1]} : vector<256x576xf32> to vector<222x64xf32>
    %10 = arith.addf %8, %9 : vector<222x64xf32>
    %11 = vector.extract_strided_slice %3 {offsets = [17, 256], sizes = [222, 64], strides = [1, 1]} : vector<256x576xf32> to vector<222x64xf32>
    %12 = arith.addf %10, %11 : vector<222x64xf32>
    %13 = vector.extract_strided_slice %3 {offsets = [18, 320], sizes = [222, 64], strides = [1, 1]} : vector<256x576xf32> to vector<222x64xf32>
    %14 = arith.addf %12, %13 : vector<222x64xf32>
    %15 = vector.extract_strided_slice %3 {offsets = [32, 384], sizes = [222, 64], strides = [1, 1]} : vector<256x576xf32> to vector<222x64xf32>
    %16 = arith.addf %14, %15 : vector<222x64xf32>
    %17 = vector.extract_strided_slice %3 {offsets = [33, 448], sizes = [222, 64], strides = [1, 1]} : vector<256x576xf32> to vector<222x64xf32>
    %18 = arith.addf %16, %17 : vector<222x64xf32>
    %19 = vector.extract_strided_slice %3 {offsets = [34, 512], sizes = [222, 64], strides = [1, 1]} : vector<256x576xf32> to vector<222x64xf32>
    %20 = arith.addf %18, %19 : vector<222x64xf32>
    %c0_4 = arith.constant 0 : index
    %c0_5 = arith.constant 0 : index
    %21 = vector.load %arg6[%c0_4, %c0_5] : memref<4x64xf32, #tpu.memory_space<vmem>>, vector<1x64xf32>
    %22 = vector.broadcast %21 : vector<1x64xf32> to vector<222x64xf32>
    %23 = arith.addf %20, %22 : vector<222x64xf32>
    %cst_6 = arith.constant 0.000000e+00 : f32
    %24 = vector.broadcast %cst_6 : f32 to vector<222x64xf32>
    %25 = arith.maximumf %23, %24 : vector<222x64xf32>
    %26 = vector.extract_strided_slice %25 {offsets = [0, 0], sizes = [205, 64], strides = [1, 1]} : vector<222x64xf32> to vector<205x64xf32>
    %27 = vector.extract_strided_slice %25 {offsets = [1, 0], sizes = [205, 64], strides = [1, 1]} : vector<222x64xf32> to vector<205x64xf32>
    %28 = arith.maximumf %26, %27 : vector<205x64xf32>
    %29 = vector.extract_strided_slice %25 {offsets = [16, 0], sizes = [205, 64], strides = [1, 1]} : vector<222x64xf32> to vector<205x64xf32>
    %30 = vector.extract_strided_slice %25 {offsets = [17, 0], sizes = [205, 64], strides = [1, 1]} : vector<222x64xf32> to vector<205x64xf32>
    %31 = arith.maximumf %29, %30 : vector<205x64xf32>
    %32 = arith.maximumf %28, %31 : vector<205x64xf32>
    %c0_7 = arith.constant 0 : index
    %c0_8 = arith.constant 0 : index
    %33 = vector.load %arg7[%c0_7, %c0_8] : memref<49x205xf32, #tpu.memory_space<vmem>>, vector<49x205xf32>
    %cst_9 = arith.constant dense<0.000000e+00> : vector<49x64xf32>
    %34 = tpu.matmul %33, %32, %cst_9 {dimension_numbers = #tpu.dot_dimension_numbers<[1], [0], [0], [1], [0, 0, 1, 1], [], []>} : vector<49x205xf32>, vector<205x64xf32>, vector<49x64xf32> -> vector<49x64xf32>
    %35 = arith.truncf %34 : vector<49x64xf32> to vector<49x64xbf16>
    %c0_10 = arith.constant 0 : index
    %c0_11 = arith.constant 0 : index
    %36 = vector.load %arg3[%c0_10, %c0_11] : memref<64x576xbf16, #tpu.memory_space<vmem>>, vector<64x576xbf16>
    %cst_12 = arith.constant dense<0.000000e+00> : vector<49x576xf32>
    %37 = tpu.matmul %35, %36, %cst_12 {dimension_numbers = #tpu.dot_dimension_numbers<[1], [0], [0], [1], [0, 0, 1, 1], [], []>} : vector<49x64xbf16>, vector<64x576xbf16>, vector<49x576xf32> -> vector<49x576xf32>
    %38 = vector.extract_strided_slice %37 {offsets = [0, 0], sizes = [33, 64], strides = [1, 1]} : vector<49x576xf32> to vector<33x64xf32>
    %39 = vector.extract_strided_slice %37 {offsets = [1, 64], sizes = [33, 64], strides = [1, 1]} : vector<49x576xf32> to vector<33x64xf32>
    %40 = arith.addf %38, %39 : vector<33x64xf32>
    %41 = vector.extract_strided_slice %37 {offsets = [2, 128], sizes = [33, 64], strides = [1, 1]} : vector<49x576xf32> to vector<33x64xf32>
    %42 = arith.addf %40, %41 : vector<33x64xf32>
    %43 = vector.extract_strided_slice %37 {offsets = [7, 192], sizes = [33, 64], strides = [1, 1]} : vector<49x576xf32> to vector<33x64xf32>
    %44 = arith.addf %42, %43 : vector<33x64xf32>
    %45 = vector.extract_strided_slice %37 {offsets = [8, 256], sizes = [33, 64], strides = [1, 1]} : vector<49x576xf32> to vector<33x64xf32>
    %46 = arith.addf %44, %45 : vector<33x64xf32>
    %47 = vector.extract_strided_slice %37 {offsets = [9, 320], sizes = [33, 64], strides = [1, 1]} : vector<49x576xf32> to vector<33x64xf32>
    %48 = arith.addf %46, %47 : vector<33x64xf32>
    %49 = vector.extract_strided_slice %37 {offsets = [14, 384], sizes = [33, 64], strides = [1, 1]} : vector<49x576xf32> to vector<33x64xf32>
    %50 = arith.addf %48, %49 : vector<33x64xf32>
    %51 = vector.extract_strided_slice %37 {offsets = [15, 448], sizes = [33, 64], strides = [1, 1]} : vector<49x576xf32> to vector<33x64xf32>
    %52 = arith.addf %50, %51 : vector<33x64xf32>
    %53 = vector.extract_strided_slice %37 {offsets = [16, 512], sizes = [33, 64], strides = [1, 1]} : vector<49x576xf32> to vector<33x64xf32>
    %54 = arith.addf %52, %53 : vector<33x64xf32>
    %c1 = arith.constant 1 : index
    %c0_13 = arith.constant 0 : index
    %55 = vector.load %arg6[%c1, %c0_13] : memref<4x64xf32, #tpu.memory_space<vmem>>, vector<1x64xf32>
    %56 = vector.broadcast %55 : vector<1x64xf32> to vector<33x64xf32>
    %57 = arith.addf %54, %56 : vector<33x64xf32>
    %cst_14 = arith.constant 0.000000e+00 : f32
    %58 = vector.broadcast %cst_14 : f32 to vector<33x64xf32>
    %59 = arith.maximumf %57, %58 : vector<33x64xf32>
    %60 = vector.extract_strided_slice %59 {offsets = [0, 0], sizes = [17, 64], strides = [1, 1]} : vector<33x64xf32> to vector<17x64xf32>
    %61 = vector.extract_strided_slice %59 {offsets = [1, 0], sizes = [17, 64], strides = [1, 1]} : vector<33x64xf32> to vector<17x64xf32>
    %62 = arith.maximumf %60, %61 : vector<17x64xf32>
    %63 = vector.extract_strided_slice %59 {offsets = [7, 0], sizes = [17, 64], strides = [1, 1]} : vector<33x64xf32> to vector<17x64xf32>
    %64 = vector.extract_strided_slice %59 {offsets = [8, 0], sizes = [17, 64], strides = [1, 1]} : vector<33x64xf32> to vector<17x64xf32>
    %65 = arith.maximumf %63, %64 : vector<17x64xf32>
    %66 = arith.maximumf %62, %65 : vector<17x64xf32>
    %c0_15 = arith.constant 0 : index
    %c0_16 = arith.constant 0 : index
    %67 = vector.load %arg8[%c0_15, %c0_16] : memref<16x17xf32, #tpu.memory_space<vmem>>, vector<16x17xf32>
    %cst_17 = arith.constant dense<0.000000e+00> : vector<16x64xf32>
    %68 = tpu.matmul %67, %66, %cst_17 {dimension_numbers = #tpu.dot_dimension_numbers<[1], [0], [0], [1], [0, 0, 1, 1], [], []>} : vector<16x17xf32>, vector<17x64xf32>, vector<16x64xf32> -> vector<16x64xf32>
    %69 = arith.truncf %68 : vector<16x64xf32> to vector<16x64xbf16>
    %c0_18 = arith.constant 0 : index
    %c0_19 = arith.constant 0 : index
    %70 = vector.load %arg4[%c0_18, %c0_19] : memref<64x576xbf16, #tpu.memory_space<vmem>>, vector<64x576xbf16>
    %cst_20 = arith.constant dense<0.000000e+00> : vector<16x576xf32>
    %71 = tpu.matmul %69, %70, %cst_20 {dimension_numbers = #tpu.dot_dimension_numbers<[1], [0], [0], [1], [0, 0, 1, 1], [], []>} : vector<16x64xbf16>, vector<64x576xbf16>, vector<16x576xf32> -> vector<16x576xf32>
    %72 = vector.extract_strided_slice %71 {offsets = [0, 0], sizes = [6, 64], strides = [1, 1]} : vector<16x576xf32> to vector<6x64xf32>
    %73 = vector.extract_strided_slice %71 {offsets = [1, 64], sizes = [6, 64], strides = [1, 1]} : vector<16x576xf32> to vector<6x64xf32>
    %74 = arith.addf %72, %73 : vector<6x64xf32>
    %75 = vector.extract_strided_slice %71 {offsets = [2, 128], sizes = [6, 64], strides = [1, 1]} : vector<16x576xf32> to vector<6x64xf32>
    %76 = arith.addf %74, %75 : vector<6x64xf32>
    %77 = vector.extract_strided_slice %71 {offsets = [4, 192], sizes = [6, 64], strides = [1, 1]} : vector<16x576xf32> to vector<6x64xf32>
    %78 = arith.addf %76, %77 : vector<6x64xf32>
    %79 = vector.extract_strided_slice %71 {offsets = [5, 256], sizes = [6, 64], strides = [1, 1]} : vector<16x576xf32> to vector<6x64xf32>
    %80 = arith.addf %78, %79 : vector<6x64xf32>
    %81 = vector.extract_strided_slice %71 {offsets = [6, 320], sizes = [6, 64], strides = [1, 1]} : vector<16x576xf32> to vector<6x64xf32>
    %82 = arith.addf %80, %81 : vector<6x64xf32>
    %83 = vector.extract_strided_slice %71 {offsets = [8, 384], sizes = [6, 64], strides = [1, 1]} : vector<16x576xf32> to vector<6x64xf32>
    %84 = arith.addf %82, %83 : vector<6x64xf32>
    %85 = vector.extract_strided_slice %71 {offsets = [9, 448], sizes = [6, 64], strides = [1, 1]} : vector<16x576xf32> to vector<6x64xf32>
    %86 = arith.addf %84, %85 : vector<6x64xf32>
    %87 = vector.extract_strided_slice %71 {offsets = [10, 512], sizes = [6, 64], strides = [1, 1]} : vector<16x576xf32> to vector<6x64xf32>
    %88 = arith.addf %86, %87 : vector<6x64xf32>
    %c2 = arith.constant 2 : index
    %c0_21 = arith.constant 0 : index
    %89 = vector.load %arg6[%c2, %c0_21] : memref<4x64xf32, #tpu.memory_space<vmem>>, vector<1x64xf32>
    %90 = vector.broadcast %89 : vector<1x64xf32> to vector<6x64xf32>
    %91 = arith.addf %88, %90 : vector<6x64xf32>
    %cst_22 = arith.constant 0.000000e+00 : f32
    %92 = vector.broadcast %cst_22 : f32 to vector<6x64xf32>
    %93 = arith.maximumf %91, %92 : vector<6x64xf32>
    %c0_23 = arith.constant 0 : index
    %c0_24 = arith.constant 0 : index
    %94 = vector.load %arg9[%c0_23, %c0_24] : memref<16x6xf32, #tpu.memory_space<vmem>>, vector<16x6xf32>
    %cst_25 = arith.constant dense<0.000000e+00> : vector<16x64xf32>
    %95 = tpu.matmul %94, %93, %cst_25 {dimension_numbers = #tpu.dot_dimension_numbers<[1], [0], [0], [1], [0, 0, 1, 1], [], []>} : vector<16x6xf32>, vector<6x64xf32>, vector<16x64xf32> -> vector<16x64xf32>
    %96 = arith.truncf %95 : vector<16x64xf32> to vector<16x64xbf16>
    %c0_26 = arith.constant 0 : index
    %c0_27 = arith.constant 0 : index
    %97 = vector.load %arg5[%c0_26, %c0_27] : memref<64x576xbf16, #tpu.memory_space<vmem>>, vector<64x576xbf16>
    %cst_28 = arith.constant dense<0.000000e+00> : vector<16x576xf32>
    %98 = tpu.matmul %96, %97, %cst_28 {dimension_numbers = #tpu.dot_dimension_numbers<[1], [0], [0], [1], [0, 0, 1, 1], [], []>} : vector<16x64xbf16>, vector<64x576xbf16>, vector<16x576xf32> -> vector<16x576xf32>
    %99 = vector.extract_strided_slice %98 {offsets = [0, 0], sizes = [6, 64], strides = [1, 1]} : vector<16x576xf32> to vector<6x64xf32>
    %100 = vector.extract_strided_slice %98 {offsets = [1, 64], sizes = [6, 64], strides = [1, 1]} : vector<16x576xf32> to vector<6x64xf32>
    %101 = arith.addf %99, %100 : vector<6x64xf32>
    %102 = vector.extract_strided_slice %98 {offsets = [2, 128], sizes = [6, 64], strides = [1, 1]} : vector<16x576xf32> to vector<6x64xf32>
    %103 = arith.addf %101, %102 : vector<6x64xf32>
    %104 = vector.extract_strided_slice %98 {offsets = [4, 192], sizes = [6, 64], strides = [1, 1]} : vector<16x576xf32> to vector<6x64xf32>
    %105 = arith.addf %103, %104 : vector<6x64xf32>
    %106 = vector.extract_strided_slice %98 {offsets = [5, 256], sizes = [6, 64], strides = [1, 1]} : vector<16x576xf32> to vector<6x64xf32>
    %107 = arith.addf %105, %106 : vector<6x64xf32>
    %108 = vector.extract_strided_slice %98 {offsets = [6, 320], sizes = [6, 64], strides = [1, 1]} : vector<16x576xf32> to vector<6x64xf32>
    %109 = arith.addf %107, %108 : vector<6x64xf32>
    %110 = vector.extract_strided_slice %98 {offsets = [8, 384], sizes = [6, 64], strides = [1, 1]} : vector<16x576xf32> to vector<6x64xf32>
    %111 = arith.addf %109, %110 : vector<6x64xf32>
    %112 = vector.extract_strided_slice %98 {offsets = [9, 448], sizes = [6, 64], strides = [1, 1]} : vector<16x576xf32> to vector<6x64xf32>
    %113 = arith.addf %111, %112 : vector<6x64xf32>
    %114 = vector.extract_strided_slice %98 {offsets = [10, 512], sizes = [6, 64], strides = [1, 1]} : vector<16x576xf32> to vector<6x64xf32>
    %115 = arith.addf %113, %114 : vector<6x64xf32>
    %c3 = arith.constant 3 : index
    %c0_29 = arith.constant 0 : index
    %116 = vector.load %arg6[%c3, %c0_29] : memref<4x64xf32, #tpu.memory_space<vmem>>, vector<1x64xf32>
    %117 = vector.broadcast %116 : vector<1x64xf32> to vector<6x64xf32>
    %118 = arith.addf %115, %117 : vector<6x64xf32>
    %cst_30 = arith.constant 0.000000e+00 : f32
    %119 = vector.broadcast %cst_30 : f32 to vector<6x64xf32>
    %120 = arith.maximumf %118, %119 : vector<6x64xf32>
    %c0_31 = arith.constant 0 : index
    %c0_32 = arith.constant 0 : index
    %121 = vector.load %arg10[%c0_31, %c0_32] : memref<4x6xf32, #tpu.memory_space<vmem>>, vector<4x6xf32>
    %cst_33 = arith.constant dense<0.000000e+00> : vector<4x64xf32>
    %122 = tpu.matmul %121, %120, %cst_33 {dimension_numbers = #tpu.dot_dimension_numbers<[1], [0], [0], [1], [0, 0, 1, 1], [], []>} : vector<4x6xf32>, vector<6x64xf32>, vector<4x64xf32> -> vector<4x64xf32>
    %c0_34 = arith.constant 0 : index
    %c0_35 = arith.constant 0 : index
    %c0_36 = arith.constant 0 : index
    %123 = vector.load %arg11[%c0_34, %c0_35, %c0_36] : memref<1x4x64xf32, #tpu.memory_space<vmem>>, vector<1x4x64xf32>
    %124 = vector.shape_cast %123 : vector<1x4x64xf32> to vector<4x64xf32>
    %125 = vector.shape_cast %122 : vector<4x64xf32> to vector<1x4x64xf32>
    tpu.vector_store %arg11[%c0_34, %c0_35, %c0_36], %125 {strides = array<i32>} : memref<1x4x64xf32, #tpu.memory_space<vmem>>, vector<1x4x64xf32>,
    return
  }
  func.func @transform_0(%arg0: i32) -> (i32, i32, i32) {
    %c0_i32 = arith.constant 0 : i32
    %c0_i32_0 = arith.constant 0 : i32
    %c0_i32_1 = arith.constant 0 : i32
    return %arg0, %c0_i32, %c0_i32_0 : i32, i32, i32
  }
  func.func @transform_1(%arg0: i32) -> (i32, i32) {
    %c0_i32 = arith.constant 0 : i32
    %c0_i32_0 = arith.constant 0 : i32
    %c0_i32_1 = arith.constant 0 : i32
    return %c0_i32, %c0_i32_0 : i32, i32
  }
  func.func @transform_2(%arg0: i32) -> (i32, i32) {
    %c0_i32 = arith.constant 0 : i32
    %c0_i32_0 = arith.constant 0 : i32
    %c0_i32_1 = arith.constant 0 : i32
    return %c0_i32, %c0_i32_0 : i32, i32
  }
  func.func @transform_3(%arg0: i32) -> (i32, i32) {
    %c0_i32 = arith.constant 0 : i32
    %c0_i32_0 = arith.constant 0 : i32
    %c0_i32_1 = arith.constant 0 : i32
    return %c0_i32, %c0_i32_0 : i32, i32
  }
  func.func @transform_4(%arg0: i32) -> (i32, i32) {
    %c0_i32 = arith.constant 0 : i32
    %c0_i32_0 = arith.constant 0 : i32
    %c0_i32_1 = arith.constant 0 : i32
    return %c0_i32, %c0_i32_0 : i32, i32
  }
  func.func @transform_5(%arg0: i32) -> (i32, i32) {
    %c0_i32 = arith.constant 0 : i32
    %c0_i32_0 = arith.constant 0 : i32
    %c0_i32_1 = arith.constant 0 : i32
    return %c0_i32, %c0_i32_0 : i32, i32
  }
  func.func @transform_6(%arg0: i32) -> (i32, i32) {
    %c0_i32 = arith.constant 0 : i32
    %c0_i32_0 = arith.constant 0 : i32
    %c0_i32_1 = arith.constant 0 : i32
    return %c0_i32, %c0_i32_0 : i32, i32
  }
  func.func @transform_7(%arg0: i32) -> (i32, i32) {
    %c0_i32 = arith.constant 0 : i32
    %c0_i32_0 = arith.constant 0 : i32
    %c0_i32_1 = arith.constant 0 : i32
    return %c0_i32, %c0_i32_0 : i32, i32
  }
  func.func @transform_8(%arg0: i32) -> (i32, i32) {
    %c0_i32 = arith.constant 0 : i32
    %c0_i32_0 = arith.constant 0 : i32
    %c0_i32_1 = arith.constant 0 : i32
    return %c0_i32, %c0_i32_0 : i32, i32
  }
  func.func @transform_9(%arg0: i32) -> (i32, i32) {
    %c0_i32 = arith.constant 0 : i32
    %c0_i32_0 = arith.constant 0 : i32
    %c0_i32_1 = arith.constant 0 : i32
    return %c0_i32, %c0_i32_0 : i32, i32
  }
  func.func @transform_10(%arg0: i32) -> (i32, i32, i32) {
    %c0_i32 = arith.constant 0 : i32
    %c0_i32_0 = arith.constant 0 : i32
    %c0_i32_1 = arith.constant 0 : i32
    return %arg0, %c0_i32, %c0_i32_0 : i32, i32, i32
  }
}

</mosaic_0001>

<bundles_post_ra>
// kernel: cnn_encoder_forward.1
= control target key start
LH: loop header
LB: loop body
LE: loop exit
PB: predicated region body
PF: predicated region fallthrough
CT: control target
= control target key end

     0   :  { %15 = vsyncpa [#allocation3], 0  ;;  %s6576_s0 = inlined_call_operand.vmem [shape: bf16[2,256,8], index: 0, kind: input, shape index: {}]   ;;  %s6577_s1 = inlined_call_operand.vmem [shape: bf16[8,576], index: 1, kind: input, shape index: {}]   ;;  %s6578_s2 = inlined_call_operand.vmem [shape: bf16[64,576], index: 2, kind: input, shape index: {}]   ;;  %s6579_s3 = inlined_call_operand.vmem [shape: bf16[64,576], index: 3, kind: input, shape index: {}]   ;;  %s6580_s4 = inlined_call_operand.vmem [shape: bf16[64,576], index: 4, kind: input, shape index: {}]   ;;  %s6581_s5 = inlined_call_operand.vmem [shape: f32[4,64], index: 5, kind: input, shape index: {}]   ;;  %s6582_s6 = inlined_call_operand.vmem [shape: f32[49,205], index: 6, kind: input, shape index: {}]   ;;  %s6583_s7 = inlined_call_operand.vmem [shape: f32[16,17], index: 7, kind: input, shape index: {}]   ;;  %s6584_s8 = inlined_call_operand.vmem [shape: f32[16,6], index: 8, kind: input, shape index: {}]   ;;  %s6585_s9 = inlined_call_operand.vmem [shape: f32[4,6], index: 9, kind: input, shape index: {}]   ;;  %s6586_s10 = inlined_call_operand.hbm [shape: f32[2,4,64], index: 10, kind: output, shape index: {}]  }
   0x1   :  { %17 = vsyncpa [#allocation3 + $0x1], 0  ;;  %s4699_s13 = smov 0   ;;  %s4701_s14 = smov 0  }
   0x2   :  { %s4703_s15 = smov 0   ;;  %s4705_s16 = smov 0  }
   0x3 LB: > { %s4720_s17 = sadd.s32 4294967295, %s4635_s16   ;;  %s4058_s18 = sadd.s32 4294967294, %s4635_s16   ;;  %s4635_s16 = sphi %s4705_s16, %s6887_s16   ;;  %s4631_s15 = sphi %s4703_s15, %s6886_s15   ;;  %s4627_s14 = sphi %s4701_s14, %s6885_s14   ;;  %s4623_s13 = sphi %s4699_s13, %s6884_s13  }
   0x4   : > { %s4724_s19 = sadd.s32 1, %s4635_s16   ;;  %s245_s20 = sadd.s32 1, %s4631_s15 }
   0x5   : > { %s242_s21 = ssub.s32 %s4635_s16, %s4724_s19  ;;  %p255_p0 = scmp.ne.s32.totalorder %s4631_s15, %s4627_s14 }
   0x6   : > { %p243_p1 = scmp.eq.s32.totalorder %s242_s21, 0  ;;  %p256_p2 = scmp.eq.s32.totalorder %s4720_s17, 1 }
   0x7   : > { %p261_p3 = scmp.ne.s32.totalorder %s4627_s14, %s4623_s13  ;;  %p262_p4 = scmp.eq.s32.totalorder %s4058_s18, 1 }
   0x8   : > { %s4735_s22 = scalar_select %p243_p1, %s4631_s15, %s245_s20  }
   0x9   : > { %p4737_p5 = por %p256_p2, %p255_p0  ;;  %p4741_p6 = por %p262_p4, %p261_p3 }
   0xa   : > { %p4061_p7 = scmp.ge.s32.totalorder %s4635_s16, 1  ;;  %p315_p8 = scmp.lt.s32.totalorder %s4635_s16, 3 }
   0xc   : > { %p316_p9 = pnand %p4061_p7, %p315_p8 }
   0xe   : > { %319 = sbr.rel (%p316_p9) target bundleno = 2591 (0xa1f), region = 60 }
  0x15   : > { %v391_v0 = vld [vmem:[%s6577_s1] sm:$0xff]  ;;  %vm536_vm0 = vcmask 1043456   ;;  %v392_v1 = vld [vmem:[%s6577_s1 + $0x8] sm:$0xff]  ;;  %p353_p10 = scmp.lt.s32.totalorder %s4720_s17, 1  ;;  %v6587_v6 = vmov 0   ;;  %vm487_vm1 = vcmask 64512  }
  0x16   : > { %v4082_v2 = vcombine.high %v391_v0, %v391_v0  ;;  %v4084_v3 = vcombine.high %v392_v1, %v392_v1  ;;  %v4081_v4 = vcombine.low %v391_v0, %v391_v0  ;;  %v4083_v5 = vcombine.low %v392_v1, %v392_v1  ;;  %584 = vmatprep.mubr.bf16.mxu0 %v6587_v6  ;;  %v4487_v7 = vld [vmem:[%s6577_s1 + $0x10] ss:$0 sps:$4 sm:$0xff]   ;;  %s4638_s25 = smov 64   ;;  %s350_s18 = sand.u32 1, %s4627_s14  }
  0x17   : > { %771 = vmatprep.mubr.bf16.mxu1 %v6587_v6  ;;  %s354_s11 = scalar_select %p353_p10, %s4720_s17, 1  ;;  %v550_v11 = vsel %vm536_vm0, %v4487_v7, 0  ;;  %vm1109_vm2 = vcmask 1046528   ;;  %vm1305_vm3 = vcmask 1045504   ;;  %vm2441_vm4 = vcmask 629760  }
  0x18   : > { %4086 = vmatprep.subr.msk.bf16.mxu0 %vm536_vm0, %v4082_v2  ;;  %4103 = vmatprep.subr.msk.bf16.mxu1 %vm536_vm0, %v4084_v3  ;;  %v538_v8 = vsel %vm536_vm0, %v4081_v4, 0  ;;  %v544_v9 = vsel %vm536_vm0, %v4083_v5, 0  ;;  %vm2463_vm5 = vcmask 1044480   ;;  %vm4640_vm6 = vmmov 1   ;;  %s4062_s20 = sshll.u32 %s350_s18, 2  ;;  %s3986_s30 = scalar_lea.sflag [#allocation3], %s350_s18 }
  0x19   : > { %553 = vmatpush1.bf16.msra.mxu0 %v538_v8  ;;  %740 = vmatpush1.bf16.msra.mxu1 %v544_v9  ;;  %s4238_s12 = sshll.u32 %s354_s11, 7  ;;  %vm4415_vm7 = vmpackc.low %vm2463_vm5, %vm4640_vm6  ;;  %vm2699_vm8 = vcmask 523264   ;;  %vm2959_vm9 = vcmask 1040384   ;;  %vm3024_vm10 = vcmask 1041408   ;;  %vm3121_vm11 = vcmask 138240   ;;  %s352_s26 = scalar_lea.vmem [#allocation2], %s4062_s20 }
  0x1a   : > { %s4767_s21 = scalar_lea.vmem %s6576_s0, %s4238_s12  ;;  %4421 = vmatprep.subr.msk.bf16.mxu0 %vm536_vm0, %v4487_v7  ;;  %vm4642_vm12 = vmmov 0   ;;  %vm3482_vm13 = vcmask 1042432   ;;  %vm3515_vm14 = vcmask 48128   ;;  %s3999_s27 = sshll.u32 %s352_s26, 4  ;;  %vm3983_vm15 = vcmask 519168   ;;  %s6536_s27 = int_to_ptr.vmem [resolvable:$true] %s3999_s27 }
  0x1b   : > { %v4771_v10 = vld [vmem:[%s4767_s21] sm:$0xff]   ;;  %v4781_v12 = vld [vmem:[%s4767_s21 + $0x8] sm:$0xff]   ;;  %v4790_v13 = vld [vmem:[%s4767_s21 + $0x10] sm:$0xff]   ;;  %s4573_s11 = scalar_lea.vmem %s6536_s27, 64 }
  0x1c   : > { %4087 = vmatmul.mubr.msk.bf16.vlgmr.msra.gmra.mrb[0].mxu0 %vm487_vm1, %v4771_v10  ;;  %4104 = vmatmul.mubr.msk.bf16.vlgmr.msra.gmra.mrb[0].mxu1 %vm487_vm1, %v4771_v10  ;;  %v4799_v14 = vld [vmem:[%s4767_s21 + $0x18] sm:$0xff]   ;;  %v4475_v15 = vld [vmem:[%s4767_s21 + $0x20] sm:$0xff]   ;;  %v4476_v16 = vld [vmem:[%s4767_s21 + $0x28] sm:$0xff]   ;;  %p4574_p11 = scmp.ne.s32.totalorder %s6536_s27, %s4573_s11 }
  0x1d   : > { %594 = vmatprep.mubr.bf16.mxu0 %v6587_v6  ;;  %777 = vmatprep.mubr.bf16.mxu1 %v6587_v6  ;;  %v4477_v17 = vld [vmem:[%s4767_s21 + $0x30] sm:$0xff]   ;;  %v4478_v18 = vld [vmem:[%s4767_s21 + $0x38] sm:$0xff]   ;;  %v4479_v19 = vld [vmem:[%s4767_s21 + $0x40] sm:$0xff]  }
  0x1e   : > { %4285 = vmatpush3.bf16.msra.mxu0 %v550_v11  ;;  %v4480_v20 = vld [vmem:[%s4767_s21 + $0x48] sm:$0xff]   ;;  %v4481_v21 = vld [vmem:[%s4767_s21 + $0x50] sm:$0xff]   ;;  %v4482_v22 = vld [vmem:[%s4767_s21 + $0x58] sm:$0xff]   ;;  %p4575_p12 = pnand %p4574_p11, %p4737_p5 }
  0x1f   : > { %v4483_v23 = vld [vmem:[%s4767_s21 + $0x60] sm:$0xff]   ;;  %v4484_v24 = vld [vmem:[%s4767_s21 + $0x68] sm:$0xff]   ;;  %v4485_v25 = vld [vmem:[%s4767_s21 + $0x70] sm:$0xff]  }
  0x20   : > { %v4486_v26 = vld [vmem:[%s4767_s21 + $0x78] sm:$0xff]   ;;  %s4235_s21 = sshll.u32 %s4720_s17, 6  ;;  %p4576_p13 = pneg %p4575_p12 }
  0x21   : > { %s4643_s17 = smov [#allocation2]  }
  0x22   : > { %s4577_s12 = sshll.u32 %s4643_s17, 4  ;;  %s4578_s12 = int_to_ptr.vmem [resolvable:$false] %s4577_s12 }
  0x23   : > { %s4579_s20 = scalar_lea.vmem %s4578_s12, 128  ;;  %p4580_p0 = scmp.lt.s32.totalorder %s6536_s27, %s4578_s12 }
  0x24   : > { %4088 = vmatmul.mubr.msk.bf16.gmra.mrb[4].mxu0 %vm487_vm1, %v4781_v12  ;;  %4105 = vmatmul.mubr.msk.bf16.gmra.mrb[4].mxu1 %vm487_vm1, %v4781_v12  ;;  %p4581_p1 = scmp.lt.s32.totalorder %s4579_s20, %s4573_s11 }
  0x25   : > { %604 = vmatprep.mubr.bf16.mxu0 %v6587_v6  ;;  %785 = vmatprep.mubr.bf16.mxu1 %v6587_v6 }
  0x26   : > { %p4582_p2 = por %p4581_p1, %p4580_p0 }
  0x28   : > { %p4583_p3 = pnand %p4582_p2, %p4576_p13 }
  0x2c   : > { %4089 = vmatmul.mubr.msk.bf16.gmra.mrb[8].mxu0 %vm487_vm1, %v4790_v13  ;;  %4106 = vmatmul.mubr.msk.bf16.gmra.mrb[8].mxu1 %vm487_vm1, %v4790_v13 }
  0x2d   : > { %614 = vmatprep.mubr.bf16.mxu0 %v6587_v6  ;;  %795 = vmatprep.mubr.bf16.mxu1 %v6587_v6 }
  0x34   : > { %4090 = vmatmul.mubr.msk.bf16.gmra.mrb[12].mxu0 %vm487_vm1, %v4799_v14  ;;  %4107 = vmatmul.mubr.msk.bf16.gmra.mrb[12].mxu1 %vm487_vm1, %v4799_v14 }
  0x35   : > { %624 = vmatprep.mubr.bf16.mxu0 %v6587_v6  ;;  %805 = vmatprep.mubr.bf16.mxu1 %v6587_v6 }
  0x3c   : > { %4091 = vmatmul.mubr.msk.bf16.gmra.mrb[16].mxu0 %vm487_vm1, %v4475_v15  ;;  %4108 = vmatmul.mubr.msk.bf16.gmra.mrb[16].mxu1 %vm487_vm1, %v4475_v15 }
  0x3d   : > { %634 = vmatprep.mubr.bf16.mxu0 %v6587_v6  ;;  %815 = vmatprep.mubr.bf16.mxu1 %v6587_v6 }
  0x44   : > { %4092 = vmatmul.mubr.msk.bf16.gmra.mrb[20].mxu0 %vm487_vm1, %v4476_v16  ;;  %4109 = vmatmul.mubr.msk.bf16.gmra.mrb[20].mxu1 %vm487_vm1, %v4476_v16 }
  0x45   : > { %644 = vmatprep.mubr.bf16.mxu0 %v6587_v6  ;;  %825 = vmatprep.mubr.bf16.mxu1 %v6587_v6 }
  0x4c   : > { %4093 = vmatmul.mubr.msk.bf16.gmra.mrb[24].mxu0 %vm487_vm1, %v4477_v17  ;;  %4110 = vmatmul.mubr.msk.bf16.gmra.mrb[24].mxu1 %vm487_vm1, %v4477_v17 }
  0x4d   : > { %654 = vmatprep.mubr.bf16.mxu0 %v6587_v6  ;;  %835 = vmatprep.mubr.bf16.mxu1 %v6587_v6 }
  0x54   : > { %4094 = vmatmul.mubr.msk.bf16.gmra.mrb[28].mxu0 %vm487_vm1, %v4478_v18  ;;  %4111 = vmatmul.mubr.msk.bf16.gmra.mrb[28].mxu1 %vm487_vm1, %v4478_v18 }
  0x55   : > { %664 = vmatprep.mubr.bf16.mxu0 %v6587_v6  ;;  %845 = vmatprep.mubr.bf16.mxu1 %v6587_v6 }
  0x5c   : > { %4095 = vmatmul.mubr.msk.bf16.gmra.mrb[32].mxu0 %vm487_vm1, %v4479_v19  ;;  %4112 = vmatmul.mubr.msk.bf16.gmra.mrb[32].mxu1 %vm487_vm1, %v4479_v19 }
  0x5d   : > { %674 = vmatprep.mubr.bf16.mxu0 %v6587_v6  ;;  %855 = vmatprep.mubr.bf16.mxu1 %v6587_v6 }
  0x64   : > { %4096 = vmatmul.mubr.msk.bf16.gmra.mrb[36].mxu0 %vm487_vm1, %v4480_v20  ;;  %4113 = vmatmul.mubr.msk.bf16.gmra.mrb[36].mxu1 %vm487_vm1, %v4480_v20 }
  0x65   : > { %684 = vmatprep.mubr.bf16.mxu0 %v6587_v6  ;;  %865 = vmatprep.mubr.bf16.mxu1 %v6587_v6 }
  0x6c   : > { %4097 = vmatmul.mubr.msk.bf16.gmra.mrb[40].mxu0 %vm487_vm1, %v4481_v21  ;;  %4114 = vmatmul.mubr.msk.bf16.gmra.mrb[40].mxu1 %vm487_vm1, %v4481_v21 }
  0x6d   : > { %694 = vmatprep.mubr.bf16.mxu0 %v6587_v6  ;;  %875 = vmatprep.mubr.bf16.mxu1 %v6587_v6 }
  0x74   : > { %4098 = vmatmul.mubr.msk.bf16.gmra.mrb[44].mxu0 %vm487_vm1, %v4482_v22  ;;  %4115 = vmatmul.mubr.msk.bf16.gmra.mrb[44].mxu1 %vm487_vm1, %v4482_v22 }
  0x75   : > { %704 = vmatprep.mubr.bf16.mxu0 %v6587_v6  ;;  %885 = vmatprep.mubr.bf16.mxu1 %v6587_v6 }
  0x7c   : > { %4099 = vmatmul.mubr.msk.bf16.gmra.mrb[48].mxu0 %vm487_vm1, %v4483_v23  ;;  %4116 = vmatmul.mubr.msk.bf16.gmra.mrb[48].mxu1 %vm487_vm1, %v4483_v23 }
  0x7d   : > { %714 = vmatprep.mubr.bf16.mxu0 %v6587_v6  ;;  %895 = vmatprep.mubr.bf16.mxu1 %v6587_v6 }
  0x84   : > { %4100 = vmatmul.mubr.msk.bf16.gmra.mrb[52].mxu0 %vm487_vm1, %v4484_v24  ;;  %4117 = vmatmul.mubr.msk.bf16.gmra.mrb[52].mxu1 %vm487_vm1, %v4484_v24 }
  0x85   : > { %724 = vmatprep.mubr.bf16.mxu0 %v6587_v6  ;;  %905 = vmatprep.mubr.bf16.mxu1 %v6587_v6 }
  0x8c   : > { %4101 = vmatmul.mubr.msk.bf16.gmra.mrb[56].mxu0 %vm487_vm1, %v4485_v25  ;;  %4118 = vmatmul.mubr.msk.bf16.gmra.mrb[56].mxu1 %vm487_vm1, %v4485_v25 }
  0x8d   : > { %732 = vmatprep.mubr.bf16.mxu0 %v6587_v6  ;;  %915 = vmatprep.mubr.bf16.mxu1 %v6587_v6 }
  0x94   : > { %4102 = vmatmul.mubr.msk.bf16.gmra.mrb[60].mxu0 %vm487_vm1, %v4486_v26  ;;  %4119 = vmatmul.mubr.msk.bf16.gmra.mrb[60].mxu1 %vm487_vm1, %v4486_v26 }
  0x95   : > { %4286 = vmatprep.mubr.msk.bf16.mxu0 %vm487_vm1, %v4771_v10 }
  0x9c   : > { %4287 = vmatmul.mubr.msk.bf16.vlgmr.msra.gmra.mrb[64].mxu0 %vm487_vm1, %v4781_v12 }
  0x9d   : > { %4290 = vmatprep.mubr.msk.bf16.mxu0 %vm487_vm1, %v4790_v13 }
  0xa4   : > { %4291 = vmatmul.mubr.msk.bf16.gmra.mrb[68].mxu0 %vm487_vm1, %v4799_v14 }
  0xa5   : > { %4294 = vmatprep.mubr.msk.bf16.mxu0 %vm487_vm1, %v4475_v15 }
  0xac   : > { %4295 = vmatmul.mubr.msk.bf16.gmra.mrb[72].mxu0 %vm487_vm1, %v4476_v16 }
  0xad   : > { %4298 = vmatprep.mubr.msk.bf16.mxu0 %vm487_vm1, %v4477_v17 }
  0xb4   : > { %4299 = vmatmul.mubr.msk.bf16.gmra.mrb[76].mxu0 %vm487_vm1, %v4478_v18 }
  0xb5   : > { %4302 = vmatprep.mubr.msk.bf16.mxu0 %vm487_vm1, %v4479_v19 }
  0xbc   : > { %4303 = vmatmul.mubr.msk.bf16.gmra.mrb[80].mxu0 %vm487_vm1, %v4480_v20 }
  0xbd   : > { %4306 = vmatprep.mubr.msk.bf16.mxu0 %vm487_vm1, %v4481_v21 }
  0xc4   : > { %4307 = vmatmul.mubr.msk.bf16.gmra.mrb[84].mxu0 %vm487_vm1, %v4482_v22 }
  0xc5   : > { %4310 = vmatprep.mubr.msk.bf16.mxu0 %vm487_vm1, %v4483_v23 }
  0xcc   : > { %4311 = vmatmul.mubr.msk.bf16.gmra.mrb[88].mxu0 %vm487_vm1, %v4484_v24 }
  0xcd   : > { %4314 = vmatprep.mubr.msk.bf16.mxu0 %vm487_vm1, %v4485_v25 }
  0xd4   : > { %4315 = vmatmul.mubr.msk.bf16.gmra.mrb[92].mxu0 %vm487_vm1, %v4486_v26 }
  0xef   : > { %v4885_v27 = vpop.f32.mrb[0].mxu0  ;;  %v773_v28 = vpop.f32.mrb[0].mxu1 }
  0xf0   : > { %v588_v29 = vpop.f32.mrb[1].mxu0  ;;  %v774_v30 = vpop.f32.mrb[1].mxu1  ;;  %v1110_v33 = vrot.slane %v4885_v27, 1 }
  0xf1   : > { %v4887_v31 = vpop.f32.mrb[2].mxu0  ;;  %v775_v32 = vpop.f32.mrb[2].mxu1  ;;  %v1306_v37 = vrot.slane %v588_v29, 2 }
  0xf2   : > { %v1111_v34 = vrot.slane %v4887_v31, 1  ;;  %v592_v35 = vpop.f32.mrb[3].mxu0  ;;  %v776_v36 = vpop.f32.mrb[3].mxu1 }
  0xf3   : > { %v1307_v38 = vrot.slane %v592_v35, 2 }
  0xf4   : > { %v1112_v39 = vsel %vm1109_vm2, %v1110_v33, %v1111_v34 }
  0xf5   : > { %1165 = vrot.lane.b32.xlu0 %v1112_v39, %s4638_s25  ;;  %v4894_v40 = vsel %vm1305_vm3, %v1306_v37, %v1307_v38 }
  0xf7   : > { %v4896_v41 = vpop.f32.mrb[4].mxu0  ;;  %v779_v42 = vpop.f32.mrb[4].mxu1 }
  0xf8   : > { %v1113_v43 = vrot.slane %v4896_v41, 1  ;;  %v598_v44 = vpop.f32.mrb[5].mxu0  ;;  %v1559_v45 = vrot.slane %v779_v42, 1  ;;  %v1670_v46 = vrot.slane %v779_v42, 2  ;;  %v781_v47 = vpop.f32.mrb[5].mxu1 }
  0xf9   : > { %v1309_v48 = vrot.slane %v598_v44, 2  ;;  %1419 = vrot.lane.b32.xlu1 %v598_v44, %s4638_s25  ;;  %v4900_v49 = vpop.f32.mrb[6].mxu0  ;;  %v782_v50 = vpop.f32.mrb[6].mxu1 }
  0xfa   : > { %v1115_v51 = vrot.slane %v4900_v49, 1  ;;  %v602_v52 = vpop.f32.mrb[7].mxu0  ;;  %v1114_v53 = vsel %vm1109_vm2, %v1111_v34, %v1113_v43  ;;  %v1560_v54 = vrot.slane %v782_v50, 1  ;;  %v1671_v55 = vrot.slane %v782_v50, 2  ;;  %v784_v56 = vpop.f32.mrb[7].mxu1 }
  0xfb   : > { %v1311_v57 = vrot.slane %v602_v52, 2  ;;  %1167 = vrot.lane.b32.xlu0 %v1114_v53, %s4638_s25  ;;  %v4906_v58 = vsel %vm1305_vm3, %v1307_v38, %v1309_v48 }
  0xfc   : > { %v1116_v59 = vsel %vm1109_vm2, %v1113_v43, %v1115_v51  ;;  %v1672_v60 = vsel %vm1305_vm3, %v1670_v46, %v1671_v55  ;;  %v4911_v61 = vsel %vm1109_vm2, %v1559_v45, %v1560_v54 }
  0xfd   : > { %1169 = vrot.lane.b32.xlu1 %v1116_v59, %s4638_s25  ;;  %v4915_v62 = vsel %vm1305_vm3, %v1309_v48, %v1311_v57 }
  0xff   : > { %v787_v63 = vpop.f32.mrb[8].mxu1  ;;  %1421 = vrot.lane.b32.xlu0 %v602_v52, %s4638_s25  ;;  %v4918_v0 = vpop.f32.mrb[8].mxu0 }
 0x100   : > { %6649 = vst [vmem:[#allocation5_spill] sm:$0xff] %v4918_v0  ;;  %v1562_v1 = vrot.slane %v787_v63, 1  ;;  %v1673_v2 = vrot.slane %v787_v63, 2  ;;  %v1117_v3 = vrot.slane %v4918_v0, 1  ;;  %v608_v4 = vpop.f32.mrb[9].mxu0  ;;  %v4921_v5 = vpop.f32.mrb[9].mxu1 }
 0x101   : > { %v1313_v7 = vrot.slane %v608_v4, 2  ;;  %1423 = vrot.lane.b32.xlu1 %v608_v4, %s4638_s25  ;;  %v4924_v8 = vpop.f32.mrb[10].mxu0  ;;  %v1893_v9 = vrot.slane %v4921_v5, 1  ;;  %v791_v10 = vpop.f32.mrb[10].mxu1 }
 0x102   : > { %6650 = vst [vmem:[#allocation6_spill] sm:$0xff] %v4924_v8  ;;  %v1119_v11 = vrot.slane %v4924_v8, 1  ;;  %v612_v12 = vpop.f32.mrb[11].mxu0  ;;  %v1564_v13 = vrot.slane %v791_v10, 1  ;;  %v1675_v14 = vrot.slane %v791_v10, 2  ;;  %v4928_v15 = vpop.f32.mrb[11].mxu1  ;;  %v1118_v16 = vsel %vm1109_vm2, %v1115_v51, %v1117_v3 }
 0x103   : > { %6651 = vst [vmem:[#allocation7_spill] sm:$0xff] %v4928_v15  ;;  %v1315_v17 = vrot.slane %v612_v12, 2  ;;  %1725 = vrot.lane.b32.xlu0 %v1672_v60, %s4638_s25  ;;  %v1894_v18 = vrot.slane %v4928_v15, 1  ;;  %v1674_v19 = vsel %vm1305_vm3, %v1671_v55, %v1673_v2  ;;  %v4935_v20 = vsel %vm1305_vm3, %v1311_v57, %v1313_v7 }
 0x104   : > { %v1120_v21 = vsel %vm1109_vm2, %v1117_v3, %v1119_v11  ;;  %v1676_v22 = vsel %vm1305_vm3, %v1673_v2, %v1675_v14  ;;  %v4940_v23 = vsel %vm1109_vm2, %v1560_v54, %v1562_v1  ;;  %v4943_v24 = vsel %vm1109_vm2, %v1562_v1, %v1564_v13 }
 0x105   : > { %1171 = vrot.lane.b32.xlu1 %v1118_v16, %s4638_s25  ;;  %v1895_v25 = vsel %vm1109_vm2, %v1893_v9, %v1894_v18  ;;  %v4948_v26 = vsel %vm1305_vm3, %v1313_v7, %v1315_v17 }
 0x106   : > { %6652 = vst [vmem:[#allocation8_spill] sm:$0xff] %v4948_v26 }
 0x107   : > { %v797_v28 = vpop.f32.mrb[12].mxu1  ;;  %1425 = vrot.lane.b32.xlu0 %v612_v12, %s4638_s25  ;;  %v4951_v29 = vpop.f32.mrb[12].mxu0 }
 0x108   : > { %6653 = vst [vmem:[#allocation9_spill] sm:$0xff] %v4951_v29  ;;  %v1566_v30 = vrot.slane %v797_v28, 1  ;;  %v1677_v32 = vrot.slane %v797_v28, 2  ;;  %v1121_v33 = vrot.slane %v4951_v29, 1  ;;  %v618_v34 = vpop.f32.mrb[13].mxu0  ;;  %v4954_v35 = vpop.f32.mrb[13].mxu1 }
 0x109   : > { %6654 = vst [vmem:[#allocation10_spill] sm:$0xff] %v4954_v35  ;;  %v1317_v36 = vrot.slane %v618_v34, 2  ;;  %v1896_v37 = vrot.slane %v4954_v35, 1  ;;  %1727 = vrot.lane.b32.xlu1 %v1674_v19, %s4638_s25  ;;  %v4958_v38 = vpop.f32.mrb[14].mxu0  ;;  %v801_v39 = vpop.f32.mrb[14].mxu1 }
 0x10a   : > { %6655 = vst [vmem:[#allocation11_spill] sm:$0xff] %v4958_v38  ;;  %v1123_v42 = vrot.slane %v4958_v38, 1  ;;  %v622_v43 = vpop.f32.mrb[15].mxu0  ;;  %v1568_v44 = vrot.slane %v801_v39, 1  ;;  %v1679_v45 = vrot.slane %v801_v39, 2  ;;  %v4961_v46 = vpop.f32.mrb[15].mxu1  ;;  %v1122_v47 = vsel %vm1109_vm2, %v1119_v11, %v1121_v33 }
 0x10b   : > { %6656 = vst [vmem:[#allocation12_spill] sm:$0xff] %v4961_v46  ;;  %1173 = vrot.lane.b32.xlu0 %v1120_v21, %s4638_s25  ;;  %v1319_v48 = vrot.slane %v622_v43, 2  ;;  %v1898_v50 = vrot.slane %v4961_v46, 1  ;;  %v1897_v51 = vsel %vm1109_vm2, %v1894_v18, %v1896_v37  ;;  %v1678_v52 = vsel %vm1305_vm3, %v1675_v14, %v1677_v32 }
 0x10c   : > { %v1124_v53 = vsel %vm1109_vm2, %v1121_v33, %v1123_v42  ;;  %v4970_v54 = vsel %vm1305_vm3, %v1677_v32, %v1679_v45  ;;  %v4973_v55 = vsel %vm1305_vm3, %v1315_v17, %v1317_v36  ;;  %v4976_v56 = vsel %vm1109_vm2, %v1564_v13, %v1566_v30 }
 0x10d   : > { %6657 = vst [vmem:[#allocation13_spill] sm:$0xff] %v4973_v55  ;;  %6658 = vst [vmem:[#allocation14_spill] sm:$0xff] %v4976_v56  ;;  %1948 = vrot.lane.b32.xlu1 %v1895_v25, %s4638_s25  ;;  %v4980_v57 = vsel %vm1109_vm2, %v1896_v37, %v1898_v50  ;;  %v4983_v59 = vsel %vm1109_vm2, %v1566_v30, %v1568_v44  ;;  %v4986_v60 = vsel %vm1305_vm3, %v1317_v36, %v1319_v48 }
 0x10e   : > { %6659 = vst [vmem:[#allocation15_spill] sm:$0xff] %v4983_v59  ;;  %6660 = vst [vmem:[#allocation16_spill] sm:$0xff] %v4986_v60 }
 0x10f   : > { %1729 = vrot.lane.b32.xlu0 %v1676_v22, %s4638_s25  ;;  %v4989_v63 = vpop.f32.mrb[16].mxu0  ;;  %v807_v1 = vpop.f32.mrb[16].mxu1 }
 0x110   : > { %6661 = vst [vmem:[#allocation17_spill] sm:$0xff] %v4989_v63  ;;  %v1125_v2 = vrot.slane %v4989_v63, 1  ;;  %v4992_v3 = vpop.f32.mrb[17].mxu0  ;;  %v1570_v4 = vrot.slane %v807_v1, 1  ;;  %v1681_v7 = vrot.slane %v807_v1, 2  ;;  %v4994_v9 = vpop.f32.mrb[17].mxu1 }
 0x111   : > { %6662 = vst [vmem:[#allocation18_spill] sm:$0xff] %v4994_v9  ;;  %v1321_v10 = vrot.slane %v4992_v3, 2  ;;  %1427 = vrot.lane.b32.xlu1 %v618_v34, %s4638_s25  ;;  %v1900_v11 = vrot.slane %v4994_v9, 1  ;;  %v4999_v12 = vpop.f32.mrb[18].mxu0  ;;  %v811_v13 = vpop.f32.mrb[18].mxu1 }
 0x112   : > { %6663 = vst [vmem:[#allocation19_spill] sm:$0xff] %v4999_v12  ;;  %v1127_v14 = vrot.slane %v4999_v12, 1  ;;  %v5002_v16 = vpop.f32.mrb[19].mxu0  ;;  %v1572_v17 = vrot.slane %v811_v13, 1  ;;  %v1683_v18 = vrot.slane %v811_v13, 2  ;;  %v5004_v19 = vpop.f32.mrb[19].mxu1  ;;  %v5007_v21 = vsel %vm1109_vm2, %v1123_v42, %v1125_v2 }
 0x113   : > { %6664 = vst [vmem:[#allocation20_spill] sm:$0xff] %v5004_v19  ;;  %1429 = vrot.lane.b32.xlu0 %v622_v43, %s4638_s25  ;;  %v1323_v22 = vrot.slane %v5002_v16, 2  ;;  %v1902_v25 = vrot.slane %v5004_v19, 1  ;;  %v5013_v28 = vsel %vm1109_vm2, %v1898_v50, %v1900_v11  ;;  %v5016_v30 = vsel %vm1305_vm3, %v1679_v45, %v1681_v7 }
 0x114   : > { %v5019_v32 = vsel %vm1305_vm3, %v1681_v7, %v1683_v18  ;;  %v5022_v33 = vsel %vm1109_vm2, %v1125_v2, %v1127_v14  ;;  %v5025_v34 = vsel %vm1305_vm3, %v1319_v48, %v1321_v10  ;;  %v5028_v36 = vsel %vm1109_vm2, %v1568_v44, %v1570_v4 }
 0x115   : > { %6665 = vst [vmem:[#allocation21_spill] sm:$0xff] %v5025_v34  ;;  %6666 = vst [vmem:[#allocation22_spill] sm:$0xff] %v5028_v36  ;;  %1175 = vrot.lane.b32.xlu1 %v1122_v47, %s4638_s25  ;;  %v5032_v37 = vsel %vm1109_vm2, %v1900_v11, %v1902_v25  ;;  %v5035_v39 = vsel %vm1109_vm2, %v1570_v4, %v1572_v17  ;;  %v5038_v42 = vsel %vm1305_vm3, %v1321_v10, %v1323_v22 }
 0x116   : > { %6667 = vst [vmem:[#allocation23_spill] sm:$0xff] %v5035_v39  ;;  %6668 = vst [vmem:[#allocation24_spill] sm:$0xff] %v5038_v42 }
 0x117   : > { %1950 = vrot.lane.b32.xlu0 %v1897_v51, %s4638_s25  ;;  %v5041_v43 = vpop.f32.mrb[20].mxu0  ;;  %v817_v45 = vpop.f32.mrb[20].mxu1 }
 0x118   : > { %6669 = vst [vmem:[#allocation25_spill] sm:$0xff] %v5041_v43  ;;  %v1129_v48 = vrot.slane %v5041_v43, 1  ;;  %v5044_v44 = vpop.f32.mrb[21].mxu0  ;;  %v1574_v50 = vrot.slane %v817_v45, 1  ;;  %v1685_v47 = vrot.slane %v817_v45, 2  ;;  %v5046_v1 = vpop.f32.mrb[21].mxu1 }
 0x119   : > { %6670 = vst [vmem:[#allocation26_spill] sm:$0xff] %v5046_v1  ;;  %1731 = vrot.lane.b32.xlu1 %v1678_v52, %s4638_s25  ;;  %v1325_v2 = vrot.slane %v5044_v44, 2  ;;  %v1904_v4 = vrot.slane %v5046_v1, 1  ;;  %v5051_v7 = vpop.f32.mrb[22].mxu0  ;;  %v821_v51 = vpop.f32.mrb[22].mxu1 }
 0x11a   : > { %6671 = vst [vmem:[#allocation27_spill] sm:$0xff] %v5051_v7  ;;  %v1131_v10 = vrot.slane %v5051_v7, 1  ;;  %v5054_v11 = vpop.f32.mrb[23].mxu0  ;;  %v1576_v13 = vrot.slane %v821_v51, 1  ;;  %v1687_v6 = vrot.slane %v821_v51, 2  ;;  %v5056_v43 = vpop.f32.mrb[23].mxu1  ;;  %v5059_v45 = vsel %vm1109_vm2, %v1127_v14, %v1129_v48 }
 0x11b   : > { %6672 = vst [vmem:[#allocation28_spill] sm:$0xff] %v5056_v43  ;;  %1177 = vrot.lane.b32.xlu0 %v1124_v53, %s4638_s25  ;;  %v1327_v52 = vrot.slane %v5054_v11, 2  ;;  %v1906_v12 = vrot.slane %v5056_v43, 1  ;;  %v5065_v42 = vsel %vm1305_vm3, %v1683_v18, %v1685_v47  ;;  %v5068_v7 = vsel %vm1109_vm2, %v1902_v25, %v1904_v4 }
 0x11c   : > { %v5071_v1 = vsel %vm1305_vm3, %v1685_v47, %v1687_v6  ;;  %v5074_v51 = vsel %vm1109_vm2, %v1129_v48, %v1131_v10  ;;  %v5077_v14 = vsel %vm1305_vm3, %v1323_v22, %v1325_v2  ;;  %v5080_v53 = vsel %vm1109_vm2, %v1572_v17, %v1574_v50 }
 0x11d   : > { %6673 = vst [vmem:[#allocation29_spill] sm:$0xff] %v5077_v14  ;;  %6674 = vst [vmem:[#allocation30_spill] sm:$0xff] %v5080_v53  ;;  %1952 = vrot.lane.b32.xlu1 %v4980_v57, %s4638_s25  ;;  %v5085_v18 = vsel %vm1109_vm2, %v1904_v4, %v1906_v12  ;;  %v5088_v25 = vsel %vm1109_vm2, %v1574_v50, %v1576_v13  ;;  %v5091_v47 = vsel %vm1305_vm3, %v1325_v2, %v1327_v52 }
 0x11e   : > { %6675 = vst [vmem:[#allocation31_spill] sm:$0xff] %v5088_v25  ;;  %6676 = vst [vmem:[#allocation32_spill] sm:$0xff] %v5091_v47 }
 0x11f   : > { %1733 = vrot.lane.b32.xlu0 %v4970_v54, %s4638_s25  ;;  %v5095_v22 = vpop.f32.mrb[24].mxu0  ;;  %v827_v48 = vpop.f32.mrb[24].mxu1 }
 0x120   : > { %6677 = vst [vmem:[#allocation33_spill] sm:$0xff] %v5095_v22  ;;  %v1133_v17 = vrot.slane %v5095_v22, 1  ;;  %v5098_v43 = vpop.f32.mrb[25].mxu0  ;;  %v1689_v57 = vrot.slane %v827_v48, 2  ;;  %v5100_v14 = vpop.f32.mrb[25].mxu1  ;;  %v1578_v2 = vrot.slane %v827_v48, 1 }
 0x121   : > { %6678 = vst [vmem:[#allocation34_spill] sm:$0xff] %v5100_v14  ;;  %1431 = vrot.lane.b32.xlu1 %v4992_v3, %s4638_s25  ;;  %v1329_v50 = vrot.slane %v5098_v43, 2  ;;  %v1908_v4 = vrot.slane %v5100_v14, 1  ;;  %v5106_v47 = vpop.f32.mrb[26].mxu0  ;;  %v831_v54 = vpop.f32.mrb[26].mxu1 }
 0x122   : > { %6679 = vst [vmem:[#allocation35_spill] sm:$0xff] %v5106_v47  ;;  %v1135_v25 = vrot.slane %v5106_v47, 1  ;;  %v5109_v63 = vpop.f32.mrb[27].mxu0  ;;  %v1580_v22 = vrot.slane %v831_v54, 1  ;;  %v1691_v19 = vrot.slane %v831_v54, 2  ;;  %v5111_v53 = vpop.f32.mrb[27].mxu1  ;;  %v5114_v34 = vsel %vm1109_vm2, %v1131_v10, %v1133_v17 }
 0x123   : > { %6680 = vst [vmem:[#allocation36_spill] sm:$0xff] %v5111_v53  ;;  %1179 = vrot.lane.b32.xlu0 %v5007_v21, %s4638_s25  ;;  %v1331_v3 = vrot.slane %v5109_v63, 2  ;;  %v1910_v48 = vrot.slane %v5111_v53, 1  ;;  %v5121_v14 = vsel %vm1305_vm3, %v1687_v6, %v1689_v57  ;;  %v5124_v47 = vsel %vm1109_vm2, %v1906_v12, %v1908_v4 }
 0x124   : > { %v5127_v54 = vsel %vm1109_vm2, %v1133_v17, %v1135_v25  ;;  %v5130_v39 = vsel %vm1305_vm3, %v1689_v57, %v1691_v19  ;;  %v5133_v10 = vsel %vm1305_vm3, %v1327_v52, %v1329_v50  ;;  %v5136_v21 = vsel %vm1109_vm2, %v1578_v2, %v1580_v22 }
 0x125   : > { %6681 = vst [vmem:[#allocation37_spill] sm:$0xff] %v5133_v10  ;;  %6682 = vst [vmem:[#allocation38_spill] sm:$0xff] %v5136_v21  ;;  %1433 = vrot.lane.b32.xlu1 %v5002_v16, %s4638_s25  ;;  %v5141_v6 = vsel %vm1109_vm2, %v1908_v4, %v1910_v48  ;;  %v5144_v12 = vsel %vm1109_vm2, %v1576_v13, %v1578_v2  ;;  %v5147_v17 = vsel %vm1305_vm3, %v1329_v50, %v1331_v3 }
 0x126   : > { %6683 = vst [vmem:[#allocation39_spill] sm:$0xff] %v5144_v12  ;;  %6684 = vst [vmem:[#allocation40_spill] sm:$0xff] %v5147_v17 }
 0x127   : > { %1954 = vrot.lane.b32.xlu0 %v5013_v28, %s4638_s25  ;;  %v5151_v52 = vpop.f32.mrb[28].mxu0  ;;  %v837_v57 = vpop.f32.mrb[28].mxu1 }
 0x128   : > { %6685 = vst [vmem:[#allocation41_spill] sm:$0xff] %v5151_v52  ;;  %v1137_v53 = vrot.slane %v5151_v52, 1  ;;  %v5154_v21 = vpop.f32.mrb[29].mxu0  ;;  %v1693_v16 = vrot.slane %v837_v57, 2  ;;  %v5156_v10 = vpop.f32.mrb[29].mxu1  ;;  %v1582_v50 = vrot.slane %v837_v57, 1 }
 0x129   : > { %6686 = vst [vmem:[#allocation42_spill] sm:$0xff] %v5156_v10  ;;  %1735 = vrot.lane.b32.xlu1 %v5016_v30, %s4638_s25  ;;  %v1333_v13 = vrot.slane %v5154_v21, 2  ;;  %v1912_v2 = vrot.slane %v5156_v10, 1  ;;  %v5162_v4 = vpop.f32.mrb[30].mxu0  ;;  %v841_v28 = vpop.f32.mrb[30].mxu1 }
 0x12a   : > { %6687 = vst [vmem:[#allocation43_spill] sm:$0xff] %v5162_v4  ;;  %v1139_v17 = vrot.slane %v5162_v4, 1  ;;  %v5165_v12 = vpop.f32.mrb[31].mxu0  ;;  %v1584_v52 = vrot.slane %v841_v28, 1  ;;  %v1695_v38 = vrot.slane %v841_v28, 2  ;;  %v5167_v9 = vpop.f32.mrb[31].mxu1  ;;  %v5170_v60 = vsel %vm1109_vm2, %v1135_v25, %v1137_v53 }
 0x12b   : > { %6688 = vst [vmem:[#allocation44_spill] sm:$0xff] %v5167_v9  ;;  %1737 = vrot.lane.b32.xlu0 %v5019_v32, %s4638_s25  ;;  %v1335_v30 = vrot.slane %v5165_v12, 2  ;;  %v1914_v57 = vrot.slane %v5167_v9, 1  ;;  %v5177_v10 = vsel %vm1305_vm3, %v1691_v19, %v1693_v16  ;;  %v5180_v4 = vsel %vm1109_vm2, %v1910_v48, %v1912_v2 }
 0x12c   : > { %v5183_v28 = vsel %vm1109_vm2, %v1137_v53, %v1139_v17  ;;  %v5186_v36 = vsel %vm1305_vm3, %v1693_v16, %v1695_v38  ;;  %v5189_v25 = vsel %vm1305_vm3, %v1331_v3, %v1333_v13  ;;  %v5192_v32 = vsel %vm1109_vm2, %v1582_v50, %v1584_v52 }
 0x12d   : > { %6689 = vst [vmem:[#allocation45_spill] sm:$0xff] %v5189_v25  ;;  %6690 = vst [vmem:[#allocation46_spill] sm:$0xff] %v5192_v32  ;;  %1181 = vrot.lane.b32.xlu1 %v5022_v33, %s4638_s25  ;;  %v5197_v19 = vsel %vm1109_vm2, %v1912_v2, %v1914_v57  ;;  %v5200_v48 = vsel %vm1109_vm2, %v1580_v22, %v1582_v50  ;;  %v5203_v53 = vsel %vm1305_vm3, %v1333_v13, %v1335_v30 }
 0x12e   : > { %6691 = vst [vmem:[#allocation47_spill] sm:$0xff] %v5200_v48  ;;  %6692 = vst [vmem:[#allocation48_spill] sm:$0xff] %v5203_v53 }
 0x12f   : > { %1435 = vrot.lane.b32.xlu0 %v5044_v44, %s4638_s25  ;;  %v5207_v3 = vpop.f32.mrb[32].mxu0  ;;  %v847_v16 = vpop.f32.mrb[32].mxu1 }
 0x130   : > { %6693 = vst [vmem:[#allocation49_spill] sm:$0xff] %v5207_v3  ;;  %v1141_v9 = vrot.slane %v5207_v3, 1  ;;  %v5210_v25 = vpop.f32.mrb[33].mxu0  ;;  %v1697_v33 = vrot.slane %v847_v16, 2  ;;  %v5212_v32 = vpop.f32.mrb[33].mxu1  ;;  %v1586_v13 = vrot.slane %v847_v16, 1 }
 0x131   : > { %6694 = vst [vmem:[#allocation50_spill] sm:$0xff] %v5212_v32  ;;  %1956 = vrot.lane.b32.xlu1 %v5032_v37, %s4638_s25  ;;  %v1337_v22 = vrot.slane %v5210_v25, 2  ;;  %v1916_v50 = vrot.slane %v5212_v32, 1  ;;  %v5218_v2 = vpop.f32.mrb[34].mxu0  ;;  %v851_v44 = vpop.f32.mrb[34].mxu1 }
 0x132   : > { %6695 = vst [vmem:[#allocation51_spill] sm:$0xff] %v5218_v2  ;;  %v1143_v53 = vrot.slane %v5218_v2, 1  ;;  %v5221_v48 = vpop.f32.mrb[35].mxu0  ;;  %v1588_v3 = vrot.slane %v851_v44, 1  ;;  %v1699_v46 = vrot.slane %v851_v44, 2  ;;  %v5223_v29 = vpop.f32.mrb[35].mxu1  ;;  %v5226_v55 = vsel %vm1109_vm2, %v1139_v17, %v1141_v9 }
 0x133   : > { %6696 = vst [vmem:[#allocation52_spill] sm:$0xff] %v5223_v29  ;;  %1437 = vrot.lane.b32.xlu0 %v5054_v11, %s4638_s25  ;;  %v1339_v37 = vrot.slane %v5221_v48, 2  ;;  %v1918_v16 = vrot.slane %v5223_v29, 1  ;;  %v5233_v32 = vsel %vm1305_vm3, %v1695_v38, %v1697_v33  ;;  %v5236_v2 = vsel %vm1109_vm2, %v1914_v57, %v1916_v50 }
 0x134   : > { %v5239_v44 = vsel %vm1109_vm2, %v1141_v9, %v1143_v53  ;;  %v5242_v8 = vsel %vm1305_vm3, %v1697_v33, %v1699_v46  ;;  %v5245_v17 = vsel %vm1305_vm3, %v1335_v30, %v1337_v22  ;;  %v5248_v11 = vsel %vm1109_vm2, %v1586_v13, %v1588_v3 }
 0x135   : > { %6697 = vst [vmem:[#allocation53_spill] sm:$0xff] %v5245_v17  ;;  %6698 = vst [vmem:[#allocation54_spill] sm:$0xff] %v5248_v11  ;;  %1183 = vrot.lane.b32.xlu1 %v5059_v45, %s4638_s25  ;;  %v5253_v38 = vsel %vm1109_vm2, %v1916_v50, %v1918_v16  ;;  %v5256_v57 = vsel %vm1109_vm2, %v1584_v52, %v1586_v13  ;;  %v5259_v9 = vsel %vm1305_vm3, %v1337_v22, %v1339_v37  ;;  %v6613_v33 = vmov 0.0|0.0  }
 0x136   : > { %6699 = vst [vmem:[#allocation55_spill] sm:$0xff] %v5256_v57  ;;  %6700 = vst [vmem:[#allocation56_spill] sm:$0xff] %v5259_v9  ;;  %4377 = vmatprep.subr.bf16.mxu1 %v6613_v33 }
 0x137   : > { %1739 = vrot.lane.b32.xlu0 %v5065_v42, %s4638_s25  ;;  %v5264_v30 = vpop.f32.mrb[36].mxu0  ;;  %v857_v29 = vpop.f32.mrb[36].mxu1 }
 0x138   : > { %6701 = vst [vmem:[#allocation57_spill] sm:$0xff] %v5264_v30  ;;  %v1145_v45 = vrot.slane %v5264_v30, 1  ;;  %v5267_v17 = vpop.f32.mrb[37].mxu0  ;;  %v1701_v50 = vrot.slane %v857_v29, 2  ;;  %v5269_v11 = vpop.f32.mrb[37].mxu1  ;;  %v1590_v13 = vrot.slane %v857_v29, 1 }
 0x139   : > { %6702 = vst [vmem:[#allocation58_spill] sm:$0xff] %v5269_v11  ;;  %1741 = vrot.lane.b32.xlu1 %v5071_v1, %s4638_s25  ;;  %v1341_v52 = vrot.slane %v5267_v17, 2  ;;  %v5274_v22 = vpop.f32.mrb[38].mxu0  ;;  %v1920_v42 = vrot.slane %v5269_v11, 1  ;;  %v861_v33 = vpop.f32.mrb[38].mxu1 }
 0x13a   : > { %6703 = vst [vmem:[#allocation59_spill] sm:$0xff] %v5274_v22  ;;  %v1147_v9 = vrot.slane %v5274_v22, 1  ;;  %v5278_v57 = vpop.f32.mrb[39].mxu0  ;;  %v1592_v30 = vrot.slane %v861_v33, 1  ;;  %v1703_v59 = vrot.slane %v861_v33, 2  ;;  %v5280_v35 = vpop.f32.mrb[39].mxu1  ;;  %v5283_v26 = vsel %vm1109_vm2, %v1143_v53, %v1145_v45 }
 0x13b   : > { %6704 = vst [vmem:[#allocation60_spill] sm:$0xff] %v5280_v35  ;;  %1958 = vrot.lane.b32.xlu0 %v5068_v7, %s4638_s25  ;;  %v1343_v1 = vrot.slane %v5278_v57, 2  ;;  %v1922_v29 = vrot.slane %v5280_v35, 1  ;;  %v5290_v11 = vsel %vm1305_vm3, %v1699_v46, %v1701_v50  ;;  %v5293_v22 = vsel %vm1109_vm2, %v1918_v16, %v1920_v42 }
 0x13c   : > { %6705 = vst [vmem:[#allocation61_spill] sm:$0xff] %v5293_v22  ;;  %v5296_v33 = vsel %vm1109_vm2, %v1145_v45, %v1147_v9  ;;  %v5299_v56 = vsel %vm1305_vm3, %v1701_v50, %v1703_v59  ;;  %v5302_v53 = vsel %vm1305_vm3, %v1339_v37, %v1341_v52  ;;  %v5305_v7 = vsel %vm1109_vm2, %v1590_v13, %v1592_v30 }
 0x13d   : > { %6706 = vst [vmem:[#allocation62_spill] sm:$0xff] %v5302_v53  ;;  %6707 = vst [vmem:[#allocation63_spill] sm:$0xff] %v5305_v7  ;;  %1960 = vrot.lane.b32.xlu1 %v5085_v18, %s4638_s25  ;;  %v5310_v46 = vsel %vm1109_vm2, %v1920_v42, %v1922_v29  ;;  %v5313_v16 = vsel %vm1109_vm2, %v1588_v3, %v1590_v13  ;;  %v5316_v45 = vsel %vm1305_vm3, %v1341_v52, %v1343_v1 }
 0x13e   : > { %6708 = vst [vmem:[#allocation64_spill] sm:$0xff] %v5313_v16  ;;  %6709 = vst [vmem:[#allocation65_spill] sm:$0xff] %v5316_v45 }
 0x13f   : > { %1185 = vrot.lane.b32.xlu0 %v5074_v51, %s4638_s25  ;;  %v5320_v37 = vpop.f32.mrb[40].mxu0  ;;  %v867_v50 = vpop.f32.mrb[40].mxu1 }
 0x140   : > { %6710 = vst [vmem:[#allocation66_spill] sm:$0xff] %v5320_v37  ;;  %v1149_v35 = vrot.slane %v5320_v37, 1  ;;  %v5323_v53 = vpop.f32.mrb[41].mxu0  ;;  %v1705_v18 = vrot.slane %v867_v50, 2  ;;  %v5325_v7 = vpop.f32.mrb[41].mxu1  ;;  %v1594_v13 = vrot.slane %v867_v50, 1 }
 0x141   : > { %6711 = vst [vmem:[#allocation67_spill] sm:$0xff] %v5323_v53  ;;  %6712 = vst [vmem:[#allocation68_spill] sm:$0xff] %v5325_v7  ;;  %1439 = vrot.lane.b32.xlu1 %v5098_v43, %s4638_s25  ;;  %v1345_v3 = vrot.slane %v5323_v53, 2  ;;  %v5330_v52 = vpop.f32.mrb[42].mxu0  ;;  %v1924_v51 = vrot.slane %v5325_v7, 1  ;;  %v871_v42 = vpop.f32.mrb[42].mxu1 }
 0x142   : > { %6713 = vst [vmem:[#allocation69_spill] sm:$0xff] %v5330_v52  ;;  %v1151_v45 = vrot.slane %v5330_v52, 1  ;;  %v5334_v16 = vpop.f32.mrb[43].mxu0  ;;  %v1596_v37 = vrot.slane %v871_v42, 1  ;;  %v1707_v22 = vrot.slane %v871_v42, 2  ;;  %v5336_v15 = vpop.f32.mrb[43].mxu1  ;;  %v5339_v0 = vsel %vm1109_vm2, %v1147_v9, %v1149_v35 }
 0x143   : > { %6714 = vst [vmem:[#allocation70_spill] sm:$0xff] %v5336_v15  ;;  %1187 = vrot.lane.b32.xlu0 %v5114_v34, %s4638_s25  ;;  %v1347_v43 = vrot.slane %v5334_v16, 2  ;;  %v1926_v50 = vrot.slane %v5336_v15, 1  ;;  %v5346_v7 = vsel %vm1305_vm3, %v1703_v59, %v1705_v18  ;;  %v5349_v52 = vsel %vm1109_vm2, %v1922_v29, %v1924_v51 }
 0x144   : > { %6715 = vst [vmem:[#allocation71_spill] sm:$0xff] %v5346_v7  ;;  %6716 = vst [vmem:[#allocation72_spill] sm:$0xff] %v5349_v52  ;;  %v5352_v42 = vsel %vm1109_vm2, %v1149_v35, %v1151_v45  ;;  %v5355_v53 = vsel %vm1305_vm3, %v1705_v18, %v1707_v22  ;;  %v5358_v9 = vsel %vm1305_vm3, %v1343_v1, %v1345_v3 }
 0x145   : > { %6717 = vst [vmem:[#allocation73_spill] sm:$0xff] %v5358_v9  ;;  %v5361_v34 = vsel %vm1109_vm2, %v1594_v13, %v1596_v37  ;;  %1189 = vrot.lane.b32.xlu1 %v5127_v54, %s4638_s25  ;;  %v5366_v59 = vsel %vm1109_vm2, %v1924_v51, %v1926_v50  ;;  %v5369_v29 = vsel %vm1109_vm2, %v1592_v30, %v1594_v13 }
 0x146   : > { %6718 = vst [vmem:[#allocation74_spill] sm:$0xff] %v5361_v34  ;;  %6719 = vst [vmem:[#allocation75_spill] sm:$0xff] %v5366_v59  ;;  %v5372_v35 = vsel %vm1305_vm3, %v1345_v3, %v1347_v43 }
 0x147   : > { %6720 = vst [vmem:[#allocation76_spill] sm:$0xff] %v5369_v29  ;;  %6721 = vst [vmem:[#allocation77_spill] sm:$0xff] %v5372_v35  ;;  %1441 = vrot.lane.b32.xlu0 %v5109_v63, %s4638_s25  ;;  %v5376_v1 = vpop.f32.mrb[44].mxu0  ;;  %v877_v18 = vpop.f32.mrb[44].mxu1 }
 0x148   : > { %6722 = vst [vmem:[#allocation78_spill] sm:$0xff] %v5376_v1  ;;  %v1153_v15 = vrot.slane %v5376_v1, 1  ;;  %v5379_v9 = vpop.f32.mrb[45].mxu0  ;;  %v1709_v54 = vrot.slane %v877_v18, 2  ;;  %v5381_v34 = vpop.f32.mrb[45].mxu1  ;;  %v1598_v13 = vrot.slane %v877_v18, 1 }
 0x149   : > { %6723 = vst [vmem:[#allocation79_spill] sm:$0xff] %v5379_v9  ;;  %6724 = vst [vmem:[#allocation80_spill] sm:$0xff] %v5381_v34  ;;  %1745 = vrot.lane.b32.xlu1 %v5130_v39, %s4638_s25  ;;  %v1349_v30 = vrot.slane %v5379_v9, 2  ;;  %v5386_v3 = vpop.f32.mrb[46].mxu0  ;;  %v1928_v63 = vrot.slane %v5381_v34, 1  ;;  %v881_v51 = vpop.f32.mrb[46].mxu1 }
 0x14a   : > { %6725 = vst [vmem:[#allocation81_spill] sm:$0xff] %v5386_v3  ;;  %v1155_v35 = vrot.slane %v5386_v3, 1  ;;  %v5390_v29 = vpop.f32.mrb[47].mxu0  ;;  %v1600_v1 = vrot.slane %v881_v51, 1  ;;  %v1711_v52 = vrot.slane %v881_v51, 2  ;;  %v5392_v59 = vpop.f32.mrb[47].mxu1  ;;  %v5395_v7 = vsel %vm1109_vm2, %v1151_v45, %v1153_v15 }
 0x14b   : > { %6726 = vst [vmem:[#allocation82_spill] sm:$0xff] %v5392_v59  ;;  %1743 = vrot.lane.b32.xlu0 %v5121_v14, %s4638_s25  ;;  %v1351_v39 = vrot.slane %v5390_v29, 2  ;;  %v1930_v18 = vrot.slane %v5392_v59, 1  ;;  %v5402_v34 = vsel %vm1305_vm3, %v1707_v22, %v1709_v54  ;;  %v5405_v3 = vsel %vm1109_vm2, %v1926_v50, %v1928_v63 }
 0x14c   : > { %6727 = vst [vmem:[#allocation83_spill] sm:$0xff] %v5402_v34  ;;  %6728 = vst [vmem:[#allocation84_spill] sm:$0xff] %v5405_v3  ;;  %v5408_v51 = vsel %vm1109_vm2, %v1153_v15, %v1155_v35  ;;  %v5411_v9 = vsel %vm1305_vm3, %v1709_v54, %v1711_v52  ;;  %v5414_v45 = vsel %vm1305_vm3, %v1347_v43, %v1349_v30 }
 0x14d   : > { %6729 = vst [vmem:[#allocation85_spill] sm:$0xff] %v5414_v45  ;;  %v5417_v14 = vsel %vm1109_vm2, %v1598_v13, %v1600_v1  ;;  %1964 = vrot.lane.b32.xlu1 %v5141_v6, %s4638_s25  ;;  %v5422_v22 = vsel %vm1109_vm2, %v1928_v63, %v1930_v18  ;;  %v5425_v50 = vsel %vm1109_vm2, %v1596_v37, %v1598_v13 }
 0x14e   : > { %6730 = vst [vmem:[#allocation86_spill] sm:$0xff] %v5417_v14  ;;  %6731 = vst [vmem:[#allocation87_spill] sm:$0xff] %v5422_v22  ;;  %v5428_v15 = vsel %vm1305_vm3, %v1349_v30, %v1351_v39 }
 0x14f   : > { %6732 = vst [vmem:[#allocation88_spill] sm:$0xff] %v5425_v50  ;;  %6733 = vst [vmem:[#allocation89_spill] sm:$0xff] %v5428_v15  ;;  %1962 = vrot.lane.b32.xlu0 %v5124_v47, %s4638_s25  ;;  %v5432_v43 = vpop.f32.mrb[48].mxu0  ;;  %v887_v54 = vpop.f32.mrb[48].mxu1 }
 0x150   : > { %6734 = vst [vmem:[#allocation90_spill] sm:$0xff] %v5432_v43  ;;  %v1157_v59 = vrot.slane %v5432_v43, 1  ;;  %v5435_v45 = vpop.f32.mrb[49].mxu0  ;;  %v1713_v6 = vrot.slane %v887_v54, 2  ;;  %v5437_v14 = vpop.f32.mrb[49].mxu1  ;;  %v1602_v13 = vrot.slane %v887_v54, 1 }
 0x151   : > { %6735 = vst [vmem:[#allocation91_spill] sm:$0xff] %v5435_v45  ;;  %6736 = vst [vmem:[#allocation92_spill] sm:$0xff] %v5437_v14  ;;  %1443 = vrot.lane.b32.xlu1 %v5154_v21, %s4638_s25  ;;  %v1353_v37 = vrot.slane %v5435_v45, 2  ;;  %v5442_v30 = vpop.f32.mrb[50].mxu0  ;;  %v1932_v47 = vrot.slane %v5437_v14, 1  ;;  %v891_v63 = vpop.f32.mrb[50].mxu1 }
 0x152   : > { %6737 = vst [vmem:[#allocation93_spill] sm:$0xff] %v5442_v30  ;;  %v1159_v15 = vrot.slane %v5442_v30, 1  ;;  %v5446_v50 = vpop.f32.mrb[51].mxu0  ;;  %v1604_v43 = vrot.slane %v891_v63, 1  ;;  %v1715_v3 = vrot.slane %v891_v63, 2  ;;  %v5448_v22 = vpop.f32.mrb[51].mxu1  ;;  %v5451_v34 = vsel %vm1109_vm2, %v1155_v35, %v1157_v59 }
 0x153   : > { %6738 = vst [vmem:[#allocation94_spill] sm:$0xff] %v5448_v22  ;;  %1191 = vrot.lane.b32.xlu0 %v5170_v60, %s4638_s25  ;;  %v1355_v21 = vrot.slane %v5446_v50, 2  ;;  %v1934_v54 = vrot.slane %v5448_v22, 1  ;;  %v5458_v14 = vsel %vm1305_vm3, %v1711_v52, %v1713_v6  ;;  %v5461_v30 = vsel %vm1109_vm2, %v1930_v18, %v1932_v47 }
 0x154   : > { %6739 = vst [vmem:[#allocation95_spill] sm:$0xff] %v5458_v14  ;;  %6740 = vst [vmem:[#allocation96_spill] sm:$0xff] %v5461_v30  ;;  %v5464_v63 = vsel %vm1109_vm2, %v1157_v59, %v1159_v15  ;;  %v5467_v45 = vsel %vm1305_vm3, %v1713_v6, %v1715_v3  ;;  %v5470_v35 = vsel %vm1305_vm3, %v1351_v39, %v1353_v37 }
 0x155   : > { %6741 = vst [vmem:[#allocation97_spill] sm:$0xff] %v5470_v35  ;;  %v5473_v60 = vsel %vm1109_vm2, %v1602_v13, %v1604_v43  ;;  %1193 = vrot.lane.b32.xlu1 %v5183_v28, %s4638_s25  ;;  %v5478_v52 = vsel %vm1109_vm2, %v1932_v47, %v1934_v54  ;;  %v5481_v18 = vsel %vm1109_vm2, %v1600_v1, %v1602_v13 }
 0x156   : > { %6742 = vst [vmem:[#allocation98_spill] sm:$0xff] %v5473_v60  ;;  %6743 = vst [vmem:[#allocation99_spill] sm:$0xff] %v5478_v52  ;;  %v5484_v59 = vsel %vm1305_vm3, %v1353_v37, %v1355_v21 }
 0x157   : > { %6744 = vst [vmem:[#allocation100_spill] sm:$0xff] %v5481_v18  ;;  %6745 = vst [vmem:[#allocation101_spill] sm:$0xff] %v5484_v59  ;;  %1445 = vrot.lane.b32.xlu0 %v5165_v12, %s4638_s25  ;;  %v5488_v39 = vpop.f32.mrb[52].mxu0  ;;  %v897_v6 = vpop.f32.mrb[52].mxu1 }
 0x158   : > { %6746 = vst [vmem:[#allocation102_spill] sm:$0xff] %v5488_v39  ;;  %v1161_v22 = vrot.slane %v5488_v39, 1  ;;  %v5491_v35 = vpop.f32.mrb[53].mxu0  ;;  %v1606_v28 = vrot.slane %v897_v6, 1  ;;  %v1717_v60 = vrot.slane %v897_v6, 2  ;;  %v5493_v47 = vpop.f32.mrb[53].mxu1 }
 0x159   : > { %6747 = vst [vmem:[#allocation103_spill] sm:$0xff] %v5491_v35  ;;  %6748 = vst [vmem:[#allocation104_spill] sm:$0xff] %v5493_v47  ;;  %1749 = vrot.lane.b32.xlu1 %v5186_v36, %s4638_s25  ;;  %v1357_v1 = vrot.slane %v5491_v35, 2  ;;  %v5498_v37 = vpop.f32.mrb[54].mxu0  ;;  %v1936_v12 = vrot.slane %v5493_v47, 1  ;;  %v901_v13 = vpop.f32.mrb[54].mxu1 }
 0x15a   : > { %v5502_v18 = vpop.f32.mrb[55].mxu0  ;;  %v1608_v39 = vrot.slane %v901_v13, 1  ;;  %v1719_v30 = vrot.slane %v901_v13, 2  ;;  %v5504_v52 = vpop.f32.mrb[55].mxu1  ;;  %v5507_v6 = vsel %vm1109_vm2, %v1159_v15, %v1161_v22  ;;  %v5514_v47 = vsel %vm1305_vm3, %v1715_v3, %v1717_v60 }
 0x15b   : > { %6749 = vst [vmem:[#allocation105_spill] sm:$0xff] %v5504_v52  ;;  %1747 = vrot.lane.b32.xlu0 %v5177_v10, %s4638_s25  ;;  %v1938_v35 = vrot.slane %v5504_v52, 1  ;;  %v5517_v59 = vsel %vm1109_vm2, %v1934_v54, %v1936_v12  ;;  %v6750_v14 = vrot.slane %v5498_v37, 1  ;;  %v5528_v10 = vsel %vm1305_vm3, %v1355_v21, %v1357_v1 }
 0x15c   : > { %v5520_v13 = vsel %vm1305_vm3, %v1717_v60, %v1719_v30  ;;  %6751 = vst [vmem:[#allocation106_spill] sm:$0xff] %v5528_v10  ;;  %v5531_v36 = vsel %vm1109_vm2, %v1604_v43, %v1606_v28  ;;  %v5539_v54 = vsel %vm1109_vm2, %v1606_v28, %v1608_v39  ;;  %v6754_v60 = vrot.slane %v5502_v18, 2 }
 0x15d   : > { %v5525_v15 = vsel %vm1109_vm2, %v1161_v22, %v6750_v14  ;;  %6752 = vst [vmem:[#allocation107_spill] sm:$0xff] %v5531_v36  ;;  %1968 = vrot.lane.b32.xlu1 %v5197_v19, %s4638_s25  ;;  %v5536_v3 = vsel %vm1109_vm2, %v1936_v12, %v1938_v35  ;;  %6753 = vst [vmem:[#allocation108_spill] sm:$0xff] %v5539_v54 }
 0x15e   : > { %v5544_v14 = vsel %vm1305_vm3, %v1357_v1, %v6754_v60 }
 0x15f   : > { %6755 = vst [vmem:[#allocation109_spill] sm:$0xff] %v5544_v14  ;;  %1966 = vrot.lane.b32.xlu0 %v5180_v4, %s4638_s25  ;;  %v726_v22 = vpop.f32.mrb[56].mxu0  ;;  %v907_v43 = vpop.f32.mrb[56].mxu1 }
 0x160   : > { %v5548_v21 = vpop.f32.mrb[57].mxu0  ;;  %v1610_v52 = vrot.slane %v907_v43, 1  ;;  %v1721_v19 = vrot.slane %v907_v43, 2  ;;  %v5550_v10 = vpop.f32.mrb[57].mxu1 }
 0x161   : > { %6756 = vst [vmem:[#allocation110_spill] sm:$0xff] %v5550_v10  ;;  %1447 = vrot.lane.b32.xlu1 %v5210_v25, %s4638_s25  ;;  %v729_v28 = vpop.f32.mrb[58].mxu0  ;;  %v1940_v12 = vrot.slane %v5550_v10, 1  ;;  %v5555_v54 = vpop.f32.mrb[58].mxu1 }
 0x162   : > { %v5557_v1 = vpop.f32.mrb[59].mxu0  ;;  %v6643_v60 = vrot.slane %v5555_v54, 2  ;;  %v5561_v22 = vpop.f32.mrb[59].mxu1  ;;  %v5564_v43 = vsel %vm1305_vm3, %v1719_v30, %v1721_v19  ;;  %v5567_v14 = vsel %vm1109_vm2, %v1608_v39, %v1610_v52  ;;  %v6759_v10 = vrot.slane %v5555_v54, 1 }
 0x163   : > { %6757 = vst [vmem:[#allocation111_spill] sm:$0xff] %v5561_v22  ;;  %6758 = vst [vmem:[#allocation112_spill] sm:$0xff] %v5567_v14  ;;  %1195 = vrot.lane.b32.xlu0 %v5226_v55, %s4638_s25  ;;  %v1942_v25 = vrot.slane %v5561_v22, 1  ;;  %v5573_v28 = vsel %vm1109_vm2, %v1938_v35, %v1940_v12 }
 0x164   : > { %v5578_v4 = vsel %vm1305_vm3, %v1721_v19, %v6643_v60  ;;  %v5583_v30 = vsel %vm1109_vm2, %v1610_v52, %v6759_v10 }
 0x165   : > { %6760 = vst [vmem:[#allocation113_spill] sm:$0xff] %v5583_v30  ;;  %1197 = vrot.lane.b32.xlu1 %v5239_v44, %s4638_s25  ;;  %v5588_v55 = vsel %vm1109_vm2, %v1940_v12, %v1942_v25 }
 0x167   : > { %v1166_v39 = vpop.permute.xlu0 %1165  ;;  %1449 = vrot.lane.b32.xlu0 %v5221_v48, %s4638_s25  ;;  %v734_v35 = vpop.f32.mrb[60].mxu0 }
 0x168   : > { %v1249_v22 = vadd.f32 %v1166_v39, %v4885_v27  ;;  %v735_v19 = vpop.f32.mrb[61].mxu0  ;;  %v917_v60 = vpop.f32.mrb[60].mxu1 }
 0x169   : > { %1753 = vrot.lane.b32.xlu1 %v5242_v8, %s4638_s25  ;;  %v736_v52 = vpop.f32.mrb[62].mxu0  ;;  %v5595_v10 = vpop.f32.mrb[61].mxu1 }
 0x16a   : > { %6761 = vst [vmem:[#allocation114_spill] sm:$0xff] %v5595_v10  ;;  %v1389_v44 = vadd.f32 %v4894_v40, %v1249_v22  ;;  %v737_v30 = vpop.f32.mrb[63].mxu0  ;;  %v1944_v12 = vrot.slane %v5595_v10, 1  ;;  %v920_v14 = vpop.f32.mrb[62].mxu1 }
 0x16b   : > { %v1420_v36 = vpop.permute.xlu1 %1419  ;;  %1751 = vrot.lane.b32.xlu0 %v5233_v32, %s4638_s25  ;;  %v5601_v48 = vpop.f32.mrb[63].mxu1 }
 0x16c   : > { %v1503_v27 = vadd.f32 %v1420_v36, %v1389_v44  ;;  %v6644_v60 = vrot.slane %v5601_v48, 1  ;;  %v5605_v8 = vsel %vm1109_vm2, %v1942_v25, %v1944_v12 }
 0x16d   : > { %v1168_v39 = vpop.permute.xlu0 %1167  ;;  %1972 = vrot.lane.b32.xlu1 %v5253_v38, %s4638_s25 }
 0x16e   : > { %v1250_v40 = vadd.f32 %v1168_v39, %v4887_v31  ;;  %v1642_v14 = vadd.f32 %v4911_v61, %v1503_v27  ;;  %v5614_v32 = vsel %vm1109_vm2, %v1944_v12, %v6644_v60 }
 0x16f   : > { %v1170_v22 = vpop.permute.xlu1 %1169  ;;  %1970 = vrot.lane.b32.xlu0 %v5236_v2, %s4638_s25  ;;  %v4288_v36 = vpop.f32.mrb[64].mxu0 }
 0x170   : > { %v1251_v25 = vadd.f32 %v1170_v22, %v4896_v41  ;;  %v1390_v30 = vadd.f32 %v4906_v58, %v1250_v40  ;;  %v958_v35 = vpop.f32.mrb[65].mxu0 }
 0x171   : > { %v1422_v38 = vpop.permute.xlu0 %1421  ;;  %1451 = vrot.lane.b32.xlu1 %v5267_v17, %s4638_s25  ;;  %v4289_v31 = vpop.f32.mrb[66].mxu0 }
 0x172   : > { %v1504_v61 = vadd.f32 %v1422_v38, %v1390_v30  ;;  %v1391_v19 = vadd.f32 %v4915_v62, %v1251_v25  ;;  %v960_v52 = vpop.f32.mrb[67].mxu0  ;;  %v6762_v31 = vld [vmem:[#allocation5_spill] sm:$0xff] }
 0x173   : > { %v1424_v44 = vpop.permute.xlu1 %1423  ;;  %1199 = vrot.lane.b32.xlu0 %v5283_v26, %s4638_s25 }
 0x174   : > { %v1505_v2 = vadd.f32 %v1424_v44, %v1391_v19  ;;  %v1643_v12 = vadd.f32 %v4940_v23, %v1504_v61  ;;  %v6763_v19 = vld [vmem:[#allocation7_spill] sm:$0xff]  ;;  %v6764_v44 = vld [vmem:[#allocation14_spill] sm:$0xff] }
 0x175   : > { %v1726_v41 = vpop.permute.xlu0 %1725  ;;  %1201 = vrot.lane.b32.xlu1 %v5296_v33, %s4638_s25 }
 0x176   : > { %v1809_v58 = vadd.f32 %v1726_v41, %v1642_v14  ;;  %v1644_v27 = vadd.f32 %v4943_v24, %v1505_v2 }
 0x177   : > { %v1172_v17 = vpop.permute.xlu1 %1171  ;;  %1453 = vrot.lane.b32.xlu0 %v5278_v57, %s4638_s25  ;;  %v4292_v62 = vpop.f32.mrb[68].mxu0 }
 0x178   : > { %v1252_v39 = vadd.f32 %v1172_v17, %v4900_v49  ;;  %v970_v40 = vpop.f32.mrb[69].mxu0  ;;  %v1837_v26 = vadd.f32 %v1809_v58, %v4921_v5  ;;  %v2091_v23 = vrot.slane %v4292_v62, 2  ;;  %v6766_v17 = vld [vmem:[#allocation8_spill] sm:$0xff] }
 0x179   : > { %v1426_v22 = vpop.permute.xlu0 %1425  ;;  %1757 = vrot.lane.b32.xlu1 %v5299_v56, %s4638_s25  ;;  %v2088_v36 = vrot.slane %v970_v40, 2  ;;  %v4293_v33 = vpop.f32.mrb[70].mxu0  ;;  %v6767_v40 = vld [vmem:[#allocation67_spill] sm:$0xff] }
 0x17a   : > { %v1392_v14 = vadd.f32 %v4935_v20, %v1252_v39  ;;  %v2093_v24 = vrot.slane %v4293_v33, 2  ;;  %v973_v25 = vpop.f32.mrb[71].mxu0 }
 0x17b   : > { %v1728_v30 = vpop.permute.xlu1 %1727  ;;  %1755 = vrot.lane.b32.xlu0 %v5290_v11, %s4638_s25  ;;  %v2089_v57 = vrot.slane %v973_v25, 2 }
 0x17c   : > { %v1506_v49 = vadd.f32 %v1426_v22, %v1392_v14  ;;  %v1810_v35 = vadd.f32 %v1728_v30, %v1643_v12  ;;  %v5639_v5 = vsel %vm1305_vm3, %v2091_v23, %v2093_v24  ;;  %v6765_v12 = vld [vmem:[#allocation61_spill] sm:$0xff] }
 0x17d   : > { %v1174_v38 = vpop.permute.xlu0 %1173  ;;  %1976 = vrot.lane.b32.xlu1 %v5310_v46, %s4638_s25  ;;  %v2090_v56 = vsel %vm1305_vm3, %v2088_v36, %v2089_v57  ;;  %v2092_v20 = vsel %vm1305_vm3, %v2089_v57, %v2091_v23 }
 0x17e   : > { %v1253_v61 = vadd.f32 %v1174_v38, %v6762_v31  ;;  %v1838_v52 = vadd.f32 %v1810_v35, %v6763_v19  ;;  %v1645_v11 = vadd.f32 %v6764_v44, %v1506_v49  ;;  %v6768_v38 = vld [vmem:[#allocation10_spill] sm:$0xff] }
 0x17f   : > { %v1949_v2 = vpop.permute.xlu1 %1948  ;;  %1974 = vrot.lane.b32.xlu0 %v6765_v12, %s4638_s25  ;;  %v4296_v41 = vpop.f32.mrb[72].mxu0 }
 0x180   : > { %v2032_v58 = vadd.f32 %v1949_v2, %v1837_v26  ;;  %v1393_v62 = vadd.f32 %v6766_v17, %v1253_v61  ;;  %v986_v39 = vpop.f32.mrb[73].mxu0  ;;  %v2099_v22 = vrot.slane %v4296_v41, 2  ;;  %v6770_v41 = vld [vmem:[#allocation6_spill] sm:$0xff] }
 0x181   : > { %v1730_v46 = vpop.permute.xlu0 %1729  ;;  %1455 = vrot.lane.b32.xlu1 %v6767_v40, %s4638_s25  ;;  %v2095_v23 = vrot.slane %v986_v39, 2  ;;  %v4297_v36 = vpop.f32.mrb[74].mxu0 }
 0x182   : > { %v2171_v33 = vadd.f32 %v2090_v56, %v2032_v58  ;;  %v1811_v14 = vadd.f32 %v1730_v46, %v1644_v27  ;;  %v2101_v25 = vrot.slane %v4297_v36, 2  ;;  %v989_v30 = vpop.f32.mrb[75].mxu0 }
 0x183   : > { %v1428_v57 = vpop.permute.xlu1 %1427  ;;  %1203 = vrot.lane.b32.xlu0 %v5339_v0, %s4638_s25  ;;  %v5656_v26 = vsel %vm1305_vm3, %v2093_v24, %v2095_v23  ;;  %v2097_v49 = vrot.slane %v989_v30, 2  ;;  %v5673_v0 = vld [vmem:[%s6581_s5] ss:$0 sm:$0xff]  ;;  %v6769_v24 = vld [vmem:[#allocation15_spill] sm:$0xff] }
 0x184   : > { %v1507_v35 = vadd.f32 %v1428_v57, %v1393_v62  ;;  %v1839_v31 = vadd.f32 %v1811_v14, %v6768_v38  ;;  %v5660_v61 = vsel %vm1305_vm3, %v2099_v22, %v2101_v25  ;;  %v2204_v62 = vadd.f32 %v5673_v0, %v2171_v33 }
 0x185   : > { %v1430_v19 = vpop.permute.xlu0 %1429  ;;  %1205 = vrot.lane.b32.xlu1 %v5352_v42, %s4638_s25  ;;  %v5665_v27 = vsel %vm1305_vm3, %v2095_v23, %v2097_v49  ;;  %v5668_v56 = vsel %vm1305_vm3, %v2097_v49, %v2099_v22  ;;  %v6771_v22 = vld [vmem:[#allocation13_spill] sm:$0xff] }
 0x186   : > { %v1646_v44 = vadd.f32 %v6769_v24, %v1507_v35 }
 0x187   : > { %v1176_v2 = vpop.permute.xlu1 %1175  ;;  %1457 = vrot.lane.b32.xlu0 %v5334_v16, %s4638_s25  ;;  %v4300_v12 = vpop.f32.mrb[76].mxu0  ;;  %v6772_v16 = vld [vmem:[#allocation71_spill] sm:$0xff] }
 0x188   : > { %v1254_v42 = vadd.f32 %v1176_v2, %v6770_v41  ;;  %v2107_v58 = vrot.slane %v4300_v12, 2  ;;  %v1002_v17 = vpop.f32.mrb[77].mxu0  ;;  %v2232_v2 = vmax.f32 %v2204_v62, 0.0  ;;  %v6777_v62 = vld [vmem:[#allocation72_spill] sm:$0xff] }
 0x189   : > { %v1951_v39 = vpop.permute.xlu0 %1950  ;;  %1761 = vrot.lane.b32.xlu1 %v5355_v53, %s4638_s25  ;;  %v2103_v46 = vrot.slane %v1002_v17, 2  ;;  %v4301_v40 = vpop.f32.mrb[78].mxu0  ;;  %v6774_v17 = vld [vmem:[#allocation9_spill] sm:$0xff] }
 0x18a   : > { %v1394_v23 = vadd.f32 %v6771_v22, %v1254_v42  ;;  %v2033_v36 = vadd.f32 %v1951_v39, %v1838_v52  ;;  %v2109_v14 = vrot.slane %v4301_v40, 2  ;;  %v1005_v30 = vpop.f32.mrb[79].mxu0  ;;  %v6773_v52 = vld [vmem:[#allocation75_spill] sm:$0xff]  ;;  %v6776_v39 = vld [vmem:[#allocation22_spill] sm:$0xff] }
 0x18b   : > { %v1732_v57 = vpop.permute.xlu1 %1731  ;;  %1759 = vrot.lane.b32.xlu0 %v6772_v16, %s4638_s25  ;;  %v2105_v49 = vrot.slane %v1005_v30, 2  ;;  %v5686_v35 = vsel %vm1305_vm3, %v2101_v25, %v2103_v46 }
 0x18c   : > { %v2172_v33 = vadd.f32 %v2092_v20, %v2033_v36  ;;  %v1812_v38 = vadd.f32 %v1732_v57, %v1645_v11  ;;  %v1508_v24 = vadd.f32 %v1430_v19, %v1394_v23  ;;  %v5689_v53 = vsel %vm1305_vm3, %v2107_v58, %v2109_v14  ;;  %v6775_v11 = vld [vmem:[#allocation12_spill] sm:$0xff] }
 0x18d   : > { %v1178_v12 = vpop.permute.xlu0 %1177  ;;  %1980 = vrot.lane.b32.xlu1 %v6773_v52, %s4638_s25  ;;  %v5694_v41 = vsel %vm1305_vm3, %v2103_v46, %v2105_v49  ;;  %v5697_v42 = vsel %vm1305_vm3, %v2105_v49, %v2107_v58  ;;  %v6778_v46 = vld [vmem:[#allocation16_spill] sm:$0xff]  ;;  %v2286_v58 = vrot.slane %v2232_v2, 1 }
 0x18e   : > { %v2205_v25 = vadd.f32 %v5673_v0, %v2172_v33  ;;  %v1255_v20 = vadd.f32 %v1178_v12, %v6774_v17  ;;  %v1840_v19 = vadd.f32 %v1812_v38, %v6775_v11  ;;  %v1647_v40 = vadd.f32 %v6776_v39, %v1508_v24  ;;  %v6779_v33 = vld [vmem:[#allocation79_spill] sm:$0xff] }
 0x18f   : > { %v1953_v22 = vpop.permute.xlu1 %1952  ;;  %1978 = vrot.lane.b32.xlu0 %v6777_v62, %s4638_s25  ;;  %v4304_v23 = vpop.f32.mrb[80].mxu0 }
 0x190   : > { %v2233_v36 = vmax.f32 %v2205_v25, 0.0  ;;  %v2034_v30 = vadd.f32 %v1953_v22, %v1839_v31  ;;  %v1395_v57 = vadd.f32 %v6778_v46, %v1255_v20  ;;  %v1018_v16 = vpop.f32.mrb[81].mxu0  ;;  %v2115_v12 = vrot.slane %v4304_v23, 2  ;;  %v6780_v23 = vld [vmem:[#allocation18_spill] sm:$0xff] }
 0x191   : > { %v1734_v49 = vpop.permute.xlu0 %1733  ;;  %1459 = vrot.lane.b32.xlu1 %v6779_v33, %s4638_s25  ;;  %v2111_v52 = vrot.slane %v1018_v16, 2  ;;  %v4305_v38 = vpop.f32.mrb[82].mxu0 }
 0x192   : > { %v2287_v17 = vrot.slane %v2233_v36, 1  ;;  %v2173_v24 = vadd.f32 %v5639_v5, %v2034_v30  ;;  %v1813_v11 = vadd.f32 %v1734_v49, %v1646_v44  ;;  %v2117_v39 = vrot.slane %v4305_v38, 2  ;;  %v1021_v62 = vpop.f32.mrb[83].mxu0 }
 0x193   : > { %v1432_v60 = vpop.permute.xlu1 %1431  ;;  %1207 = vrot.lane.b32.xlu0 %v5395_v7, %s4638_s25  ;;  %v2113_v31 = vrot.slane %v1021_v62, 2  ;;  %v5712_v25 = vsel %vm1305_vm3, %v2109_v14, %v2111_v52 }
 0x194   : > { %v5715_v20 = vadd.f32 %v5673_v0, %v2173_v24  ;;  %v1509_v22 = vadd.f32 %v1432_v60, %v1395_v57  ;;  %v1841_v46 = vadd.f32 %v1813_v11, %v6780_v23  ;;  %v2288_v16 = vsel %vm1109_vm2, %v2286_v58, %v2287_v17  ;;  %v6781_v57 = vld [vmem:[#allocation11_spill] sm:$0xff] }
 0x195   : > { %v1180_v5 = vpop.permute.xlu0 %1179  ;;  %1209 = vrot.lane.b32.xlu1 %v5408_v51, %s4638_s25  ;;  %v5721_v44 = vmax.f32 %v2232_v2, %v2288_v16  ;;  %v5724_v7 = vsel %vm1305_vm3, %v2111_v52, %v2113_v31  ;;  %v5727_v14 = vsel %vm1305_vm3, %v2115_v12, %v2117_v39  ;;  %v5730_v30 = vsel %vm1305_vm3, %v2113_v31, %v2115_v12  ;;  %v6782_v58 = vld [vmem:[#allocation23_spill] sm:$0xff]  ;;  %v6783_v52 = vld [vmem:[#allocation21_spill] sm:$0xff] }
 0x196   : > { %v2234_v60 = vmax.f32 %v5715_v20, 0.0  ;;  %v1256_v49 = vadd.f32 %v1180_v5, %v6781_v57  ;;  %v1648_v33 = vadd.f32 %v6782_v58, %v1509_v22 }
 0x197   : > { %v1434_v38 = vpop.permute.xlu1 %1433  ;;  %1461 = vrot.lane.b32.xlu0 %v5390_v29, %s4638_s25  ;;  %v4308_v51 = vpop.f32.mrb[84].mxu0  ;;  %v6784_v29 = vld [vmem:[#allocation83_spill] sm:$0xff] }
 0x198   : > { %v2289_v2 = vrot.slane %v2234_v60, 1  ;;  %v1396_v24 = vadd.f32 %v6783_v52, %v1256_v49  ;;  %v2123_v11 = vrot.slane %v4308_v51, 2  ;;  %v1034_v62 = vpop.f32.mrb[85].mxu0 }
 0x199   : > { %v1955_v23 = vpop.permute.xlu0 %1954  ;;  %1765 = vrot.lane.b32.xlu1 %v5411_v9, %s4638_s25  ;;  %v2119_v12 = vrot.slane %v1034_v62, 2  ;;  %v4309_v31 = vpop.f32.mrb[86].mxu0  ;;  %v6785_v62 = vld [vmem:[#allocation30_spill] sm:$0xff] }
 0x19a   : > { %v1510_v20 = vadd.f32 %v1434_v38, %v1396_v24  ;;  %v2035_v16 = vadd.f32 %v1955_v23, %v1840_v19  ;;  %v2290_v22 = vsel %vm1109_vm2, %v2287_v17, %v2289_v2  ;;  %v2125_v5 = vrot.slane %v4309_v31, 2  ;;  %v1037_v57 = vpop.f32.mrb[87].mxu0  ;;  %v6787_v24 = vld [vmem:[#allocation87_spill] sm:$0xff] }
 0x19b   : > { %v1736_v58 = vpop.permute.xlu1 %1735  ;;  %1763 = vrot.lane.b32.xlu0 %v6784_v29, %s4638_s25  ;;  %v5743_v10 = vmax.f32 %v2233_v36, %v2290_v22  ;;  %v2121_v49 = vrot.slane %v1037_v57, 2  ;;  %v5746_v51 = vsel %vm1305_vm3, %v2117_v39, %v2119_v12 }
 0x19c   : > { %v2174_v9 = vadd.f32 %v5656_v26, %v2035_v16  ;;  %v1814_v52 = vadd.f32 %v1736_v58, %v1647_v40  ;;  %v1649_v38 = vadd.f32 %v6785_v62, %v1510_v20  ;;  %v5751_v19 = vsel %vm1305_vm3, %v2123_v11, %v2125_v5  ;;  %v6788_v26 = vld [vmem:[#allocation20_spill] sm:$0xff]  ;;  %v6790_v58 = vld [vmem:[#allocation17_spill] sm:$0xff]  ;;  %v6791_v62 = vld [vmem:[#allocation26_spill] sm:$0xff] }
 0x19d   : > { %6786 = vst [vmem:[#allocation5_spill] sm:$0xff] %v5751_v19  ;;  %v1738_v17 = vpop.permute.xlu0 %1737  ;;  %1984 = vrot.lane.b32.xlu1 %v6787_v24, %s4638_s25  ;;  %v5756_v23 = vsel %vm1305_vm3, %v2119_v12, %v2121_v49  ;;  %v5759_v36 = vsel %vm1305_vm3, %v2121_v49, %v2123_v11  ;;  %v6789_v20 = vld [vmem:[#allocation84_spill] sm:$0xff]  ;;  %v6792_v11 = vld [vmem:[#allocation91_spill] sm:$0xff] }
 0x19e   : > { %v2207_v39 = vadd.f32 %v5673_v0, %v2174_v9  ;;  %v1815_v31 = vadd.f32 %v1738_v17, %v1648_v33  ;;  %v1842_v40 = vadd.f32 %v1814_v52, %v6788_v26  ;;  %v6793_v52 = vld [vmem:[#allocation24_spill] sm:$0xff] }
 0x19f   : > { %v1182_v16 = vpop.permute.xlu1 %1181  ;;  %1982 = vrot.lane.b32.xlu0 %v6789_v20, %s4638_s25  ;;  %v5765_v22 = vpop.f32.mrb[88].mxu0 }
 0x1a0   : > { %v2235_v57 = vmax.f32 %v2207_v39, 0.0  ;;  %v1257_v29 = vadd.f32 %v1182_v16, %v6790_v58  ;;  %v1843_v12 = vadd.f32 %v1815_v31, %v6791_v62  ;;  %v1050_v24 = vpop.f32.mrb[89].mxu0 }
 0x1a1   : > { %v1436_v19 = vpop.permute.xlu0 %1435  ;;  %1463 = vrot.lane.b32.xlu1 %v6792_v11, %s4638_s25  ;;  %v2127_v49 = vrot.slane %v1050_v24, 2  ;;  %v5771_v33 = vpop.f32.mrb[90].mxu0 }
 0x1a2   : > { %v2291_v9 = vrot.slane %v2235_v57, 1  ;;  %v1397_v17 = vadd.f32 %v6793_v52, %v1257_v29  ;;  %v1053_v26 = vpop.f32.mrb[91].mxu0 }
 0x1a3   : > { %v1957_v20 = vpop.permute.xlu1 %1956  ;;  %1211 = vrot.lane.b32.xlu0 %v5451_v34, %s4638_s25  ;;  %v2129_v39 = vrot.slane %v1053_v26, 2  ;;  %v5785_v29 = vsel %vm1305_vm3, %v2125_v5, %v2127_v49  ;;  %v6795_v34 = vld [vmem:[#allocation31_spill] sm:$0xff]  ;;  %v6797_v5 = vld [vmem:[#allocation29_spill] sm:$0xff] }
 0x1a4   : > { %v1511_v16 = vadd.f32 %v1436_v19, %v1397_v17  ;;  %v2036_v58 = vadd.f32 %v1957_v20, %v1841_v46  ;;  %v2292_v31 = vsel %vm1109_vm2, %v2289_v2, %v2291_v9  ;;  %6794 = vst [vmem:[#allocation7_spill] sm:$0xff] %v5785_v29 }
 0x1a5   : > { %v1438_v62 = vpop.permute.xlu0 %1437  ;;  %1213 = vrot.lane.b32.xlu1 %v5464_v63, %s4638_s25  ;;  %v5779_v24 = vmax.f32 %v2234_v60, %v2292_v31  ;;  %v5782_v11 = vsel %vm1305_vm3, %v2127_v49, %v2129_v39  ;;  %v6796_v60 = vld [vmem:[#allocation19_spill] sm:$0xff] }
 0x1a6   : > { %v2175_v52 = vadd.f32 %v5665_v27, %v2036_v58  ;;  %v1650_v26 = vadd.f32 %v6795_v34, %v1511_v16  ;;  %v6799_v34 = vld [vmem:[#allocation28_spill] sm:$0xff] }
 0x1a7   : > { %v1184_v19 = vpop.permute.xlu1 %1183  ;;  %1465 = vrot.lane.b32.xlu0 %v5446_v50, %s4638_s25  ;;  %v2401_v46 = vmax.f32 %v5721_v44, %v5779_v24  ;;  %v6798_v50 = vld [vmem:[#allocation95_spill] sm:$0xff]  ;;  %v2131_v44 = vrot.slane %v5765_v22, 2  ;;  %v6803_v22 = vld [vmem:[#allocation96_spill] sm:$0xff] }
 0x1a8   : > { %v5794_v63 = vadd.f32 %v5673_v0, %v2175_v52  ;;  %v1258_v2 = vadd.f32 %v1184_v19, %v6796_v60 }
 0x1a9   : > { %v1740_v17 = vpop.permute.xlu0 %1739  ;;  %1769 = vrot.lane.b32.xlu1 %v5467_v45, %s4638_s25  ;;  %v6800_v45 = vld [vmem:[#allocation99_spill] sm:$0xff] }
 0x1aa   : > { %v2236_v27 = vmax.f32 %v5794_v63, 0.0  ;;  %v1398_v49 = vadd.f32 %v6797_v5, %v1258_v2  ;;  %v1816_v20 = vadd.f32 %v1740_v17, %v1649_v38  ;;  %v6801_v38 = vld [vmem:[#allocation39_spill] sm:$0xff]  ;;  %v6802_v5 = vld [vmem:[#allocation34_spill] sm:$0xff] }
 0x1ab   : > { %v1742_v16 = vpop.permute.xlu1 %1741  ;;  %1767 = vrot.lane.b32.xlu0 %v6798_v50, %s4638_s25 }
 0x1ac   : > { %v2293_v58 = vrot.slane %v2236_v27, 1  ;;  %v1817_v31 = vadd.f32 %v1742_v16, %v1650_v26  ;;  %v1512_v52 = vadd.f32 %v1438_v62, %v1398_v49  ;;  %v5805_v19 = vadd.f32 %v1816_v20, %v6799_v34  ;;  %v5816_v26 = vpop.f32.mrb[92].mxu0 }
 0x1ad   : > { %v1959_v60 = vpop.permute.xlu0 %1958  ;;  %1988 = vrot.lane.b32.xlu1 %v6800_v45, %s4638_s25  ;;  %v5819_v16 = vpop.f32.mrb[93].mxu0  ;;  %v2133_v34 = vrot.slane %v5771_v33, 2  ;;  %v6805_v45 = vld [vmem:[#allocation25_spill] sm:$0xff] }
 0x1ae   : > { %v2037_v63 = vadd.f32 %v1959_v60, %v1842_v40  ;;  %v2294_v2 = vsel %vm1109_vm2, %v2291_v9, %v2293_v58  ;;  %v1651_v17 = vadd.f32 %v6801_v38, %v1512_v52  ;;  %v5812_v29 = vadd.f32 %v1817_v31, %v6802_v5  ;;  %v6804_v52 = vld [vmem:[#allocation103_spill] sm:$0xff]  ;;  %v6806_v38 = vld [vmem:[#allocation32_spill] sm:$0xff] }
 0x1af   : > { %v1961_v50 = vpop.permute.xlu1 %1960  ;;  %1986 = vrot.lane.b32.xlu0 %v6803_v22, %s4638_s25  ;;  %v2366_v62 = vmax.f32 %v2235_v57, %v2294_v2  ;;  %v5822_v40 = vsel %vm1305_vm3, %v2129_v39, %v2131_v44 }
 0x1b0   : > { %v2176_v49 = vadd.f32 %v5668_v56, %v2037_v63  ;;  %v2038_v20 = vadd.f32 %v1961_v50, %v1843_v12 }
 0x1b1   : > { %v1186_v9 = vpop.permute.xlu0 %1185  ;;  %1467 = vrot.lane.b32.xlu1 %v6804_v52, %s4638_s25  ;;  %v2402_v31 = vmax.f32 %v5743_v10, %v2366_v62  ;;  %v2135_v52 = vrot.slane %v5819_v16, 2 }
 0x1b2   : > { %v2209_v57 = vadd.f32 %v5673_v0, %v2176_v49  ;;  %v2177_v60 = vadd.f32 %v5660_v61, %v2038_v20  ;;  %v1259_v56 = vadd.f32 %v1186_v9, %v6805_v45  ;;  %v5840_v61 = vsel %vm1305_vm3, %v2131_v44, %v2133_v34  ;;  %v6810_v44 = vld [vmem:[#allocation33_spill] sm:$0xff] }
 0x1b3   : > { %v1440_v12 = vpop.permute.xlu1 %1439  ;;  %1215 = vrot.lane.b32.xlu0 %v5507_v6, %s4638_s25  ;;  %v4378_v39 = vpack.c.bf16 %v2402_v31, %v2401_v46  ;;  %v6807_v6 = vld [vmem:[#allocation27_spill] sm:$0xff]  ;;  %v6808_v49 = vmov 0.0|0.0   ;;  %v6809_v9 = vrot.slane %v5498_v37, 1 }
 0x1b4   : > { %v2237_v63 = vmax.f32 %v2209_v57, 0.0  ;;  %v5834_v2 = vadd.f32 %v5673_v0, %v2177_v60  ;;  %v1399_v5 = vadd.f32 %v6806_v38, %v1259_v56  ;;  %v6811_v60 = vld [vmem:[#allocation37_spill] sm:$0xff]  ;;  %v6812_v56 = vld [vmem:[#allocation38_spill] sm:$0xff] }
 0x1b5   : > { %v1188_v10 = vpop.permute.xlu0 %1187  ;;  %1469 = vrot.lane.b32.xlu1 %v5502_v18, %s4638_s25  ;;  %4379 = vmatpush1.bf16.msra.mxu1 %v4378_v39 }
 0x1b6   : > { %v2295_v33 = vrot.slane %v2237_v63, 1  ;;  %v6646_v50 = vmax.f32 %v5834_v2, 0.0  ;;  %v1513_v22 = vadd.f32 %v1440_v12, %v1399_v5  ;;  %v1260_v46 = vadd.f32 %v1188_v10, %v6807_v6  ;;  %4380 = vmatprep.subr.bf16.mxu1 %v6808_v49  ;;  %v6813_v6 = vld [vmem:[#allocation40_spill] sm:$0xff] }
 0x1b7   : > { %v1190_v20 = vpop.permute.xlu1 %1189  ;;  %1219 = vrot.lane.b32.xlu0 %v6809_v9, %s4638_s25 }
 0x1b8   : > { %v5851_v31 = vrot.slane %v6646_v50, 1  ;;  %v1261_v57 = vadd.f32 %v1190_v20, %v6810_v44  ;;  %v1400_v45 = vadd.f32 %v6811_v60, %v1260_v46  ;;  %v1652_v12 = vadd.f32 %v6812_v56, %v1513_v22  ;;  %v6814_v20 = vld [vmem:[#allocation47_spill] sm:$0xff]  ;;  %v6815_v60 = vld [vmem:[#allocation42_spill] sm:$0xff] }
 0x1b9   : > { %v1442_v39 = vpop.permute.xlu0 %1441  ;;  %1771 = vrot.lane.b32.xlu1 %v5514_v47, %s4638_s25  ;;  %v2296_v38 = vsel %vm1109_vm2, %v2293_v58, %v2295_v33  ;;  %v5869_v22 = vsel %vm1305_vm3, %v2133_v34, %v2135_v52  ;;  %v2139_v34 = vrot.slane %v5816_v26, 2 }
 0x1ba   : > { %v1514_v5 = vadd.f32 %v1442_v39, %v1400_v45  ;;  %v2298_v16 = vsel %vm1109_vm2, %v2295_v33, %v5851_v31  ;;  %v5861_v10 = vmax.f32 %v2236_v27, %v2296_v38  ;;  %v1401_v9 = vadd.f32 %v6813_v6, %v1261_v57  ;;  %v5874_v33 = vpop.f32.mrb[94].mxu0  ;;  %v6816_v38 = vld [vmem:[#allocation36_spill] sm:$0xff] }
 0x1bb   : > { %v1746_v50 = vpop.permute.xlu1 %1745  ;;  %1773 = vrot.lane.b32.xlu0 %v5520_v13, %s4638_s25  ;;  %v5866_v46 = vmax.f32 %v2237_v63, %v2298_v16  ;;  %v1069_v13 = vpop.f32.mrb[95].mxu0 }
 0x1bc   : > { %v1819_v47 = vadd.f32 %v1746_v50, %v1652_v12  ;;  %v2403_v58 = vmax.f32 %v5779_v24, %v5861_v10  ;;  %v1653_v44 = vadd.f32 %v6814_v20, %v1514_v5  ;;  %v2137_v50 = vrot.slane %v1069_v13, 2  ;;  %v6818_v20 = vld [vmem:[#allocation46_spill] sm:$0xff] }
 0x1bd   : > { %v1744_v27 = vpop.permute.xlu0 %1743  ;;  %1990 = vrot.lane.b32.xlu1 %v5517_v59, %s4638_s25  ;;  %v2404_v57 = vmax.f32 %v2366_v62, %v5866_v46  ;;  %v2141_v12 = vrot.slane %v5874_v33, 2 }
 0x1be   : > { %v1818_v63 = vadd.f32 %v1744_v27, %v1651_v17  ;;  %v1847_v45 = vadd.f32 %v1819_v47, %v6815_v60  ;;  %v5895_v26 = vsel %vm1305_vm3, %v2137_v50, %v2139_v34 }
 0x1bf   : > { %v1965_v56 = vpop.permute.xlu1 %1964  ;;  %1992 = vrot.lane.b32.xlu0 %v5536_v3, %s4638_s25  ;;  %v4381_v24 = vpack.c.bf16 %v2404_v57, %v2403_v58  ;;  %v5892_v3 = vsel %vm1305_vm3, %v2135_v52, %v2137_v50 }
 0x1c0   : > { %v2040_v39 = vadd.f32 %v1965_v56, %v5812_v29  ;;  %v1846_v59 = vadd.f32 %v1818_v63, %v6816_v38  ;;  %v6819_v63 = vld [vmem:[#allocation41_spill] sm:$0xff] }
 0x1c1   : > { %v1963_v5 = vpop.permute.xlu0 %1962  ;;  %1217 = vrot.lane.b32.xlu1 %v5525_v15, %s4638_s25  ;;  %4382 = vmatpush1.bf16.msra.mxu1 %v4381_v24  ;;  %v5902_v15 = vsel %vm1305_vm3, %v2139_v34, %v2141_v12  ;;  %v6821_v24 = vld [vmem:[#allocation48_spill] sm:$0xff] }
 0x1c2   : > { %v2179_v17 = vadd.f32 %v5694_v41, %v2040_v39  ;;  %v2039_v62 = vadd.f32 %v1963_v5, %v5805_v19  ;;  %4383 = vmatprep.subr.bf16.mxu1 %v6808_v49 }
 0x1c3   : > { %v1444_v29 = vpop.permute.xlu1 %1443  ;;  %1471 = vrot.lane.b32.xlu0 %v5548_v21, %s4638_s25  ;;  %v6817_v21 = vld [vmem:[#allocation35_spill] sm:$0xff] }
 0x1c4   : > { %v5905_v41 = vadd.f32 %v5673_v0, %v2179_v17  ;;  %v2178_v19 = vadd.f32 %v5686_v35, %v2039_v62  ;;  %v1515_v16 = vadd.f32 %v1444_v29, %v1401_v9  ;;  %v6820_v9 = vld [vmem:[#allocation45_spill] sm:$0xff]  ;;  %v6822_v62 = vld [vmem:[#allocation55_spill] sm:$0xff] }
 0x1c5   : > { %v1192_v52 = vpop.permute.xlu0 %1191  ;;  %1473 = vrot.lane.b32.xlu1 %v5557_v1, %s4638_s25 }
 0x1c6   : > { %v2240_v6 = vmax.f32 %v5905_v41, 0.0  ;;  %v2211_v47 = vadd.f32 %v5673_v0, %v2178_v19  ;;  %v1262_v58 = vadd.f32 %v1192_v52, %v6817_v21  ;;  %v1654_v27 = vadd.f32 %v6818_v20, %v1515_v16  ;;  %v6824_v21 = vld [vmem:[#allocation50_spill] sm:$0xff] }
 0x1c7   : > { %v1194_v57 = vpop.permute.xlu1 %1193  ;;  %1775 = vrot.lane.b32.xlu0 %v5564_v43, %s4638_s25  ;;  %v6823_v16 = vmax.f32 %v5834_v2, 0.0 }
 0x1c8   : > { %v2239_v13 = vmax.f32 %v2211_v47, 0.0  ;;  %v1263_v35 = vadd.f32 %v1194_v57, %v6819_v63  ;;  %v1402_v60 = vadd.f32 %v6820_v9, %v1262_v58  ;;  %v2301_v1 = vrot.slane %v2240_v6, 1 }
 0x1c9   : > { %v1446_v34 = vpop.permute.xlu0 %1445  ;;  %1777 = vrot.lane.b32.xlu1 %v5578_v4, %s4638_s25 }
 0x1ca   : > { %v2299_v50 = vrot.slane %v2239_v13, 1  ;;  %v1516_v56 = vadd.f32 %v1446_v34, %v1402_v60  ;;  %v1403_v39 = vadd.f32 %v6821_v24, %v1263_v35  ;;  %v6828_v34 = vld [vmem:[#allocation43_spill] sm:$0xff] }
 0x1cb   : > { %v1750_v38 = vpop.permute.xlu1 %1749  ;;  %1994 = vrot.lane.b32.xlu0 %v5573_v28, %s4638_s25 }
 0x1cc   : > { %v2300_v43 = vsel %vm1109_vm2, %v5851_v31, %v2299_v50  ;;  %v2302_v5 = vsel %vm1109_vm2, %v2299_v50, %v2301_v1  ;;  %v1821_v17 = vadd.f32 %v1750_v38, %v1654_v27  ;;  %v1655_v29 = vadd.f32 %v6822_v62, %v1516_v56  ;;  %v6829_v50 = vld [vmem:[#allocation54_spill] sm:$0xff] }
 0x1cd   : > { %v2370_v4 = vmax.f32 %v2239_v13, %v2302_v5  ;;  %v1748_v19 = vpop.permute.xlu0 %1747  ;;  %1996 = vrot.lane.b32.xlu1 %v5588_v55, %s4638_s25  ;;  %v2369_v52 = vmax.f32 %v6823_v16, %v2300_v43  ;;  %v6825_v31 = vrot.slane %v5555_v54, 2  ;;  %v6826_v13 = vld [vmem:[#allocation44_spill] sm:$0xff]  ;;  %v6830_v43 = vld [vmem:[#allocation49_spill] sm:$0xff] }
 0x1ce   : > { %v1820_v47 = vadd.f32 %v1748_v19, %v1653_v44  ;;  %v1849_v58 = vadd.f32 %v1821_v17, %v6824_v21 }
 0x1cf   : > { %v2406_v28 = vmax.f32 %v5866_v46, %v2370_v4  ;;  %v1969_v20 = vpop.permute.xlu1 %1968  ;;  %1779 = vrot.lane.b32.xlu0 %v6825_v31, %s4638_s25  ;;  %v2405_v27 = vmax.f32 %v5861_v10, %v2369_v52 }
 0x1d0   : > { %v2042_v57 = vadd.f32 %v1969_v20, %v1847_v45  ;;  %v1848_v63 = vadd.f32 %v1820_v47, %v6826_v13  ;;  %v6832_v47 = vld [vmem:[#allocation56_spill] sm:$0xff]  ;;  %v2428_v20 = vld [vmem:[%s6582_s6 + $0x8] sm:$0xff] }
 0x1d1   : > { %v1967_v35 = vpop.permute.xlu0 %1966  ;;  %1998 = vrot.lane.b32.xlu1 %v5605_v8, %s4638_s25  ;;  %v4384_v55 = vpack.c.bf16 %v2406_v28, %v2405_v27  ;;  %v6827_v8 = vrot.slane %v5601_v48, 1  ;;  %v6833_v13 = vld [vmem:[#allocation64_spill] sm:$0xff]  ;;  %4138 = vmatprep.mubr.msk.f32.mxu1 %vm2441_vm4, %v2428_v20 }
 0x1d2   : > { %v2181_v2 = vadd.f32 %v5689_v53, %v2042_v57  ;;  %v2041_v44 = vadd.f32 %v1967_v35, %v1846_v59 }
 0x1d3   : > { %v1448_v9 = vpop.permute.xlu1 %1447  ;;  %2000 = vrot.lane.b32.xlu0 %v5614_v32, %s4638_s25  ;;  %4385 = vmatpush1.bf16.msra.mxu1 %v4384_v55 }
 0x1d4   : > { %v5946_v46 = vadd.f32 %v5673_v0, %v2181_v2  ;;  %v2180_v10 = vadd.f32 %v5697_v42, %v2041_v44  ;;  %v1517_v45 = vadd.f32 %v1448_v9, %v1403_v39  ;;  %4386 = vmatprep.subr.bf16.mxu1 %v6808_v49  ;;  %v6831_v39 = vld [vmem:[#allocation53_spill] sm:$0xff] }
 0x1d5   : > { %v1196_v60 = vpop.permute.xlu0 %1195  ;;  %2002 = vrot.lane.b32.xlu1 %v6827_v8, %s4638_s25 }
 0x1d6   : > { %v2242_v53 = vmax.f32 %v5946_v46, 0.0  ;;  %v2213_v59 = vadd.f32 %v5673_v0, %v2180_v10  ;;  %v1264_v32 = vadd.f32 %v1196_v60, %v6828_v34  ;;  %v1656_v56 = vadd.f32 %v6829_v50, %v1517_v45  ;;  %v6834_v46 = vld [vmem:[#allocation58_spill] sm:$0xff] }
 0x1d7   : > { %v1198_v24 = vpop.permute.xlu1 %1197 }
 0x1d8   : > { %v2241_v38 = vmax.f32 %v2213_v59, 0.0  ;;  %v1265_v42 = vadd.f32 %v1198_v24, %v6830_v43  ;;  %v1404_v5 = vadd.f32 %v6831_v39, %v1264_v32  ;;  %v2305_v62 = vrot.slane %v2242_v53, 1  ;;  %v6837_v39 = vld [vmem:[#allocation63_spill] sm:$0xff] }
 0x1d9   : > { %v1450_v17 = vpop.permute.xlu0 %1449 }
 0x1da   : > { %v2303_v19 = vrot.slane %v2241_v38, 1  ;;  %v1518_v16 = vadd.f32 %v1450_v17, %v1404_v5  ;;  %v1405_v21 = vadd.f32 %v6832_v47, %v1265_v42  ;;  %v6838_v17 = vld [vmem:[#allocation57_spill] sm:$0xff] }
 0x1db   : > { %v1754_v28 = vpop.permute.xlu1 %1753 }
 0x1dc   : > { %v2304_v31 = vsel %vm1109_vm2, %v2301_v1, %v2303_v19  ;;  %v2306_v27 = vsel %vm1109_vm2, %v2303_v19, %v2305_v62  ;;  %v1823_v57 = vadd.f32 %v1754_v28, %v1656_v56  ;;  %v1657_v35 = vadd.f32 %v6833_v13, %v1518_v16  ;;  %v6835_v1 = vld [vmem:[#allocation52_spill] sm:$0xff]  ;;  %v6839_v16 = vld [vmem:[#allocation62_spill] sm:$0xff] }
 0x1dd   : > { %v2372_v55 = vmax.f32 %v2241_v38, %v2306_v27  ;;  %v1752_v2 = vpop.permute.xlu0 %1751  ;;  %v2371_v44 = vmax.f32 %v2240_v6, %v2304_v31  ;;  %v6840_v31 = vld [vmem:[#allocation65_spill] sm:$0xff] }
 0x1de   : > { %v1822_v9 = vadd.f32 %v1752_v2, %v1655_v29  ;;  %v1851_v10 = vadd.f32 %v1823_v57, %v6834_v46  ;;  %v6841_v46 = vld [vmem:[#allocation76_spill] sm:$0xff] }
 0x1df   : > { %v2408_v45 = vmax.f32 %v2370_v4, %v2372_v55  ;;  %v1973_v60 = vpop.permute.xlu1 %1972  ;;  %v2407_v8 = vmax.f32 %v2369_v52, %v2371_v44 }
 0x1e0   : > { %v2044_v59 = vadd.f32 %v1973_v60, %v1849_v58  ;;  %v1850_v34 = vadd.f32 %v1822_v9, %v6835_v1  ;;  %v6836_v58 = vld [vmem:[#allocation51_spill] sm:$0xff] }
 0x1e1   : > { %v1971_v32 = vpop.permute.xlu0 %1970  ;;  %v4387_v50 = vpack.c.bf16 %v2408_v45, %v2407_v8 }
 0x1e2   : > { %v2183_v56 = vadd.f32 %v5724_v7, %v2044_v59  ;;  %v2043_v24 = vadd.f32 %v1971_v32, %v1848_v63  ;;  %v6842_v32 = vld [vmem:[#allocation68_spill] sm:$0xff] }
 0x1e3   : > { %v1452_v43 = vpop.permute.xlu1 %1451  ;;  %4388 = vmatpush1.bf16.msra.mxu1 %v4387_v50 }
 0x1e4   : > { %v5973_v38 = vadd.f32 %v5673_v0, %v2183_v56  ;;  %v2182_v41 = vadd.f32 %v5712_v25, %v2043_v24  ;;  %v1519_v6 = vadd.f32 %v1452_v43, %v1405_v21  ;;  %4389 = vmatprep.subr.bf16.mxu1 %v6808_v49 }
 0x1e5   : > { %v1200_v29 = vpop.permute.xlu0 %1199 }
 0x1e6   : > { %v2244_v4 = vmax.f32 %v5973_v38, 0.0  ;;  %v2215_v52 = vadd.f32 %v5673_v0, %v2182_v41  ;;  %v1266_v42 = vadd.f32 %v1200_v29, %v6836_v58  ;;  %v1658_v7 = vadd.f32 %v6837_v39, %v1519_v6  ;;  %v6843_v41 = vld [vmem:[#allocation60_spill] sm:$0xff] }
 0x1e7   : > { %v1202_v63 = vpop.permute.xlu1 %1201 }
 0x1e8   : > { %v2243_v5 = vmax.f32 %v2215_v52, 0.0  ;;  %v1267_v19 = vadd.f32 %v1202_v63, %v6838_v17  ;;  %v1406_v47 = vadd.f32 %v6839_v16, %v1266_v42  ;;  %v2309_v25 = vrot.slane %v2244_v4, 1 }
 0x1e9   : > { %v1454_v28 = vpop.permute.xlu0 %1453 }
 0x1ea   : > { %v2307_v21 = vrot.slane %v2243_v5, 1  ;;  %v1520_v20 = vadd.f32 %v1454_v28, %v1406_v47  ;;  %v1407_v27 = vadd.f32 %v6840_v31, %v1267_v19  ;;  %v6846_v19 = vld [vmem:[#allocation66_spill] sm:$0xff]  ;;  %v6847_v47 = vld [vmem:[#allocation73_spill] sm:$0xff] }
 0x1eb   : > { %v1758_v57 = vpop.permute.xlu1 %1757 }
 0x1ec   : > { %v2308_v13 = vsel %vm1109_vm2, %v2305_v62, %v2307_v21  ;;  %v2310_v2 = vsel %vm1109_vm2, %v2307_v21, %v2309_v25  ;;  %v1825_v9 = vadd.f32 %v1758_v57, %v1658_v7  ;;  %v1659_v45 = vadd.f32 %v6841_v46, %v1520_v20  ;;  %v6844_v7 = vld [vmem:[#allocation59_spill] sm:$0xff]  ;;  %v6848_v57 = vld [vmem:[#allocation77_spill] sm:$0xff] }
 0x1ed   : > { %v2374_v60 = vmax.f32 %v2243_v5, %v2310_v2  ;;  %v1756_v8 = vpop.permute.xlu0 %1755  ;;  %v2373_v59 = vmax.f32 %v2242_v53, %v2308_v13  ;;  %v6845_v5 = vld [vmem:[#allocation74_spill] sm:$0xff] }
 0x1ee   : > { %v1824_v1 = vadd.f32 %v1756_v8, %v1657_v35  ;;  %v1853_v50 = vadd.f32 %v1825_v9, %v6842_v32 }
 0x1ef   : > { %v2410_v56 = vmax.f32 %v2372_v55, %v2374_v60  ;;  %v1977_v24 = vpop.permute.xlu1 %1976  ;;  %v2409_v43 = vmax.f32 %v2371_v44, %v2373_v59 }
 0x1f0   : > { %v2046_v38 = vadd.f32 %v1977_v24, %v1851_v10  ;;  %v1852_v6 = vadd.f32 %v1824_v1, %v6843_v41  ;;  %v6849_v1 = vld [vmem:[#allocation88_spill] sm:$0xff] }
 0x1f1   : > { %v1975_v29 = vpop.permute.xlu0 %1974  ;;  %v4390_v52 = vpack.c.bf16 %v2410_v56, %v2409_v43  ;;  %v6850_v41 = vld [vmem:[#allocation80_spill] sm:$0xff] }
 0x1f2   : > { %v2185_v62 = vadd.f32 %v5727_v14, %v2046_v38  ;;  %v2045_v58 = vadd.f32 %v1975_v29, %v1850_v34 }
 0x1f3   : > { %v1456_v42 = vpop.permute.xlu1 %1455  ;;  %4391 = vmatpush1.bf16.msra.mxu1 %v4390_v52 }
 0x1f4   : > { %v5991_v39 = vadd.f32 %v5673_v0, %v2185_v62  ;;  %v2184_v53 = vadd.f32 %v5730_v30, %v2045_v58  ;;  %v1521_v35 = vadd.f32 %v1456_v42, %v1407_v27  ;;  %4392 = vmatprep.subr.bf16.mxu1 %v6808_v49  ;;  %v4497_v30 = vld [vmem:[%s6578_s2 + $0x10] ss:$20 sps:$4 sm:$0xff]  }
 0x1f5   : > { %v1204_v55 = vpop.permute.xlu0 %1203  ;;  %4318 = vmatprep.subr.bf16.mxu0 %v4497_v30 }
 0x1f6   : > { %v2246_v44 = vmax.f32 %v5991_v39, 0.0  ;;  %v2217_v10 = vadd.f32 %v5673_v0, %v2184_v53  ;;  %v1268_v63 = vadd.f32 %v1204_v55, %v6844_v7  ;;  %v1660_v14 = vadd.f32 %v6845_v5, %v1521_v35  ;;  %4319 = vmatpush3.bf16.msra.mxu0 %v4497_v30  ;;  %v6851_v39 = vld [vmem:[#allocation70_spill] sm:$0xff]  ;;  %v6852_v5 = vld [vmem:[#allocation69_spill] sm:$0xff] }
 0x1f7   : > { %v1206_v34 = vpop.permute.xlu1 %1205 }
 0x1f8   : > { %v2245_v17 = vmax.f32 %v2217_v10, 0.0  ;;  %v1269_v16 = vadd.f32 %v1206_v34, %v6846_v19  ;;  %v1408_v28 = vadd.f32 %v6847_v47, %v1268_v63  ;;  %v2313_v20 = vrot.slane %v2246_v44, 1  ;;  %v6853_v34 = vld [vmem:[#allocation86_spill] sm:$0xff]  ;;  %v6855_v47 = vld [vmem:[#allocation85_spill] sm:$0xff] }
 0x1f9   : > { %v1458_v21 = vpop.permute.xlu0 %1457  ;;  %v6854_v19 = vld [vmem:[#allocation78_spill] sm:$0xff] }
 0x1fa   : > { %v2311_v31 = vrot.slane %v2245_v17, 1  ;;  %v1522_v27 = vadd.f32 %v1458_v21, %v1408_v28  ;;  %v1409_v13 = vadd.f32 %v6848_v57, %v1269_v16 }
 0x1fb   : > { %v1762_v2 = vpop.permute.xlu1 %1761 }
 0x1fc   : > { %v2312_v9 = vsel %vm1109_vm2, %v2309_v25, %v2311_v31  ;;  %v2314_v46 = vsel %vm1109_vm2, %v2311_v31, %v2313_v20  ;;  %v1827_v8 = vadd.f32 %v1762_v2, %v1660_v14  ;;  %v1661_v32 = vadd.f32 %v6849_v1, %v1522_v27  ;;  %v6856_v27 = vld [vmem:[#allocation89_spill] sm:$0xff] }
 0x1fd   : > { %v2376_v56 = vmax.f32 %v2245_v17, %v2314_v46  ;;  %v1760_v24 = vpop.permute.xlu0 %1759  ;;  %v2375_v43 = vmax.f32 %v2244_v4, %v2312_v9 }
 0x1fe   : > { %v1826_v38 = vadd.f32 %v1760_v24, %v1659_v45  ;;  %v1855_v29 = vadd.f32 %v1827_v8, %v6850_v41  ;;  %v6857_v8 = vld [vmem:[#allocation100_spill] sm:$0xff] }
 0x1ff   : > { %v2412_v52 = vmax.f32 %v2374_v60, %v2376_v56  ;;  %v1981_v62 = vpop.permute.xlu1 %1980  ;;  %v2411_v58 = vmax.f32 %v2373_v59, %v2375_v43 }
 0x200   : > { %v2048_v42 = vadd.f32 %v1981_v62, %v1853_v50  ;;  %v1854_v53 = vadd.f32 %v1826_v38, %v6851_v39  ;;  %v6858_v62 = vld [vmem:[#allocation92_spill] sm:$0xff] }
 0x201   : > { %v1979_v35 = vpop.permute.xlu0 %1978  ;;  %v4393_v55 = vpack.c.bf16 %v2412_v52, %v2411_v58 }
 0x202   : > { %v2187_v25 = vadd.f32 %v5756_v23, %v2048_v42  ;;  %v2047_v10 = vadd.f32 %v1979_v35, %v1852_v6 }
 0x203   : > { %v1460_v7 = vpop.permute.xlu1 %1459  ;;  %4394 = vmatpush1.bf16.msra.mxu1 %v4393_v55 }
 0x204   : > { %v6012_v63 = vadd.f32 %v5673_v0, %v2187_v25  ;;  %v2186_v4 = vadd.f32 %v5746_v51, %v2047_v10  ;;  %v1523_v45 = vadd.f32 %v1460_v7, %v1409_v13  ;;  %4395 = vmatprep.subr.bf16.mxu1 %v6808_v49  ;;  %v6859_v25 = vld [vmem:[#allocation82_spill] sm:$0xff] }
 0x205   : > { %v1208_v60 = vpop.permute.xlu0 %1207 }
 0x206   : > { %v2248_v59 = vmax.f32 %v6012_v63, 0.0  ;;  %v2219_v50 = vadd.f32 %v5673_v0, %v2186_v4  ;;  %v1270_v14 = vadd.f32 %v1208_v60, %v6852_v5  ;;  %v1662_v23 = vadd.f32 %v6853_v34, %v1523_v45  ;;  %v6861_v5 = vld [vmem:[#allocation81_spill] sm:$0xff]  ;;  %v6862_v34 = vld [vmem:[#allocation98_spill] sm:$0xff] }
 0x207   : > { %v1210_v6 = vpop.permute.xlu1 %1209 }
 0x208   : > { %v2247_v17 = vmax.f32 %v2219_v50, 0.0  ;;  %v1271_v16 = vadd.f32 %v1210_v6, %v6854_v19  ;;  %v1410_v28 = vadd.f32 %v6855_v47, %v1270_v14  ;;  %v2317_v51 = vrot.slane %v2248_v59, 1 }
 0x209   : > { %v1462_v30 = vpop.permute.xlu0 %1461 }
 0x20a   : > { %v2315_v21 = vrot.slane %v2247_v17, 1  ;;  %v1524_v31 = vadd.f32 %v1462_v30, %v1410_v28  ;;  %v1411_v57 = vadd.f32 %v6856_v27, %v1271_v16  ;;  %v6864_v16 = vld [vmem:[#allocation97_spill] sm:$0xff] }
 0x20b   : > { %v1766_v13 = vpop.permute.xlu1 %1765 }
 0x20c   : > { %v2316_v2 = vsel %vm1109_vm2, %v2313_v20, %v2315_v21  ;;  %v2318_v9 = vsel %vm1109_vm2, %v2315_v21, %v2317_v51  ;;  %v1829_v46 = vadd.f32 %v1766_v13, %v1662_v23  ;;  %v1663_v1 = vadd.f32 %v6857_v8, %v1524_v31  ;;  %v6860_v20 = vld [vmem:[#allocation5_spill] sm:$0xff] }
 0x20d   : > { %v2378_v24 = vmax.f32 %v2247_v17, %v2318_v9  ;;  %v1764_v38 = vpop.permute.xlu0 %1763  ;;  %v2377_v41 = vmax.f32 %v2246_v44, %v2316_v2  ;;  %v6863_v17 = vld [vmem:[#allocation90_spill] sm:$0xff]  ;;  %v6865_v31 = vld [vmem:[#allocation101_spill] sm:$0xff] }
 0x20e   : > { %v1828_v52 = vadd.f32 %v1764_v38, %v1661_v32  ;;  %v1857_v58 = vadd.f32 %v1829_v46, %v6858_v62  ;;  %v6866_v46 = vld [vmem:[#allocation107_spill] sm:$0xff] }
 0x20f   : > { %v2414_v42 = vmax.f32 %v2376_v56, %v2378_v24  ;;  %v1985_v39 = vpop.permute.xlu1 %1984  ;;  %v2413_v35 = vmax.f32 %v2375_v43, %v2377_v41 }
 0x210   : > { %v2050_v55 = vadd.f32 %v1985_v39, %v1855_v29  ;;  %v1856_v10 = vadd.f32 %v1828_v52, %v6859_v25  ;;  %v6867_v39 = vld [vmem:[#allocation104_spill] sm:$0xff] }
 0x211   : > { %v1983_v7 = vpop.permute.xlu0 %1982  ;;  %v4396_v63 = vpack.c.bf16 %v2414_v42, %v2413_v35 }
 0x212   : > { %v2189_v4 = vadd.f32 %v6860_v20, %v2050_v55  ;;  %v2049_v45 = vadd.f32 %v1983_v7, %v1854_v53  ;;  %v6868_v20 = vld [vmem:[#allocation94_spill] sm:$0xff] }
 0x213   : > { %v1464_v60 = vpop.permute.xlu1 %1463  ;;  %4397 = vmatpush1.bf16.msra.mxu1 %v4396_v63 }
 0x214   : > { %v6030_v50 = vadd.f32 %v5673_v0, %v2189_v4  ;;  %v2188_v44 = vadd.f32 %v5759_v36, %v2049_v45  ;;  %v1525_v32 = vadd.f32 %v1464_v60, %v1411_v57  ;;  %4398 = vmatprep.subr.bf16.mxu1 %v6808_v49 }
 0x215   : > { %v1212_v56 = vpop.permute.xlu0 %1211 }
 0x216   : > { %v2250_v43 = vmax.f32 %v6030_v50, 0.0  ;;  %v2221_v29 = vadd.f32 %v5673_v0, %v2188_v44  ;;  %v1272_v14 = vadd.f32 %v1212_v56, %v6861_v5  ;;  %v1664_v23 = vadd.f32 %v6862_v34, %v1525_v32  ;;  %v6869_v56 = vld [vmem:[#allocation7_spill] sm:$0xff] }
 0x217   : > { %v1214_v53 = vpop.permute.xlu1 %1213 }
 0x218   : > { %v2249_v6 = vmax.f32 %v2221_v29, 0.0  ;;  %v1273_v19 = vadd.f32 %v1214_v53, %v6863_v17  ;;  %v1412_v47 = vadd.f32 %v6864_v16, %v1272_v14  ;;  %v2321_v36 = vrot.slane %v2250_v43, 1  ;;  %v6871_v14 = vld [vmem:[#allocation108_spill] sm:$0xff] }
 0x219   : > { %v1466_v28 = vpop.permute.xlu0 %1465 }
 0x21a   : > { %v2319_v30 = vrot.slane %v2249_v6, 1  ;;  %v1526_v21 = vadd.f32 %v1466_v28, %v1412_v47  ;;  %v1413_v27 = vadd.f32 %v6865_v31, %v1273_v19  ;;  %v6873_v31 = vrot.slane %v5502_v18, 2 }
 0x21b   : > { %v1770_v57 = vpop.permute.xlu1 %1769 }
 0x21c   : > { %v2320_v13 = vsel %vm1109_vm2, %v2317_v51, %v2319_v30  ;;  %v2322_v2 = vsel %vm1109_vm2, %v2319_v30, %v2321_v36  ;;  %v1831_v9 = vadd.f32 %v1770_v57, %v1664_v23  ;;  %v1665_v8 = vadd.f32 %v6866_v46, %v1526_v21 }
 0x21d   : > { %v2380_v38 = vmax.f32 %v2249_v6, %v2322_v2  ;;  %v1768_v52 = vpop.permute.xlu0 %1767  ;;  %v2379_v62 = vmax.f32 %v2248_v59, %v2320_v13 }
 0x21e   : > { %v1830_v42 = vadd.f32 %v1768_v52, %v1663_v1  ;;  %v1859_v35 = vadd.f32 %v1831_v9, %v6867_v39  ;;  %v6874_v9 = vld [vmem:[#allocation112_spill] sm:$0xff] }
 0x21f   : > { %v2416_v55 = vmax.f32 %v2378_v24, %v2380_v38  ;;  %v1989_v25 = vpop.permute.xlu1 %1988  ;;  %v2415_v7 = vmax.f32 %v2377_v41, %v2379_v62 }
 0x220   : > { %v2052_v63 = vadd.f32 %v1989_v25, %v1857_v58  ;;  %v1858_v4 = vadd.f32 %v1830_v42, %v6868_v20  ;;  %v6870_v58 = vld [vmem:[#allocation93_spill] sm:$0xff] }
 0x221   : > { %v1987_v45 = vpop.permute.xlu0 %1986  ;;  %v4399_v60 = vpack.c.bf16 %v2416_v55, %v2415_v7  ;;  %v6875_v42 = vld [vmem:[#allocation105_spill] sm:$0xff] }
 0x222   : > { %v2191_v51 = vadd.f32 %v5782_v11, %v2052_v63  ;;  %v2051_v50 = vadd.f32 %v1987_v45, %v1856_v10  ;;  %v6872_v10 = vld [vmem:[#allocation106_spill] sm:$0xff] }
 0x223   : > { %v1468_v44 = vpop.permute.xlu1 %1467  ;;  %4400 = vmatpush1.bf16.msra.mxu1 %v4399_v60  ;;  %v6876_v63 = vld [vmem:[#allocation110_spill] sm:$0xff] }
 0x224   : > { %v2224_v32 = vadd.f32 %v5673_v0, %v2191_v51  ;;  %v2190_v59 = vadd.f32 %v6869_v56, %v2051_v50  ;;  %v1527_v1 = vadd.f32 %v1468_v44, %v1413_v27  ;;  %4401 = vmatprep.subr.bf16.mxu1 %v6808_v49 }
 0x225   : > { %v1216_v24 = vpop.permute.xlu0 %1215 }
 0x226   : > { %v2252_v29 = vmax.f32 %v2224_v32, 0.0  ;;  %v2223_v41 = vadd.f32 %v5673_v0, %v2190_v59  ;;  %v1274_v5 = vadd.f32 %v1216_v24, %v6870_v58  ;;  %v1666_v34 = vadd.f32 %v6871_v14, %v1527_v1 }
 0x227   : > { %v1470_v23 = vpop.permute.xlu1 %1469 }
 0x228   : > { %v2251_v11 = vmax.f32 %v2223_v41, 0.0  ;;  %v1414_v53 = vadd.f32 %v6872_v10, %v1274_v5  ;;  %v2325_v17 = vrot.slane %v2252_v29, 1  ;;  %v6880_v10 = vrot.slane %v5555_v54, 1 }
 0x229   : > { %v1220_v6 = vpop.permute.xlu0 %1219 }
 0x22a   : > { %v2323_v19 = vrot.slane %v2251_v11, 1  ;;  %v1528_v16 = vadd.f32 %v1470_v23, %v1414_v53  ;;  %v1276_v47 = vadd.f32 %v1220_v6, %v5498_v37 }
 0x22b   : > { %v1772_v28 = vpop.permute.xlu1 %1771 }
 0x22c   : > { %v2324_v30 = vsel %vm1109_vm2, %v2321_v36, %v2323_v19  ;;  %v2326_v21 = vsel %vm1109_vm2, %v2323_v19, %v2325_v17  ;;  %v1832_v0 = vadd.f32 %v1772_v28, %v1665_v8  ;;  %v1416_v27 = vadd.f32 %v6873_v31, %v1276_v47  ;;  %v6881_v47 = vld [vmem:[#allocation111_spill] sm:$0xff] }
 0x22d   : > { %v2382_v57 = vmax.f32 %v2251_v11, %v2326_v21  ;;  %v1774_v13 = vpop.permute.xlu0 %1773  ;;  %v2381_v2 = vmax.f32 %v2250_v43, %v2324_v30  ;;  %v1667_v46 = vadd.f32 %v6874_v9, %v1528_v16  ;;  %v6066_v43 = vld [vmem:[%s6581_s5] ss:$0 sm:$0xff] }
 0x22e   : > { %v1833_v52 = vadd.f32 %v1774_v13, %v1666_v34  ;;  %v1860_v39 = vadd.f32 %v1832_v0, %v6875_v42  ;;  %v6879_v34 = vld [vmem:[#allocation113_spill] sm:$0xff] }
 0x22f   : > { %v2418_v55 = vmax.f32 %v2380_v38, %v2382_v57  ;;  %v1991_v25 = vpop.permute.xlu1 %1990  ;;  %v2417_v37 = vmax.f32 %v2379_v62, %v2381_v2  ;;  %v6877_v62 = vld [vmem:[#allocation102_spill] sm:$0xff] }
 0x230   : > { %v2053_v7 = vadd.f32 %v1991_v25, %v1858_v4  ;;  %v1861_v36 = vadd.f32 %v1833_v52, %v6876_v63 }
 0x231   : > { %v1993_v20 = vpop.permute.xlu0 %1992  ;;  %v4402_v45 = vpack.c.bf16 %v2418_v55, %v2417_v37 }
 0x232   : > { %v2192_v8 = vadd.f32 %v5822_v40, %v2053_v7  ;;  %v2054_v18 = vadd.f32 %v1993_v20, %v1859_v35  ;;  %v6878_v35 = vld [vmem:[#allocation109_spill] sm:$0xff] }
 0x233   : > { %v1218_v60 = vpop.permute.xlu1 %1217  ;;  %4403 = vmatpush1.bf16.msra.mxu1 %v4402_v45 }
 0x234   : > { %v2225_v51 = vadd.f32 %v6066_v43, %v2192_v8  ;;  %v2193_v38 = vadd.f32 %v5840_v61, %v2054_v18  ;;  %v1275_v4 = vadd.f32 %v1218_v60, %v6877_v62  ;;  %4404 = vmatprep.subr.bf16.mxu1 %v6808_v49 }
 0x235   : > { %v1472_v50 = vpop.permute.xlu0 %1471 }
 0x236   : > { %v2253_v44 = vmax.f32 %v2225_v51, 0.0  ;;  %v2226_v40 = vadd.f32 %v6066_v43, %v2193_v38  ;;  %v1415_v32 = vadd.f32 %v6878_v35, %v1275_v4 }
 0x237   : > { %v1474_v56 = vpop.permute.xlu1 %1473 }
 0x238   : > { %v2327_v59 = vrot.slane %v2253_v44, 1  ;;  %v2254_v1 = vmax.f32 %v2226_v40, 0.0  ;;  %v1529_v24 = vadd.f32 %v1472_v50, %v1415_v32  ;;  %v1530_v41 = vadd.f32 %v1474_v56, %v1416_v27  ;;  %v6882_v27 = vld [vmem:[#allocation114_spill] sm:$0xff] }
 0x239   : > { %v1776_v58 = vpop.permute.xlu0 %1775 }
 0x23a   : > { %v2328_v5 = vsel %vm1109_vm2, %v2325_v17, %v2327_v59  ;;  %v2329_v14 = vrot.slane %v2254_v1, 1  ;;  %v1834_v61 = vadd.f32 %v1776_v58, %v1667_v46  ;;  %v1668_v23 = vadd.f32 %v6879_v34, %v1529_v24 }
 0x23b   : > { %v1778_v11 = vpop.permute.xlu1 %1777  ;;  %v1669_v53 = vadd.f32 %v6880_v10, %v1530_v41  ;;  %v2383_v6 = vmax.f32 %v2252_v29, %v2328_v5 }
 0x23c   : > { %v2330_v19 = vsel %vm1109_vm2, %v2327_v59, %v2329_v14  ;;  %v1835_v16 = vadd.f32 %v1778_v11, %v1668_v23  ;;  %v1862_v28 = vadd.f32 %v1834_v61, %v6881_v47  ;;  %v2427_v47 = vld [vmem:[%s6582_s6] sm:$0xff] }
 0x23d   : > { %v1995_v30 = vpop.permute.xlu0 %1994  ;;  %v2384_v21 = vmax.f32 %v2253_v44, %v2330_v19  ;;  %v2419_v0 = vmax.f32 %v2381_v2, %v2383_v6 }
 0x23e   : > { %v2055_v31 = vadd.f32 %v1995_v30, %v1860_v39  ;;  %v1863_v17 = vadd.f32 %v1835_v16, %v6882_v27  ;;  %v4490_v16 = vld [vmem:[%s6578_s2 + $0x4] ss:$20 sps:$4 sm:$0xff]   ;;  %v4496_v27 = vld [vmem:[%s6578_s2 + $0x54] ss:$20 sps:$4 sm:$0xff]  }
 0x23f   : > { %v1997_v13 = vpop.permute.xlu1 %1996  ;;  %v2420_v9 = vmax.f32 %v2382_v57, %v2384_v21  ;;  %v2430_v30 = vld [vmem:[%s6582_s6 + $0x18] sm:$0xff] }
 0x240   : > { %v2194_v46 = vadd.f32 %v5869_v22, %v2055_v31  ;;  %v2056_v52 = vadd.f32 %v1997_v13, %v1861_v36  ;;  %v2432_v31 = vld [vmem:[%s6582_s6 + $0x28] sm:$0xff]  ;;  %v4494_v13 = vld [vmem:[%s6578_s2 + $0x50] ss:$20 sps:$4 sm:$0xff]  }
 0x241   : > { %v1780_v42 = vpop.permute.xlu0 %1779  ;;  %v4405_v54 = vpack.c.bf16 %v2420_v9, %v2419_v0  ;;  %v4491_v0 = vld [vmem:[%s6578_s2 + $0x28] ss:$20 sps:$4 sm:$0xff]  }
 0x242   : > { %v2227_v29 = vadd.f32 %v6066_v43, %v2194_v46  ;;  %v2195_v55 = vadd.f32 %v5892_v3, %v2056_v52  ;;  %v1836_v25 = vadd.f32 %v1780_v42, %v1669_v53  ;;  %v2434_v9 = vld [vmem:[%s6582_s6 + $0x38] sm:$0xff]  ;;  %v2433_v46 = vld [vmem:[%s6582_s6 + $0x30] sm:$0xff]  ;;  %v2436_v52 = vld [vmem:[%s6582_s6 + $0x48] sm:$0xff] }
 0x243   : > { %v1999_v37 = vpop.permute.xlu1 %1998  ;;  %4406 = vmatpush1.bf16.msra.mxu1 %v4405_v54  ;;  %v2435_v42 = vld [vmem:[%s6582_s6 + $0x40] sm:$0xff]  ;;  %v2438_v54 = vld [vmem:[%s6582_s6 + $0x58] sm:$0xff] }
 0x244   : > { %v2255_v7 = vmax.f32 %v2227_v29, 0.0  ;;  %v2228_v2 = vadd.f32 %v6066_v43, %v2195_v55  ;;  %v2057_v39 = vadd.f32 %v1999_v37, %v1862_v28  ;;  %v1864_v63 = vadd.f32 %v1836_v25, %v5601_v48  ;;  %4407 = vmatprep.subr.bf16.mxu1 %v6808_v49  ;;  %v4488_v28 = vld [vmem:[%s6578_s2] ss:$20 sps:$4 sm:$0xff]   ;;  %v2440_v55 = vld [vmem:[%s6582_s6 + $0x68] sm:$0x1] }
 0x245   : > { %v2001_v57 = vpop.permute.xlu0 %2000  ;;  %v2437_v29 = vld [vmem:[%s6582_s6 + $0x50] sm:$0xff]  ;;  %v2439_v25 = vld [vmem:[%s6582_s6 + $0x60] sm:$0x1]  ;;  %v6883_v37 = vmov 0  }
 0x246   : > { %v2331_v22 = vrot.slane %v2255_v7, 1  ;;  %v2256_v36 = vmax.f32 %v2228_v2, 0.0  ;;  %v2196_v20 = vadd.f32 %v5895_v26, %v2057_v39  ;;  %v2058_v45 = vadd.f32 %v2001_v57, %v1863_v17  ;;  %v2431_v17 = vld [vmem:[%s6582_s6 + $0x20] sm:$0xff]  ;;  %v4500_v2 = vld [vmem:[%s6578_s2 + $0x7c] ss:$20 sps:$4 sm:$0xff]  }
 0x247   : > { %v2003_v8 = vpop.permute.xlu1 %2002  ;;  %v4501_v39 = vld [vmem:[%s6578_s2 + $0x38] ss:$20 sps:$4 sm:$0xff]   ;;  %v4503_v57 = vld [vmem:[%s6578_s2 + $0x88] ss:$20 sps:$4 sm:$0xff]  }
 0x248   : > { %v2332_v3 = vsel %vm1109_vm2, %v2329_v14, %v2331_v22  ;;  %v2333_v18 = vrot.slane %v2256_v36, 1  ;;  %v2229_v60 = vadd.f32 %v6066_v43, %v2196_v20  ;;  %v2197_v51 = vadd.f32 %v5902_v15, %v2058_v45  ;;  %4320 = vmatprep.subr.bf16.mxu0 %v4501_v39 }
 0x249   : > { %v2059_v38 = vadd.f32 %v2003_v8, %v1864_v63  ;;  %v2385_v62 = vmax.f32 %v2254_v1, %v2332_v3  ;;  %4321 = vmatpush3.bf16.msra.mxu0 %v4501_v39  ;;  %v4502_v63 = vld [vmem:[%s6578_s2 + $0x60] ss:$20 sps:$4 sm:$0xff]   ;;  %v4504_v8 = vld [vmem:[%s6578_s2 + $0x8] ss:$20 sps:$4 sm:$0xff]  }
 0x24a   : > { %v2334_v48 = vsel %vm1109_vm2, %v2331_v22, %v2333_v18  ;;  %v2257_v4 = vmax.f32 %v2229_v60, 0.0  ;;  %v2230_v50 = vadd.f32 %v6066_v43, %v2197_v51  ;;  %4322 = vmatprep.subr.bf16.mxu0 %v4502_v63  ;;  %v4506_v22 = vld [vmem:[%s6578_s2 + $0xc] ss:$20 sps:$4 sm:$0xff]   ;;  %v4509_v60 = vld [vmem:[%s6578_s2 + $0x34] ss:$20 sps:$4 sm:$0xff]  }
 0x24b   : > { %v2198_v44 = vadd.f32 %v2141_v12, %v2059_v38  ;;  %v2386_v26 = vmax.f32 %v2255_v7, %v2334_v48  ;;  %v2421_v40 = vmax.f32 %v2383_v6, %v2385_v62  ;;  %v4498_v7 = vld [vmem:[%s6578_s2 + $0x78] ss:$20 sps:$4 sm:$0xff]   ;;  %v4507_v38 = vld [vmem:[%s6578_s2 + $0x30] ss:$20 sps:$4 sm:$0xff]  }
 0x24c   : > { %v2335_v35 = vrot.slane %v2257_v4, 1  ;;  %v2258_v32 = vmax.f32 %v2230_v50, 0.0  ;;  %v4512_v48 = vld [vmem:[%s6578_s2 + $0x5c] ss:$20 sps:$4 sm:$0xff]   ;;  %v4510_v50 = vld [vmem:[%s6578_s2 + $0x58] ss:$20 sps:$4 sm:$0xff]  }
 0x24d   : > { %v2231_v56 = vadd.f32 %v6066_v43, %v2198_v44  ;;  %v2422_v59 = vmax.f32 %v2384_v21, %v2386_v26  ;;  %v2429_v21 = vld [vmem:[%s6582_s6 + $0x10] sm:$0xff]  ;;  %4323 = vmatpush3.bf16.msra.mxu0 %v4502_v63 }
 0x24e   : > { %v2336_v24 = vsel %vm1109_vm2, %v2333_v18, %v2335_v35  ;;  %v2391_v15 = vrot.slane %v2258_v32, 1  ;;  %v2388_v12 = vmax.f32 %v2257_v4, %v2335_v35  ;;  %4324 = vmatprep.subr.bf16.mxu0 %v4503_v57 }
 0x24f   : > { %v2259_v41 = vmax.f32 %v2231_v56, 0.0  ;;  %v2387_v1 = vmax.f32 %v2256_v36, %v2336_v24  ;;  %v4408_v58 = vpack.c.bf16 %v2422_v59, %v2421_v40  ;;  %v4515_v40 = vld [vmem:[%s6578_s2 + $0x84] ss:$20 sps:$4 sm:$0xff]  }
 0x250   : > { %v2392_v5 = vsel %vm1109_vm2, %v2335_v35, %v2391_v15 }
 0x251   : > { %v2393_v14 = vrot.slane %v2259_v41, 1  ;;  %4409 = vmatpush1.bf16.msra.mxu1 %v4408_v58  ;;  %v2398_v61 = vmax.f32 %v2257_v4, %v2392_v5  ;;  %v2423_v33 = vmax.f32 %v2385_v62, %v2387_v1  ;;  %4325 = vmatpush3.bf16.msra.mxu0 %v4503_v57 }
 0x252   : > { %4410 = vmatprep.subr.bf16.mxu1 %v6808_v49 }
 0x253   : > { %v2394_v34 = vsel %vm1109_vm2, %v2391_v15, %v2393_v14  ;;  %v2400_v23 = vmax.f32 %v2259_v41, %v2393_v14  ;;  %v2424_v43 = vmax.f32 %v2386_v26, %v2398_v61 }
 0x254   : > { %v2399_v11 = vmax.f32 %v2258_v32, %v2394_v34  ;;  %v4513_v32 = vld [vmem:[%s6578_s2 + $0x80] ss:$20 sps:$4 sm:$0xff]  }
 0x255   : > { %v2426_v10 = vmax.f32 %v2388_v12, %v2400_v23  ;;  %v4411_v53 = vpack.c.bf16 %v2424_v43, %v2423_v33 }
 0x256   : > { %v2425_v6 = vmax.f32 %v2387_v1, %v2399_v11 }
 0x257   : > { %4412 = vmatpush1.bf16.msra.mxu1 %v4411_v53 }
 0x258   : > { %v4414_v19 = vpack.c.bf16 %v2426_v10, %v2425_v6  ;;  %4413 = vmatprep.subr.bf16.mxu1 %v6808_v49  ;;  %v4493_v49 = vld [vmem:[%s6578_s2 + $0x2c] ss:$20 sps:$4 sm:$0xff]  }
 0x25b   : > { %4416 = vmatpush1.bf16.msk.msra.mxu1 %vm4415_vm7, %v4414_v19 }
 0x25c   : > { %2712 = vmatprep.subr.bf16.mxu1 %v4490_v16 }
 0x25e   : > { %2532 = vmatmul.mubr.f32.vlgmr.msra.gmra.mrb[64].mxu1 %v2427_v47 }
 0x25f   : > { %4139 = vmatprep.mubr.msk.f32.mxu1 %vm2441_vm4, %v2430_v30  ;;  %2713 = vmatpush1.bf16.msra.mxu1 %v4488_v28 }
 0x260   : > { %2714 = vmatprep.subr.bf16.mxu1 %v4493_v49 }
 0x262   : > { %2537 = vmatmul.mubr.f32.gmra.mrb[66].mxu1 %v2429_v21 }
 0x263   : > { %4140 = vmatprep.mubr.msk.f32.mxu1 %vm2441_vm4, %v2432_v31  ;;  %2715 = vmatpush1.bf16.msra.mxu1 %v4491_v0 }
 0x264   : > { %2716 = vmatprep.subr.bf16.mxu1 %v4496_v27 }
 0x266   : > { %2542 = vmatmul.mubr.f32.gmra.mrb[68].mxu1 %v2431_v17 }
 0x267   : > { %4141 = vmatprep.mubr.msk.f32.mxu1 %vm2441_vm4, %v2434_v9  ;;  %2717 = vmatpush1.bf16.msra.mxu1 %v4494_v13 }
 0x268   : > { %2718 = vmatprep.subr.bf16.mxu1 %v4500_v2 }
 0x26a   : > { %2547 = vmatmul.mubr.f32.gmra.mrb[70].mxu1 %v2433_v46 }
 0x26b   : > { %4142 = vmatprep.mubr.msk.f32.mxu1 %vm2441_vm4, %v2436_v52  ;;  %2719 = vmatpush1.bf16.msra.mxu1 %v4498_v7 }
 0x26c   : > { %2779 = vmatprep.subr.bf16.mxu1 %v4506_v22 }
 0x26e   : > { %2552 = vmatmul.mubr.f32.gmra.mrb[72].mxu1 %v2435_v42 }
 0x26f   : > { %4143 = vmatprep.mubr.msk.f32.mxu1 %vm2441_vm4, %v2438_v54 }
 0x272   : > { %2557 = vmatmul.mubr.f32.gmra.mrb[74].mxu1 %v2437_v29 }
 0x273   : > { %4144 = vmatprep.mubr.msk.f32.mxu1 %vm2441_vm4, %v2440_v55 }
 0x276   : > { %2562 = vmatmul.mubr.f32.gmra.mrb[76].mxu1 %v2439_v25 }
 0x277   : > { %2744 = vmatprep.mubr.bf16.mxu1 %v6883_v37 }
 0x331   : > { %v2533_v36 = vpop.f32.mrb[64].mxu1 }
 0x332   : > { %v2535_v20 = vpop.f32.mrb[65].mxu1 }
 0x335   : > { %v2538_v45 = vpop.f32.mrb[66].mxu1 }
 0x336   : > { %v2567_v3 = vpack.c.bf16 %v2538_v45, %v2533_v36  ;;  %v2540_v18 = vpop.f32.mrb[67].mxu1 }
 0x338   : > { %4165 = vmatmul.mubr.msk.bf16.vlgmr.msra.gmra.mrb[80].mxu1 %vm2699_vm8, %v2567_v3  ;;  %4326 = vmatprep.mubr.msk.bf16.mxu0 %vm2699_vm8, %v2567_v3 }
 0x339   : > { %v2543_v51 = vpop.f32.mrb[68].mxu1  ;;  %2754 = vmatprep.mubr.bf16.mxu1 %v6883_v37  ;;  %2780 = vmatpush1.bf16.msra.mxu1 %v4504_v8 }
 0x33a   : > { %v2545_v62 = vpop.f32.mrb[69].mxu1  ;;  %2781 = vmatprep.subr.bf16.mxu1 %v4509_v60 }
 0x33d   : > { %v2548_v4 = vpop.f32.mrb[70].mxu1  ;;  %2782 = vmatpush1.bf16.msra.mxu1 %v4507_v38 }
 0x33e   : > { %v2568_v44 = vpack.c.bf16 %v2548_v4, %v2543_v51  ;;  %v2550_v26 = vpop.f32.mrb[71].mxu1  ;;  %2783 = vmatprep.subr.bf16.mxu1 %v4512_v48 }
 0x340   : > { %4166 = vmatmul.mubr.msk.bf16.gmra.mrb[84].mxu1 %vm2699_vm8, %v2568_v44  ;;  %4327 = vmatmul.mubr.msk.bf16.vlgmr.msra.gmra.mrb[96].mxu0 %vm2699_vm8, %v2568_v44 }
 0x341   : > { %v2553_v35 = vpop.f32.mrb[72].mxu1  ;;  %2764 = vmatprep.mubr.bf16.mxu1 %v6883_v37  ;;  %2784 = vmatpush1.bf16.msra.mxu1 %v4510_v50 }
 0x342   : > { %v2555_v56 = vpop.f32.mrb[73].mxu1  ;;  %2785 = vmatprep.subr.bf16.mxu1 %v4515_v40 }
 0x345   : > { %v2558_v59 = vpop.f32.mrb[74].mxu1  ;;  %2786 = vmatpush1.bf16.msra.mxu1 %v4513_v32 }
 0x346   : > { %v2569_v24 = vpack.c.bf16 %v2558_v59, %v2553_v35  ;;  %v2560_v15 = vpop.f32.mrb[75].mxu1 }
 0x348   : > { %4167 = vmatmul.mubr.msk.bf16.gmra.mrb[88].mxu1 %vm2699_vm8, %v2569_v24  ;;  %4330 = vmatprep.mubr.msk.bf16.mxu0 %vm2699_vm8, %v2569_v24 }
 0x349   : > { %v2563_v41 = vpop.f32.mrb[76].mxu1  ;;  %2772 = vmatprep.mubr.bf16.mxu1 %v6883_v37 }
 0x34a   : > { %v2570_v1 = vpack.c.bf16 %v2563_v41, %v2563_v41  ;;  %v2565_v58 = vpop.f32.mrb[77].mxu1 }
 0x34c   : > { %4331 = vmatmul.mubr.msk.bf16.gmra.mrb[100].mxu0 %vm2699_vm8, %v2570_v1 }
 0x350   : > { %4168 = vmatmul.mubr.msk.bf16.gmra.mrb[92].mxu1 %vm2699_vm8, %v2570_v1 }
 0x351   : > { %2811 = vmatprep.mubr.bf16.mxu1 %v6883_v37 }
 0x358   : > { %4169 = vmatmul.mubr.msk.bf16.vlgmr.msra.gmra.mrb[96].mxu1 %vm2699_vm8, %v2567_v3 }
 0x359   : > { %2819 = vmatprep.mubr.bf16.mxu1 %v6883_v37 }
 0x360   : > { %4170 = vmatmul.mubr.msk.bf16.gmra.mrb[100].mxu1 %vm2699_vm8, %v2568_v44 }
 0x361   : > { %2829 = vmatprep.mubr.bf16.mxu1 %v6883_v37 }
 0x368   : > { %4171 = vmatmul.mubr.msk.bf16.gmra.mrb[104].mxu1 %vm2699_vm8, %v2569_v24 }
 0x369   : > { %2839 = vmatprep.mubr.bf16.mxu1 %v6883_v37 }
 0x370   : > { %4172 = vmatmul.mubr.msk.bf16.gmra.mrb[108].mxu1 %vm2699_vm8, %v2570_v1 }
 0x371   : > { %3370 = vmatprep.mubr.bf16.mxu1 %v6883_v37 }
 0x40b   : > { %v6224_v5 = vpop.f32.mrb[80].mxu1 }
 0x40c   : > { %v2748_v14 = vpop.f32.mrb[81].mxu1  ;;  %v2912_v33 = vrot.slane %v6224_v5, 1 }
 0x40d   : > { %v6226_v61 = vpop.f32.mrb[82].mxu1  ;;  %v2942_v23 = vrot.slane %v2748_v14, 2  ;;  %v2960_v43 = vrot.slane %v2748_v14, 7 }
 0x40e   : > { %v2913_v12 = vrot.slane %v6226_v61, 1  ;;  %v2752_v34 = vpop.f32.mrb[83].mxu1 }
 0x40f   : > { %v2943_v11 = vrot.slane %v2752_v34, 2  ;;  %v2961_v10 = vrot.slane %v2752_v34, 7 }
 0x410   : > { %v2914_v53 = vsel %vm1109_vm2, %v2912_v33, %v2913_v12 }
 0x411   : > { %2921 = vrot.lane.b32.xlu1 %v2914_v53, %s4638_s25  ;;  %v2962_v6 = vsel %vm2959_vm9, %v2960_v43, %v2961_v10  ;;  %v6234_v19 = vsel %vm1305_vm3, %v2942_v23, %v2943_v11 }
 0x413   : > { %v6236_v16 = vpop.f32.mrb[84].mxu1  ;;  %v6238_v47 = vpop.f32.mrb[96].mxu0 }
 0x414   : > { %v2915_v28 = vrot.slane %v6236_v16, 1  ;;  %v2758_v30 = vpop.f32.mrb[85].mxu1  ;;  %v2880_v49 = vpop.f32.mrb[97].mxu0 }
 0x415   : > { %v2945_v21 = vrot.slane %v2758_v30, 2  ;;  %v2963_v0 = vrot.slane %v2758_v30, 7  ;;  %v6241_v31 = vpop.f32.mrb[98].mxu0  ;;  %2969 = vrot.lane.b32.xlu1 %v2962_v6, %s4638_s25  ;;  %v6244_v27 = vpop.f32.mrb[86].mxu1 }
 0x416   : > { %v2917_v17 = vrot.slane %v6244_v27, 1  ;;  %v2762_v13 = vpop.f32.mrb[87].mxu1  ;;  %v2882_v9 = vpop.f32.mrb[99].mxu0  ;;  %v2916_v46 = vsel %vm1109_vm2, %v2913_v12, %v2915_v28 }
 0x417   : > { %v2947_v52 = vrot.slane %v2762_v13, 2  ;;  %v2965_v42 = vrot.slane %v2762_v13, 7  ;;  %2923 = vrot.lane.b32.xlu0 %v2916_v46, %s4638_s25  ;;  %v2964_v54 = vsel %vm2959_vm9, %v2961_v10, %v2963_v0  ;;  %v6251_v29 = vsel %vm1305_vm3, %v2943_v11, %v2945_v21 }
 0x418   : > { %v2918_v55 = vsel %vm1109_vm2, %v2915_v28, %v2917_v17 }
 0x419   : > { %2925 = vrot.lane.b32.xlu1 %v2918_v55, %s4638_s25  ;;  %v2966_v25 = vsel %vm2959_vm9, %v2963_v0, %v2965_v42  ;;  %v6257_v7 = vsel %vm1305_vm3, %v2945_v21, %v2947_v52 }
 0x41b   : > { %2971 = vrot.lane.b32.xlu0 %v2964_v54, %s4638_s25  ;;  %v2766_v2 = vpop.f32.mrb[88].mxu1 }
 0x41c   : > { %v2919_v39 = vrot.slane %v2766_v2, 1  ;;  %v2768_v63 = vpop.f32.mrb[89].mxu1 }
 0x41d   : > { %v2949_v57 = vrot.slane %v2768_v63, 2  ;;  %v2967_v22 = vrot.slane %v2768_v63, 7  ;;  %2973 = vrot.lane.b32.xlu1 %v2966_v25, %s4638_s25  ;;  %v2770_v36 = vpop.f32.mrb[90].mxu1 }
 0x41e   : > { %v2771_v20 = vpop.f32.mrb[91].mxu1  ;;  %v2920_v45 = vsel %vm1109_vm2, %v2917_v17, %v2919_v39 }
 0x41f   : > { %2927 = vrot.lane.b32.xlu0 %v2920_v45, %s4638_s25  ;;  %v2968_v8 = vsel %vm2959_vm9, %v2965_v42, %v2967_v22  ;;  %v4332_v3 = vpop.f32.mrb[100].mxu0  ;;  %v6265_v18 = vsel %vm1305_vm3, %v2947_v52, %v2949_v57  ;;  %v3119_v45 = vld [vmem:[%s6583_s7] sm:$0xff] }
 0x420   : > { %v6267_v60 = vpop.f32.mrb[101].mxu0  ;;  %4340 = vmatprep.mubr.msk.f32.mxu0 %vm3121_vm11, %v3119_v45  ;;  %v4518_v3 = vld [vmem:[%s6579_s3 + $0x4] ss:$20 sps:$4 sm:$0xff]  }
 0x421   : > { %v4333_v51 = vpop.f32.mrb[102].mxu0  ;;  %3338 = vmatprep.subr.bf16.mxu1 %v4518_v3 }
 0x422   : > { %v6269_v38 = vpop.f32.mrb[103].mxu0  ;;  %v4521_v51 = vld [vmem:[%s6579_s3 + $0x2c] ss:$20 sps:$4 sm:$0xff]  }
 0x423   : > { %2975 = vrot.lane.b32.xlu0 %v2968_v8, %s4638_s25  ;;  %v2774_v62 = vpop.f32.mrb[92].mxu1  ;;  %v4516_v8 = vld [vmem:[%s6579_s3] ss:$20 sps:$4 sm:$0xff]  }
 0x424   : > { %v2775_v48 = vpop.f32.mrb[93].mxu1  ;;  %3339 = vmatpush1.bf16.msra.mxu1 %v4516_v8  ;;  %v4519_v62 = vld [vmem:[%s6579_s3 + $0x28] ss:$20 sps:$4 sm:$0xff]  }
 0x425   : > { %v2776_v4 = vpop.f32.mrb[94].mxu1  ;;  %3340 = vmatprep.subr.bf16.mxu1 %v4521_v51  ;;  %v4527_v48 = vld [vmem:[%s6579_s3 + $0x54] ss:$20 sps:$4 sm:$0xff]  }
 0x426   : > { %v2777_v50 = vpop.f32.mrb[95].mxu1  ;;  %v4525_v4 = vld [vmem:[%s6579_s3 + $0x50] ss:$20 sps:$4 sm:$0xff]  }
 0x427   : > { %v4533_v50 = vld [vmem:[%s6579_s3 + $0x7c] ss:$20 sps:$4 sm:$0xff]  }
 0x428   : > { %3341 = vmatpush1.bf16.msra.mxu1 %v4519_v62 }
 0x429   : > { %3342 = vmatprep.subr.bf16.mxu1 %v4527_v48 }
 0x42b   : > { %v2813_v44 = vpop.f32.mrb[96].mxu1 }
 0x42c   : > { %v2814_v26 = vpop.f32.mrb[97].mxu1  ;;  %3343 = vmatpush1.bf16.msra.mxu1 %v4525_v4  ;;  %v4531_v44 = vld [vmem:[%s6579_s3 + $0x78] ss:$20 sps:$4 sm:$0xff]  }
 0x42d   : > { %v6272_v40 = vpop.f32.mrb[98].mxu1  ;;  %3344 = vmatprep.subr.bf16.mxu1 %v4533_v50 }
 0x42e   : > { %v2817_v35 = vpop.f32.mrb[99].mxu1  ;;  %v2994_v56 = vrot.slane %v6272_v40, 1 }
 0x42f   : > { %v3025_v15 = vrot.slane %v2817_v35, 6  ;;  %v3042_v41 = vrot.slane %v2817_v35, 7 }
 0x430   : > { %3345 = vmatpush1.bf16.msra.mxu1 %v4531_v44 }
 0x433   : > { %v6274_v32 = vpop.f32.mrb[100].mxu1 }
 0x434   : > { %v2995_v59 = vrot.slane %v6274_v32, 1  ;;  %v2823_v24 = vpop.f32.mrb[101].mxu1 }
 0x435   : > { %v3026_v1 = vrot.slane %v2823_v24, 6  ;;  %v3043_v58 = vrot.slane %v2823_v24, 7  ;;  %v6278_v14 = vpop.f32.mrb[102].mxu1 }
 0x436   : > { %v2997_v33 = vrot.slane %v6278_v14, 1  ;;  %v2827_v12 = vpop.f32.mrb[103].mxu1  ;;  %v2996_v34 = vsel %vm1109_vm2, %v2994_v56, %v2995_v59 }
 0x437   : > { %v3028_v23 = vrot.slane %v2827_v12, 6  ;;  %v3045_v43 = vrot.slane %v2827_v12, 7  ;;  %3003 = vrot.lane.b32.xlu1 %v2996_v34, %s4638_s25  ;;  %v3044_v11 = vsel %vm2959_vm9, %v3042_v41, %v3043_v58  ;;  %v6285_v10 = vsel %vm3024_vm10, %v3025_v15, %v3026_v1 }
 0x438   : > { %v2998_v53 = vsel %vm1109_vm2, %v2995_v59, %v2997_v33 }
 0x439   : > { %3005 = vrot.lane.b32.xlu0 %v2998_v53, %s4638_s25  ;;  %v3046_v6 = vsel %vm2959_vm9, %v3043_v58, %v3045_v43  ;;  %v6291_v28 = vsel %vm3024_vm10, %v3026_v1, %v3028_v23 }
 0x43b   : > { %v6293_v30 = vpop.f32.mrb[104].mxu1 }
 0x43c   : > { %v2999_v49 = vrot.slane %v6293_v30, 1  ;;  %v2833_v21 = vpop.f32.mrb[105].mxu1 }
 0x43d   : > { %v3030_v0 = vrot.slane %v2833_v21, 6  ;;  %v3047_v17 = vrot.slane %v2833_v21, 7  ;;  %3053 = vrot.lane.b32.xlu0 %v3046_v6, %s4638_s25  ;;  %v2835_v13 = vpop.f32.mrb[106].mxu1 }
 0x43e   : > { %v3001_v9 = vrot.slane %v2835_v13, 1  ;;  %v2837_v46 = vpop.f32.mrb[107].mxu1  ;;  %v3000_v52 = vsel %vm1109_vm2, %v2997_v33, %v2999_v49 }
 0x43f   : > { %v3032_v42 = vrot.slane %v2837_v46, 6  ;;  %v3049_v54 = vrot.slane %v2837_v46, 7  ;;  %3007 = vrot.lane.b32.xlu1 %v3000_v52, %s4638_s25  ;;  %v3048_v55 = vsel %vm2959_vm9, %v3045_v43, %v3047_v17  ;;  %v6301_v25 = vsel %vm3024_vm10, %v3028_v23, %v3030_v0 }
 0x440   : > { %v3002_v2 = vsel %vm1109_vm2, %v2999_v49, %v3001_v9 }
 0x441   : > { %3009 = vrot.lane.b32.xlu0 %v3002_v2, %s4638_s25  ;;  %v3050_v39 = vsel %vm2959_vm9, %v3047_v17, %v3049_v54  ;;  %v6307_v63 = vsel %vm3024_vm10, %v3030_v0, %v3032_v42 }
 0x443   : > { %3055 = vrot.lane.b32.xlu1 %v3048_v55, %s4638_s25  ;;  %v2841_v57 = vpop.f32.mrb[108].mxu1 }
 0x444   : > { %v2842_v22 = vpop.f32.mrb[109].mxu1 }
 0x445   : > { %3057 = vrot.lane.b32.xlu0 %v3050_v39, %s4638_s25  ;;  %v2843_v36 = vpop.f32.mrb[110].mxu1 }
 0x446   : > { %v2844_v20 = vpop.f32.mrb[111].mxu1 }
 0x447   : > { %3051 = vrot.lane.b32.xlu1 %v3044_v11, %s4638_s25 }
 0x483   : > { %v2922_v26 = vpop.permute.xlu1 %2921 }
 0x484   : > { %v2933_v35 = vadd.f32 %v2922_v26, %v6224_v5 }
 0x486   : > { %v2955_v56 = vadd.f32 %v6234_v19, %v2933_v35 }
 0x487   : > { %v2970_v59 = vpop.permute.xlu1 %2969 }
 0x488   : > { %v2981_v24 = vadd.f32 %v2970_v59, %v2955_v56 }
 0x489   : > { %v2924_v15 = vpop.permute.xlu0 %2923 }
 0x48a   : > { %v2934_v41 = vadd.f32 %v2924_v15, %v6226_v61  ;;  %v2985_v1 = vadd.f32 %v2981_v24, %v6272_v40 }
 0x48b   : > { %v2926_v58 = vpop.permute.xlu1 %2925 }
 0x48c   : > { %v2935_v33 = vadd.f32 %v2926_v58, %v6236_v16  ;;  %v2956_v12 = vadd.f32 %v6251_v29, %v2934_v41 }
 0x48d   : > { %v2972_v34 = vpop.permute.xlu0 %2971 }
 0x48e   : > { %v2982_v23 = vadd.f32 %v2972_v34, %v2956_v12  ;;  %v2957_v43 = vadd.f32 %v6257_v7, %v2935_v33 }
 0x48f   : > { %v2974_v11 = vpop.permute.xlu1 %2973 }
 0x490   : > { %v2983_v5 = vadd.f32 %v2974_v11, %v2957_v43  ;;  %v2986_v19 = vadd.f32 %v2982_v23, %v6274_v32 }
 0x491   : > { %v2928_v53 = vpop.permute.xlu0 %2927 }
 0x492   : > { %v2936_v6 = vadd.f32 %v2928_v53, %v6244_v27  ;;  %v2987_v61 = vadd.f32 %v2983_v5, %v6278_v14  ;;  %v4524_v5 = vld [vmem:[%s6579_s3 + $0xc] ss:$20 sps:$4 sm:$0xff]   ;;  %v4522_v53 = vld [vmem:[%s6579_s3 + $0x8] ss:$20 sps:$4 sm:$0xff]  }
 0x494   : > { %v2958_v40 = vadd.f32 %v6265_v18, %v2936_v6  ;;  %v4177_v18 = vld [vmem:[%s6581_s5 + $0x1] ss:$0 sm:$0xff]  ;;  %v4530_v6 = vld [vmem:[%s6579_s3 + $0x34] ss:$20 sps:$4 sm:$0xff]  }
 0x495   : > { %v2976_v49 = vpop.permute.xlu0 %2975 }
 0x496   : > { %v2984_v21 = vadd.f32 %v2976_v49, %v2958_v40  ;;  %v4536_v40 = vld [vmem:[%s6579_s3 + $0x5c] ss:$20 sps:$4 sm:$0xff]   ;;  %v4534_v49 = vld [vmem:[%s6579_s3 + $0x58] ss:$20 sps:$4 sm:$0xff]  }
 0x498   : > { %v2988_v16 = vadd.f32 %v2984_v21, %v6293_v30  ;;  %v4540_v21 = vld [vmem:[%s6579_s3 + $0x84] ss:$20 sps:$4 sm:$0xff]  }
 0x4a9   : > { %v3004_v29 = vpop.permute.xlu1 %3003 }
 0x4aa   : > { %v3015_v0 = vadd.f32 %v3004_v29, %v2985_v1  ;;  %v4641_v29 = vmov 0.0  }
 0x4ab   : > { %v3006_v17 = vpop.permute.xlu0 %3005  ;;  %4343 = vmatprep.subr.bf16.mxu1 %v4641_v29 }
 0x4ac   : > { %v3016_v13 = vadd.f32 %v3006_v17, %v2986_v19  ;;  %v3038_v7 = vadd.f32 %v6285_v10, %v3015_v0  ;;  %v3120_v19 = vld [vmem:[%s6583_s7 + $0x8] sm:$0xff] }
 0x4ae   : > { %v3039_v9 = vadd.f32 %v6291_v28, %v3016_v13  ;;  %v4537_v13 = vld [vmem:[%s6579_s3 + $0x10] ss:$20 sps:$4 sm:$0xff]  }
 0x4af   : > { %v3054_v32 = vpop.permute.xlu0 %3053 }
 0x4b0   : > { %v3064_v46 = vadd.f32 %v3054_v32, %v3039_v9  ;;  %v4541_v9 = vld [vmem:[%s6579_s3 + $0x38] ss:$20 sps:$4 sm:$0xff]   ;;  %v4542_v32 = vld [vmem:[%s6579_s3 + $0x60] ss:$20 sps:$4 sm:$0xff]  }
 0x4b1   : > { %v3008_v52 = vpop.permute.xlu1 %3007 }
 0x4b2   : > { %v3068_v27 = vadd.f32 %v6241_v31, %v3064_v46  ;;  %v3017_v14 = vadd.f32 %v3008_v52, %v2987_v61  ;;  %v4528_v61 = vld [vmem:[%s6579_s3 + $0x30] ss:$20 sps:$4 sm:$0xff]   ;;  %v4543_v46 = vld [vmem:[%s6579_s3 + $0x88] ss:$20 sps:$4 sm:$0xff]  }
 0x4b3   : > { %v3010_v42 = vpop.permute.xlu0 %3009 }
 0x4b4   : > { %v3018_v30 = vadd.f32 %v3010_v42, %v2988_v16  ;;  %v3040_v54 = vadd.f32 %v6301_v25, %v3017_v14  ;;  %v3077_v2 = vadd.f32 %v4177_v18, %v3068_v27  ;;  %v4538_v16 = vld [vmem:[%s6579_s3 + $0x80] ss:$20 sps:$4 sm:$0xff]  }
 0x4b5   : > { %v3056_v55 = vpop.permute.xlu1 %3055 }
 0x4b6   : > { %v3065_v39 = vadd.f32 %v3056_v55, %v3040_v54  ;;  %v3041_v10 = vadd.f32 %v6307_v63, %v3018_v30  ;;  %v3081_v31 = vmax.f32 %v3077_v2, 0.0 }
 0x4b7   : > { %v3058_v28 = vpop.permute.xlu0 %3057 }
 0x4b8   : > { %v3069_v57 = vadd.f32 %v3065_v39, %v6267_v60  ;;  %v3066_v22 = vadd.f32 %v3058_v28, %v3041_v10  ;;  %v3088_v25 = vrot.slane %v3081_v31, 1 }
 0x4b9   : > { %v3052_v36 = vpop.permute.xlu1 %3051 }
 0x4ba   : > { %v3078_v20 = vadd.f32 %v4177_v18, %v3069_v57  ;;  %v3070_v45 = vadd.f32 %v3066_v22, %v6269_v38  ;;  %v3063_v8 = vadd.f32 %v3052_v36, %v3038_v7 }
 0x4bc   : > { %v3082_v3 = vmax.f32 %v3078_v20, 0.0  ;;  %v3079_v51 = vadd.f32 %v4177_v18, %v3070_v45  ;;  %v3067_v62 = vadd.f32 %v6238_v47, %v3063_v8 }
 0x4be   : > { %v3090_v48 = vrot.slane %v3082_v3, 1  ;;  %v3083_v4 = vmax.f32 %v3079_v51, 0.0  ;;  %v3076_v50 = vadd.f32 %v4177_v18, %v3067_v62 }
 0x4c0   : > { %v3099_v44 = vrot.slane %v3083_v4, 1  ;;  %v3080_v63 = vmax.f32 %v3076_v50, 0.0  ;;  %v3091_v26 = vsel %vm1109_vm2, %v3088_v25, %v3090_v48  ;;  %v3097_v58 = vmax.f32 %v3082_v3, %v3090_v48 }
 0x4c1   : > { %v3096_v60 = vmax.f32 %v3081_v31, %v3091_v26 }
 0x4c2   : > { %v3100_v35 = vsel %vm1109_vm2, %v3090_v48, %v3099_v44  ;;  %v3087_v56 = vrot.slane %v3080_v63, 1  ;;  %v3103_v59 = vmax.f32 %v3080_v63, %v3088_v25  ;;  %v4552_v48 = vld [vmem:[%s6580_s4 + $0xc] ss:$20 sps:$4 sm:$0xff]   ;;  %v4556_v44 = vld [vmem:[%s6580_s4 + $0x30] ss:$20 sps:$4 sm:$0xff]  }
 0x4c3   : > { %v3104_v24 = vmax.f32 %v3082_v3, %v3100_v35  ;;  %v3109_v38 = vrot.slane %v3096_v60, 7  ;;  %v3513_v3 = vld [vmem:[%s6584_s8] sm:$0xff] }
 0x4c4   : > { %v3108_v15 = vrot.slane %v3103_v59, 7  ;;  %v3089_v41 = vsel %vm1109_vm2, %v3087_v56, %v3088_v25  ;;  %v4550_v25 = vld [vmem:[%s6580_s4 + $0x8] ss:$20 sps:$4 sm:$0xff]  }
 0x4c5   : > { %v3095_v1 = vmax.f32 %v3080_v63, %v3089_v41  ;;  %v3111_v47 = vrot.slane %v3104_v24, 7  ;;  %v4558_v63 = vld [vmem:[%s6580_s4 + $0x34] ss:$20 sps:$4 sm:$0xff]  }
 0x4c6   : > { %v3110_v33 = vsel %vm2959_vm9, %v3108_v15, %v3109_v38 }
 0x4c7   : > { %v3112_v12 = vsel %vm2959_vm9, %v3109_v38, %v3111_v47  ;;  %v3116_v34 = vmax.f32 %v3095_v1, %v3110_v33  ;;  %v3118_v23 = vmax.f32 %v3097_v58, %v3111_v47 }
 0x4c8   : > { %v3117_v43 = vmax.f32 %v3096_v60, %v3112_v12  ;;  %v4204_v12 = vld [vmem:[%s6581_s5 + $0x2] ss:$0 sm:$0xff] }
 0x4ca   : > { %v4417_v11 = vpack.c.bf16 %v3117_v43, %v3116_v34 }
 0x4cc   : > { %4418 = vmatprep.subr.bf16.mxu0 %v4417_v11 }
 0x4cd   : > { %4420 = vmatpush3.bf16.msra.mxu0 %v4417_v11  ;;  %v4546_v11 = vld [vmem:[%s6580_s4 + $0x4] ss:$20 sps:$4 sm:$0xff]  }
 0x4ce   : > { %4338 = vmatprep.subr.msk.mxu0 %vm2959_vm9, %v3118_v23 }
 0x4d1   : > { %4339 = vmatpush3.msk.msra.mxu0 %vm2959_vm9, %v3118_v23 }
 0x4d2   : > { %4341 = vmatmul.mubr.msk.f32.vlgmr.msra.gmra.mrb[104].mxu0 %vm3121_vm11, %v3120_v19  ;;  %3380 = vmatprep.subr.bf16.mxu0 %v4524_v5  ;;  %v3514_v5 = vld [vmem:[%s6584_s8 + $0x8] sm:$0xff]  ;;  %v4544_v19 = vld [vmem:[%s6580_s4] ss:$20 sps:$4 sm:$0xff]  }
 0x4d3   : > { %3381 = vmatpush1.bf16.msra.mxu0 %v4522_v53  ;;  %3412 = vmatprep.mubr.bf16.mxu0 %v6883_v37  ;;  %v4549_v53 = vld [vmem:[%s6580_s4 + $0x2c] ss:$20 sps:$4 sm:$0xff]  }
 0x4d4   : > { %3382 = vmatprep.subr.bf16.mxu0 %v4530_v6  ;;  %v4547_v6 = vld [vmem:[%s6580_s4 + $0x28] ss:$20 sps:$4 sm:$0xff]  }
 0x4d7   : > { %3383 = vmatpush1.bf16.msra.mxu0 %v4528_v61  ;;  %v4555_v61 = vld [vmem:[%s6580_s4 + $0x54] ss:$20 sps:$4 sm:$0xff]  }
 0x4d8   : > { %3384 = vmatprep.subr.bf16.mxu0 %v4536_v40  ;;  %v4553_v40 = vld [vmem:[%s6580_s4 + $0x50] ss:$20 sps:$4 sm:$0xff]  }
 0x4db   : > { %3385 = vmatpush1.bf16.msra.mxu0 %v4534_v49  ;;  %v4561_v49 = vld [vmem:[%s6580_s4 + $0x7c] ss:$20 sps:$4 sm:$0xff]  }
 0x4dc   : > { %3386 = vmatprep.subr.bf16.mxu0 %v4540_v21  ;;  %v4564_v21 = vld [vmem:[%s6580_s4 + $0x5c] ss:$20 sps:$4 sm:$0xff]  }
 0x4df   : > { %3387 = vmatpush1.bf16.msra.mxu0 %v4538_v16  ;;  %v4562_v16 = vld [vmem:[%s6580_s4 + $0x58] ss:$20 sps:$4 sm:$0xff]  }
 0x5a5   : > { %v4342_v0 = vpop.f32.mrb[104].mxu0 }
 0x5a6   : > { %v3197_v17 = vpop.f32.mrb[105].mxu0 }
 0x5a7   : > { %v3206_v7 = vpack.c.bf16 %v4342_v0, %v3197_v17  ;;  %v4568_v0 = vld [vmem:[%s6580_s4 + $0x84] ss:$20 sps:$4 sm:$0xff]   ;;  %v4566_v17 = vld [vmem:[%s6580_s4 + $0x80] ss:$20 sps:$4 sm:$0xff]  }
 0x5a9   : > { %4201 = vmatmul.mubr.msk.bf16.vlgmr.msra.gmra.mrb[112].mxu1 %vm2699_vm8, %v3206_v7  ;;  %4202 = vmatmul.mubr.msk.bf16.vlgmr.msra.gmra.mrb[108].mxu0 %vm2699_vm8, %v3206_v7 }
 0x5aa   : > { %4344 = vmatpush3.bf16.msra.mxu1 %v4537_v13  ;;  %4351 = vmatprep.mubr.msk.bf16.mxu1 %vm4642_vm12, %v4641_v29 }
 0x5ab   : > { %4345 = vmatprep.subr.bf16.mxu1 %v4641_v29  ;;  %4357 = vmatprep.mubr.msk.f32.mxu0 %vm3515_vm14, %v3513_v3 }
 0x5ae   : > { %4346 = vmatpush3.bf16.msra.mxu1 %v4541_v9  ;;  %v4565_v9 = vld [vmem:[%s6580_s4 + $0x10] ss:$20 sps:$4 sm:$0xff]  }
 0x5af   : > { %4347 = vmatprep.subr.bf16.mxu1 %v4641_v29 }
 0x5b2   : > { %4348 = vmatpush3.bf16.msra.mxu1 %v4542_v32 }
 0x5b3   : > { %4349 = vmatprep.subr.bf16.mxu1 %v4641_v29 }
 0x5b6   : > { %4350 = vmatpush3.bf16.msra.mxu1 %v4543_v46  ;;  %v4569_v46 = vld [vmem:[%s6580_s4 + $0x38] ss:$20 sps:$4 sm:$0xff]  }
 0x5b7   : > { %3774 = vmatprep.subr.bf16.mxu1 %v4552_v48 }
 0x5b9   : > { %4352 = vmatmul.mubr.msk.bf16.vlgmr.msra.gmra.mrb[116].mxu1 %vm2699_vm8, %v3206_v7 }
 0x5ba   : > { %3806 = vmatprep.mubr.bf16.mxu1 %v6883_v37  ;;  %3775 = vmatpush1.bf16.msra.mxu1 %v4550_v25 }
 0x5bb   : > { %3776 = vmatprep.subr.bf16.mxu1 %v4558_v63 }
 0x5be   : > { %3777 = vmatpush1.bf16.msra.mxu1 %v4556_v44 }
 0x5bf   : > { %3778 = vmatprep.subr.bf16.mxu1 %v4564_v21 }
 0x5c2   : > { %3779 = vmatpush1.bf16.msra.mxu1 %v4562_v16 }
 0x5c3   : > { %3780 = vmatprep.subr.bf16.mxu1 %v4568_v0 }
 0x5c6   : > { %3781 = vmatpush1.bf16.msra.mxu1 %v4566_v17 }
 0x5c7   : > { %4372 = vmatprep.subr.mxu1 %v4641_v29 }
 0x67c   : > { %v3372_v52 = vpop.f32.mrb[112].mxu1  ;;  %v3414_v27 = vpop.f32.mrb[108].mxu0 }
 0x67d   : > { %v3463_v14 = vrot.slane %v3372_v52, 1  ;;  %v3374_v18 = vpop.f32.mrb[113].mxu1  ;;  %v3416_v42 = vpop.f32.mrb[109].mxu0  ;;  %v3483_v2 = vrot.slane %v3414_v27, 5  ;;  %v3488_v39 = vrot.slane %v3414_v27, 6 }
 0x67e   : > { %v3376_v30 = vpop.f32.mrb[114].mxu1  ;;  %v3417_v54 = vpop.f32.mrb[110].mxu0  ;;  %v3473_v22 = vrot.slane %v3374_v18, 4  ;;  %v3469_v60 = vrot.slane %v3374_v18, 2  ;;  %v4571_v27 = vld [vmem:[%s6580_s4 + $0x88] ss:$20 sps:$4 sm:$0xff]  }
 0x67f   : > { %3464 = vrot.lane.b32.xlu0 %v3463_v14, %s4638_s25  ;;  %v3377_v55 = vpop.f32.mrb[115].mxu1  ;;  %v3484_v10 = vrot.slane %v3417_v54, 5  ;;  %v3489_v28 = vrot.slane %v3417_v54, 6  ;;  %v3419_v57 = vpop.f32.mrb[111].mxu0 }
 0x680   : > { %v3474_v36 = vrot.slane %v3377_v55, 4  ;;  %v3497_v8 = vrot.slane %v3419_v57, 1 }
 0x681   : > { %v3490_v31 = vsel %vm3024_vm10, %v3488_v39, %v3489_v28  ;;  %v3485_v20 = vsel %vm3482_vm13, %v3483_v2, %v3484_v10 }
 0x682   : > { %v3475_v45 = vsel %vm536_vm0, %v3473_v22, %v3474_v36 }
 0x683   : > { %3476 = vrot.lane.b32.xlu1 %v3475_v45, %s4638_s25  ;;  %3491 = vrot.lane.b32.xlu0 %v3490_v31, %s4638_s25 }
 0x687   : > { %3498 = vrot.lane.b32.xlu1 %v3497_v8, %s4638_s25 }
 0x68c   : > { %v3456_v51 = vpop.f32.mrb[116].mxu1 }
 0x68d   : > { %v4353_v62 = vpop.f32.mrb[117].mxu1 }
 0x68e   : > { %v3458_v4 = vpop.f32.mrb[118].mxu1 }
 0x68f   : > { %v4354_v50 = vpop.f32.mrb[119].mxu1  ;;  %v3503_v58 = vrot.slane %v3458_v4, 2 }
 0x6f1   : > { %v3465_v26 = vpop.permute.xlu0 %3464 }
 0x6f2   : > { %v3467_v35 = vadd.f32 %v3465_v26, %v3372_v52  ;;  %v4570_v52 = vld [vmem:[%s6580_s4 + $0x60] ss:$20 sps:$4 sm:$0xff]  }
 0x6f4   : > { %v3471_v56 = vadd.f32 %v3469_v60, %v3467_v35 }
 0x6f5   : > { %v3477_v59 = vpop.permute.xlu1 %3476  ;;  %v3492_v15 = vpop.permute.xlu0 %3491 }
 0x6f6   : > { %v3479_v24 = vadd.f32 %v3477_v59, %v3471_v56 }
 0x6f8   : > { %v3487_v38 = vadd.f32 %v3485_v20, %v3479_v24 }
 0x6f9   : > { %v3499_v47 = vpop.permute.xlu1 %3498 }
 0x6fa   : > { %v3494_v41 = vadd.f32 %v3492_v15, %v3487_v38 }
 0x6fc   : > { %v3495_v1 = vadd.f32 %v3494_v41, %v3419_v57 }
 0x6fe   : > { %v3501_v33 = vadd.f32 %v3499_v47, %v3495_v1  ;;  %v4231_v1 = vld [vmem:[%s6581_s5 + $0x3] ss:$0 sm:$0xff] }
 0x700   : > { %v3505_v34 = vadd.f32 %v3503_v58, %v3501_v33 }
 0x702   : > { %v3511_v23 = vadd.f32 %v4204_v12, %v3505_v34  ;;  %v3906_v12 = vld [vmem:[%s6585_s9] sm:$0xf] }
 0x704   : > { %v3512_v43 = vmax.f32 %v3511_v23, 0.0 }
 0x706   : > { %4355 = vmatprep.subr.msk.mxu0 %vm1305_vm3, %v3512_v43 }
 0x707   : > { %4356 = vmatpush3.msk.msra.mxu0 %vm1305_vm3, %v3512_v43 }
 0x708   : > { %4358 = vmatmul.mubr.msk.f32.vlgmr.msra.gmra.mrb[106].mxu0 %vm3515_vm14, %v3514_v5  ;;  %3732 = vmatprep.subr.bf16.mxu0 %v4546_v11 }
 0x709   : > { %3733 = vmatpush1.bf16.msra.mxu0 %v4544_v19  ;;  %3764 = vmatprep.mubr.bf16.mxu0 %v6883_v37  ;;  %v4559_v37 = vld [vmem:[%s6580_s4 + $0x78] ss:$20 sps:$4 sm:$0xff]  }
 0x70a   : > { %3734 = vmatprep.subr.bf16.mxu0 %v4549_v53 }
 0x70d   : > { %3735 = vmatpush1.bf16.msra.mxu0 %v4547_v6 }
 0x70e   : > { %3736 = vmatprep.subr.bf16.mxu0 %v4555_v61 }
 0x711   : > { %3737 = vmatpush1.bf16.msra.mxu0 %v4553_v40 }
 0x712   : > { %3738 = vmatprep.subr.bf16.mxu0 %v4561_v49 }
 0x715   : > { %3739 = vmatpush1.bf16.msra.mxu0 %v4559_v37 }
 0x716   : > { %4360 = vmatprep.subr.bf16.mxu0 %v4641_v29 }
 0x7db   : > { %v4359_v13 = vpop.f32.mrb[106].mxu0 }
 0x7dc   : > { %v3591_v7 = vpop.f32.mrb[107].mxu0 }
 0x7dd   : > { %v3600_v32 = vpack.c.bf16 %v4359_v13, %v3591_v7 }
 0x7df   : > { %4228 = vmatmul.mubr.msk.bf16.vlgmr.msra.gmra.mrb[112].mxu0 %vm2699_vm8, %v3600_v32  ;;  %4229 = vmatmul.mubr.msk.bf16.vlgmr.msra.gmra.mrb[120].mxu1 %vm2699_vm8, %v3600_v32 }
 0x7e0   : > { %4361 = vmatpush3.bf16.msra.mxu0 %v4565_v9  ;;  %4368 = vmatprep.mubr.msk.bf16.mxu0 %vm4642_vm12, %v4641_v29 }
 0x7e1   : > { %4362 = vmatprep.subr.bf16.mxu0 %v4641_v29  ;;  %4374 = vmatprep.mubr.msk.f32.mxu1 %vm4642_vm12, %v4641_v29 }
 0x7e4   : > { %4363 = vmatpush3.bf16.msra.mxu0 %v4569_v46 }
 0x7e5   : > { %4364 = vmatprep.subr.bf16.mxu0 %v4641_v29 }
 0x7e8   : > { %4365 = vmatpush3.bf16.msra.mxu0 %v4570_v52 }
 0x7e9   : > { %4366 = vmatprep.subr.bf16.mxu0 %v4641_v29 }
 0x7ec   : > { %4367 = vmatpush3.bf16.msra.mxu0 %v4571_v27 }
 0x7ef   : > { %4369 = vmatmul.mubr.msk.bf16.vlgmr.msra.gmra.mrb[116].mxu0 %vm2699_vm8, %v3600_v32 }
 0x8b2   : > { %v3766_v14 = vpop.f32.mrb[112].mxu0  ;;  %v3808_v18 = vpop.f32.mrb[120].mxu1 }
 0x8b3   : > { %v3857_v42 = vrot.slane %v3766_v14, 1  ;;  %v3768_v30 = vpop.f32.mrb[113].mxu0  ;;  %v3810_v54 = vpop.f32.mrb[121].mxu1  ;;  %v3876_v10 = vrot.slane %v3808_v18, 5  ;;  %v3881_v28 = vrot.slane %v3808_v18, 6 }
 0x8b4   : > { %v3770_v55 = vpop.f32.mrb[114].mxu0  ;;  %v3811_v2 = vpop.f32.mrb[122].mxu1  ;;  %v3867_v31 = vrot.slane %v3768_v30, 4  ;;  %v3863_v50 = vrot.slane %v3768_v30, 2 }
 0x8b5   : > { %3858 = vrot.lane.b32.xlu0 %v3857_v42, %s4638_s25  ;;  %v3771_v39 = vpop.f32.mrb[115].mxu0  ;;  %v3877_v57 = vrot.slane %v3811_v2, 5  ;;  %v3882_v22 = vrot.slane %v3811_v2, 6  ;;  %v3813_v36 = vpop.f32.mrb[123].mxu1 }
 0x8b6   : > { %v3868_v29 = vrot.slane %v3771_v39, 4  ;;  %v3890_v3 = vrot.slane %v3813_v36, 1 }
 0x8b7   : > { %v3883_v20 = vsel %vm3024_vm10, %v3881_v28, %v3882_v22  ;;  %v3878_v45 = vsel %vm3482_vm13, %v3876_v10, %v3877_v57 }
 0x8b8   : > { %v3869_v8 = vsel %vm536_vm0, %v3867_v31, %v3868_v29 }
 0x8b9   : > { %3870 = vrot.lane.b32.xlu1 %v3869_v8, %s4638_s25  ;;  %3884 = vrot.lane.b32.xlu0 %v3883_v20, %s4638_s25 }
 0x8bd   : > { %3891 = vrot.lane.b32.xlu1 %v3890_v3, %s4638_s25  ;;  %s6534_s25 = scalar_lea.hbm %s6586_s10, %s4235_s21 }
 0x8c2   : > { %v3850_v51 = vpop.f32.mrb[116].mxu0 }
 0x8c3   : > { %v4370_v62 = vpop.f32.mrb[117].mxu0 }
 0x8c4   : > { %v3852_v25 = vpop.f32.mrb[118].mxu0 }
 0x8c5   : > { %v4371_v48 = vpop.f32.mrb[119].mxu0  ;;  %v3896_v15 = vrot.slane %v3852_v25, 2 }
 0x927   : > { %v3859_v4 = vpop.permute.xlu0 %3858 }
 0x928   : > { %v3861_v44 = vadd.f32 %v3859_v4, %v3766_v14 }
 0x92a   : > { %v3865_v63 = vadd.f32 %v3863_v50, %v3861_v44 }
 0x92b   : > { %v3871_v26 = vpop.permute.xlu1 %3870  ;;  %v3885_v56 = vpop.permute.xlu0 %3884 }
 0x92c   : > { %v3873_v60 = vadd.f32 %v3871_v26, %v3865_v63 }
 0x92e   : > { %v3880_v35 = vadd.f32 %v3878_v45, %v3873_v60 }
 0x92f   : > { %v3892_v38 = vpop.permute.xlu1 %3891 }
 0x930   : > { %v3887_v59 = vadd.f32 %v3885_v56, %v3880_v35 }
 0x932   : > { %v3888_v24 = vadd.f32 %v3887_v59, %v3813_v36 }
 0x934   : > { %v3894_v41 = vadd.f32 %v3892_v38, %v3888_v24 }
 0x936   : > { %v3898_v47 = vadd.f32 %v3896_v15, %v3894_v41 }
 0x938   : > { %v3904_v58 = vadd.f32 %v4231_v1, %v3898_v47 }
 0x93a   : > { %v3905_v33 = vmax.f32 %v3904_v58, 0.0 }
 0x93c   : > { %4373 = vmatpush3.msk.msra.mxu1 %vm1305_vm3, %v3905_v33 }
 0x93d   : > { %4375 = vmatmul.mubr.msk.f32.vlgmr.msra.gmra.mrb[78].mxu1 %vm3515_vm14, %v3906_v12 }
 0xa10   : > { %v3979_v34 = vpop.f32.mrb[78].mxu1 }
 0xa11   : > { %3984 = vst.msk [vmem:[%s352_s26] sm:$0xf] %vm3983_vm15, %v3979_v34  ;;  %v4376_v23 = vpop.f32.mrb[79].mxu1 }
 0xa12   : > { %4586 = shalt.err (!%p4583_p3)
}
 0xa13   : > { %s4587_s18 = scalar_lea.hbm %s6534_s25, 64  ;;  %s4591_s28 = scalar_lea.hbm %s6586_s10, 128 }
 0xa14   : > { %p4588_p4 = scmp.ne.s32.totalorder %s6534_s25, %s4587_s18  ;;  %p4592_p9 = scmp.lt.u32.totalorder %s6534_s25, %s6586_s10 }
 0xa15   : > { %p4593_p10 = scmp.lt.u32.totalorder %s4591_s28, %s4587_s18  ;;  %p4595_p12 = scmp.lt.u32.totalorder %s4587_s18, %s6534_s25 }
 0xa16   : > { %p4589_p7 = pnand %p4588_p4, %p4737_p5 }
 0xa17   : > { %p4594_p11 = por %p4593_p10, %p4592_p9 }
 0xa18   : > { %p4590_p8 = pneg %p4589_p7 }
 0xa19   : > { %p4596_p13 = por %p4595_p12, %p4594_p11 }
 0xa1b   : > { %p4597_p0 = pnand %p4596_p13, %p4590_p8 }
 0xa1d   : > { %4600 = shalt.err (!%p4597_p0)
}
 0xa1e   : > { %4422 = dma.vmem_to_hbm [thread:$0]  (%p4737_p5), %s6536_s27, 64, %s6534_s25, %s3986_s30  }
 0xa1f PF: > { %p4428_p1 = scmp.ge.s32.totalorder %s4635_s16, 2  ;;  %s4011_s11 = sand.u32 1, %s4623_s13  }
 0xa20   : > { %s4012_s12 = scalar_lea.sflag [#allocation3], %s4011_s11 }
 0xa21   : > { %p4425_p2 = pnand %p4428_p1, %p4741_p6 }
 0xa23   : > { %4618 = dma.done.wait (!%p4425_p2), %s4012_s12, 64  }
 0xa24   : > { %4620 = vsyncadd (!%p4425_p2), %s4012_s12, 4294967232  ;;  %p20_p3 = scmp.ge.s32.totalorder %s4724_s19, 4   ;;  %s6884_s13 = smov %s4627_s14 }
 0xa25   : > { %s6885_s14 = smov %s4631_s15  ;;  %s6886_s15 = smov %s4735_s22 }
 0xa26   : > { %s6887_s16 = smov %s4724_s19  ;;  %22 = sbr.rel (!%p20_p3) target bundleno = 3 (0x3), region = 95 }
 0xa2d   :  { %4017 = vsyncpa [#allocation3], 1 }
 0xa2e   :  { %4019 = vsyncpa [#allocation3 + $0x1], 1 }

</bundles_post_ra>
